<compile_context>
chip_gen: v6e
topology: v6e:2x2x1
jax: 0.10.0
libtpu: 0.0.40
codegen_flags: <defaults>
</compile_context>

<pallas_src>
import functools

import numpy as np
import jax
import jax.numpy as jnp
from jax.experimental import pallas as pl
from jax.experimental.pallas import tpu as pltpu


def _round_up(x, m):
    return (x + m - 1) // m * m


def _vmem_capacity_bytes():
    try:
        info = pltpu.get_tpu_info()
        cap = getattr(info, "vmem_capacity_bytes", None)
        if cap:
            return int(cap)
    except Exception:
        pass
    return 64 * 1024 * 1024  # conservative default (v7x per-TensorCore VMEM)


# ---------------------------------------------------------------------------
# Kernel 1: fused per-layer projection (one bf16 MXU matmul).
# ---------------------------------------------------------------------------
def _proj_kernel(x_ref, w_ref, h_ref, st_ref, *, hdim, dph, dout):
    proj = jnp.dot(x_ref[...], w_ref[...], preferred_element_type=jnp.float32)
    hpart = proj[:, :hdim]
    lane = jax.lax.broadcasted_iota(jnp.int32, hpart.shape, 1)
    # Ones column at lane `dout` of every per-head 128-lane block: the rowsum of
    # the attention weights then falls out of the e@h matmul for free.
    hval = jnp.where(lane % dph == dout, 1.0, hpart)
    h_ref[...] = hval.astype(h_ref.dtype)
    st_ref[...] = proj[:, hdim:hdim + 128]


# ---------------------------------------------------------------------------
# Kernel 2: streaming masked attention + neighbourhood aggregation.
# grid = (row_blocks, col_blocks); reduction (column) axis is last.
# ---------------------------------------------------------------------------
def _attn_kernel(st_ref, t_ref, h_ref, mask_ref, *refs,
                 nheads, dout, dph, tk, alpha, with_att, h_resident):
    if with_att:
        out_ref, att_ref, acc_sc = refs
    else:
        out_ref, acc_sc = refs
        att_ref = None

    j = pl.program_id(1)

    @pl.when(j == 0)
    def _init():
        acc_sc[...] = jnp.zeros_like(acc_sc)

    s_all = st_ref[...]                               # (TM, 128) f32 (s in lanes [0,H))
    t_all = t_ref[...]                                # (H, TK)   f32
    maskf = mask_ref[...].astype(jnp.float32)         # (TM, TK)  {0,1}, hoisted per tile

    if h_resident:
        base = pl.multiple_of(j * tk, tk)
        h_all = h_ref[pl.ds(base, tk), :]             # (TK, H*dph) bf16 (VMEM resident)
    else:
        h_all = h_ref[...]                            # (TK, H*dph) bf16 (streamed)

    for hd in range(nheads):                          # static unroll; nheads is small
        # e = exp(-leakyrelu(s_i + t_j)) on edges, exactly 0 elsewhere.
        # -leakyrelu(x) == min(-x, -alpha*x); the 80-clamp keeps exp finite so the
        # mask multiply can never produce 0*inf NaNs.
        ns = -s_all[:, hd:hd + 1]
        na = (-alpha) * s_all[:, hd:hd + 1]
        nt = -t_all[hd:hd + 1, :]
        nat = (-alpha) * t_all[hd:hd + 1, :]
        expo = jnp.minimum(jnp.minimum(ns + nt, na + nat), 80.0)
        e = (jnp.exp(expo) * maskf).astype(jnp.bfloat16)
        # 128-lane aligned accumulator slice; rowsum rides along in lane `dout`.
        acc_sc[:, hd * dph:(hd + 1) * dph] += jnp.dot(
            e, h_all[:, hd * dph:(hd + 1) * dph],
            preferred_element_type=jnp.float32)
        if att_ref is not None:                       # only the single-head out layer
            att_ref[...] = e

    @pl.when(j == pl.num_programs(1) - 1)
    def _finalize():
        acc = acc_sc[...]
        parts = []
        for hd in range(nheads):
            blk = acc[:, hd * dph:(hd + 1) * dph]
            rowsum = jnp.maximum(blk[:, dout:dout + 1], 1e-30)
            parts.append(blk * pl.reciprocal(rowsum, approx=True))
        v = parts[0] if nheads == 1 else jnp.concatenate(parts, axis=1)
        out_ref[...] = jnp.where(v > 0, v, jnp.exp(v) - 1.0).astype(out_ref.dtype)  # F.elu


# ---------------------------------------------------------------------------
# Tile / VMEM selection (per-generation via get_tpu_info, with temporaries).
# ---------------------------------------------------------------------------
def _choose_tiles(n_pad, hdim, nheads, with_att, out_bytes):
    cap = _vmem_capacity_bytes()
    budget = int(cap * 0.6)

    # Row tile: <= 256 and >= 2 row blocks when possible (2-TC load balance).
    tm_c = [c for c in range(min(n_pad, 256), 127, -128) if n_pad % c == 0]
    tm = next((c for c in tm_c if n_pad // c >= 2), tm_c[-1])

    # Keep h fully VMEM resident (double-buffer accounted) when it is small.
    h_resident = 2 * n_pad * hdim * 2 <= min(12 << 20, budget // 3)

    def est(tk):
        h_b = 2 * n_pad * hdim * 2 if h_resident else 2 * tk * hdim * 2
        io = (2 * tm * 128 * 4 + 2 * nheads * tk * 4 + h_b
              + 2 * tm * tk                              # int8 mask tile
              + 2 * tm * hdim * out_bytes
              + (2 * tm * tk * 2 if with_att else 0))
        temps = tm * tk * 4 * (3 * nheads + 2)           # in-kernel f32 temporaries
        return io + tm * hdim * 4 + temps

    tk_c = [c for c in range(min(n_pad, 2048), 127, -128) if n_pad % c == 0]
    tk = next((c for c in tk_c if est(c) <= budget), 128)

    vmem_limit = int(min(max(int(est(tk) * 1.4), 32 << 20), int(cap * 0.85)))
    return tm, tk, h_resident, vmem_limit


# ---------------------------------------------------------------------------
# One fused multi-head SpGraph attention layer (eval mode).
# ---------------------------------------------------------------------------
def spgat_layer(x_pad, head_params, mask_pad, *, alpha, return_att,
                row_map=None, out_dtype=jnp.bfloat16):
    n_pad, din_phys = x_pad.shape
    nheads = len(head_params)
    din_log, dout = head_params[0][0].shape
    dph = _round_up(dout + 1, 128)           # per-head lane block (features + ones col)
    hdim = nheads * dph
    assert 2 * nheads <= 128
    if return_att:
        assert nheads == 1, "dense attention is only emitted for the out_att layer"
    if row_map is None:
        assert din_phys == din_log
    else:
        assert len(row_map) == din_log

    # Fold W, W@a_src, W@a_dst of all heads into one weight; expand its rows to the
    # padded activation layout of the previous layer (zero rows at pad lanes) so the
    # activation never needs a reshape/slice pass between layers.
    cols = hdim + 128
    wc = jnp.zeros((din_log, cols), jnp.float32)
    for hd, (w, a) in enumerate(head_params):
        w = w.astype(jnp.float32)
        a = a.astype(jnp.float32)
        wc = wc.at[:, hd * dph:hd * dph + dout].set(w)
        wc = wc.at[:, hdim + hd].set(w @ a[0, :dout])
        wc = wc.at[:, hdim + nheads + hd].set(w @ a[0, dout:])
    if row_map is not None:
        wc = jnp.zeros((din_phys, cols), jnp.float32).at[np.asarray(row_map)].set(wc)
    w_cat = wc.astype(jnp.bfloat16)

    # ---- kernel 1: row-tiled bf16 projection ------------------------------
    blk1 = max(c for c in (512, 256, 128) if n_pad % c == 0)
    h, st = pl.pallas_call(
        functools.partial(_proj_kernel, hdim=hdim, dph=dph, dout=dout),
        out_shape=(jax.ShapeDtypeStruct((n_pad, hdim), jnp.bfloat16),
                   jax.ShapeDtypeStruct((n_pad, 128), jnp.float32)),
        grid=(n_pad // blk1,),
        in_specs=[pl.BlockSpec((blk1, din_phys), lambda i: (i, 0)),
                  pl.BlockSpec((din_phys, cols), lambda i: (0, 0))],
        out_specs=(pl.BlockSpec((blk1, hdim), lambda i: (i, 0)),
                   pl.BlockSpec((blk1, 128), lambda i: (i, 0))),
        compiler_params=pltpu.CompilerParams(dimension_semantics=("parallel",)),
    )(x_pad.astype(jnp.bfloat16), w_cat)

    t_arr = st[:, nheads:2 * nheads].T        # (H, Np): lane-major for column blocks

    # ---- kernel 2: tiled masked attention + aggregation -------------------
    out_bytes = jnp.dtype(out_dtype).itemsize
    tm, tk, h_resident, vmem_limit = _choose_tiles(n_pad, hdim, nheads,
                                                   return_att, out_bytes)
    nbr, nbc = n_pad // tm, n_pad // tk

    h_spec = (pl.BlockSpec((n_pad, hdim), lambda i, j: (0, 0)) if h_resident
              else pl.BlockSpec((tk, hdim), lambda i, j: (j, 0)))

    out_shapes = [jax.ShapeDtypeStruct((n_pad, hdim), out_dtype)]
    out_specs = [pl.BlockSpec((tm, hdim), lambda i, j: (i, 0))]
    if return_att:
        out_shapes.append(jax.ShapeDtypeStruct((n_pad, n_pad), jnp.bfloat16))
        out_specs.append(pl.BlockSpec((tm, tk), lambda i, j: (i, j)))

    flops = int(n_pad) * int(n_pad) * nheads * (2 * dph + 8)
    bytes_accessed = (int(n_pad) * int(n_pad)                        # int8 mask
                      + (n_pad * hdim * 2 if h_resident else nbr * n_pad * hdim * 2)
                      + n_pad * 128 * 4 + n_pad * hdim * out_bytes
                      + (int(n_pad) * int(n_pad) * 2 if return_att else 0))

    result = pl.pallas_call(
        functools.partial(_attn_kernel, nheads=nheads, dout=dout, dph=dph,
                          tk=tk, alpha=alpha, with_att=return_att,
                          h_resident=h_resident),
        out_shape=tuple(out_shapes) if return_att else out_shapes[0],
        grid=(nbr, nbc),
        in_specs=[pl.BlockSpec((tm, 128), lambda i, j: (i, 0)),      # s/t logits (row)
                  pl.BlockSpec((nheads, tk), lambda i, j: (0, j)),   # t (col block)
                  h_spec,                                            # h (resident/stream)
                  pl.BlockSpec((tm, tk), lambda i, j: (i, j))],      # int8 mask tile
        out_specs=tuple(out_specs) if return_att else out_specs[0],
        scratch_shapes=[pltpu.VMEM((tm, hdim), jnp.float32)],        # e@h (+rowsum) accum
        compiler_params=pltpu.CompilerParams(
            dimension_semantics=("parallel", "arbitrary"),
            vmem_limit_bytes=vmem_limit),
        cost_estimate=pl.CostEstimate(
            flops=int(flops),
            transcendentals=int(n_pad) * int(n_pad) * nheads,
            bytes_accessed=int(bytes_accessed)),
    )(st, t_arr, h, mask_pad)

    if return_att:
        return result[0], result[1]
    return result, None


def _make_row_map(nheads, dout):
    dph = _round_up(dout + 1, 128)
    return np.concatenate([hd * dph + np.arange(dout) for hd in range(nheads)])


# ---------------------------------------------------------------------------
# SpMGAT.forward (eval mode): dropout == identity.
# ---------------------------------------------------------------------------
def spgat_forward(adj, x, params, *, alpha):
    n = x.shape[0]
    n_pad = _round_up(n, 128)
    mask_pad = jnp.pad((adj != 0).astype(jnp.int8),
                       ((0, n_pad - n), (0, n_pad - n)))
    x_pad = jnp.pad(x.astype(jnp.float32), ((0, n_pad - n), (0, 0)))

    # first multi-head layer (concat=True): per-head dense attention is never
    # written to HBM (it is discarded by the module).
    heads = params["attentions"]
    x_pad, _ = spgat_layer(x_pad, heads, mask_pad, alpha=alpha,
                           return_att=False, row_map=None)
    row_map = _make_row_map(len(heads), heads[0][0].shape[1])

    # hidden layers.  NOTE: as in the PyTorch reference these use
    # in_features=hid_dim, which is only shape-consistent when nheads == 1.
    for layer_heads in params["hid_attentions"]:
        x_pad, _ = spgat_layer(x_pad, layer_heads, mask_pad, alpha=alpha,
                               return_att=False, row_map=row_map)
        row_map = _make_row_map(len(layer_heads), layer_heads[0][0].shape[1])

    # output layer (concat=False); the F.elu applied by SpMGAT.forward is fused
    # into the kernel finalization.
    out_pad, att_pad = spgat_layer(x_pad, [params["out_att"]], mask_pad,
                                   alpha=alpha, return_att=True,
                                   row_map=row_map, out_dtype=jnp.float32)
    embed_dim = params["out_att"][0].shape[1]
    return out_pad[:n, :embed_dim], att_pad[:n, :n]


# ---------------------------------------------------------------------------
# Parameters: deterministic stand-in for xavier_normal_(gain=1.414),
# matching SpGraph_Mul_AttentionLayer: W (din, dout), a (1, 2*dout).
# ---------------------------------------------------------------------------
def make_layer_params(key, din, dout):
    kw, ka = jax.random.split(key)
    std_w = 1.414 * np.sqrt(2.0 / (din + dout))
    w = (std_w * jax.random.normal(kw, (din, dout))).astype(jnp.float32)
    std_a = 1.414 * np.sqrt(2.0 / (1 + 2 * dout))
    a = (std_a * jax.random.normal(ka, (1, 2 * dout))).astype(jnp.float32)
    return w, a


def init_spgat_params(key, num_layers, init_dim, hid_dim, embed_dim, nheads):
    params = {"attentions": [], "hid_attentions": [], "out_att": None}
    for _ in range(nheads):
        key, sub = jax.random.split(key)
        params["attentions"].append(make_layer_params(sub, init_dim, hid_dim))
    for _ in range(num_layers - 1):
        heads = []
        for _ in range(nheads):
            key, sub = jax.random.split(key)
            heads.append(make_layer_params(sub, hid_dim, hid_dim))
        params["hid_attentions"].append(heads)
    key, sub = jax.random.split(key)
    params["out_att"] = make_layer_params(sub, hid_dim * nheads, embed_dim)
    return params


# ---------------------------------------------------------------------------
# Pure-JAX f32 reference of the same dense formulation (correctness check).
# ---------------------------------------------------------------------------
def spgat_forward_ref(adj, x, params, *, alpha):
    maskf = (adj != 0).astype(jnp.float32)

    def layer(xin, w, a, concat):
        dout = w.shape[1]
        h = xin @ w
        s = h @ a[0, :dout]
        t = h @ a[0, dout:]
        logits = s[:, None] + t[None, :]
        leaky = jnp.where(logits > 0, logits, alpha * logits)
        e = jnp.where(maskf > 0, jnp.exp(jnp.minimum(-leaky, 80.0)), 0.0)
        rowsum = jnp.maximum(e.sum(axis=1, keepdims=True), 1e-30)
        hp = (e @ h) / rowsum
        if concat:
            hp = jnp.where(hp > 0, hp, jnp.exp(hp) - 1.0)
        return hp, e

    heads = [layer(x, w, a, True)[0] for (w, a) in params["attentions"]]
    xh = jnp.concatenate(heads, axis=1)
    for layer_heads in params["hid_attentions"]:
        heads = [layer(xh, w, a, True)[0] for (w, a) in layer_heads]
        xh = jnp.concatenate(heads, axis=1)
    w, a = params["out_att"]
    hp, e = layer(xh, w, a, False)
    return jnp.where(hp > 0, hp, jnp.exp(hp) - 1.0), e


if __name__ == "__main__":
    # Small config consistent with the module: num_layers=1, nheads=2
    # (the reference's hidden layers are only shape-consistent for nheads=1).
    N = 256
    init_dim, hid_dim, embed_dim = 32, 16, 8
    nheads, num_layers = 2, 1
    alpha = 0.2

    key = jax.random.PRNGKey(0)
    key, k_adj, k_x = jax.random.split(key, 3)

    # Random sparse adjacency with self-loops (every row has >= 1 edge, matching
    # the reference's no-NaN assumption; the kernel also clamps rowsum).
    adj = (jax.random.uniform(k_adj, (N, N)) < 0.05).astype(jnp.float32)
    adj = jnp.maximum(adj, jnp.eye(N, dtype=jnp.float32))
    x = jax.random.normal(k_x, (N, init_dim), dtype=jnp.float32)

    params = init_spgat_params(key, num_layers, init_dim, hid_dim, embed_dim, nheads)

    fwd = jax.jit(lambda a_, x_: spgat_forward(a_, x_, params, alpha=alpha))
    out, att_dense = fwd(adj, x)
    out = jax.block_until_ready(out)
    att_dense = jax.block_until_ready(att_dense)

    # TODO(synk): adj.nonzero() has a data-dependent shape; edge extraction is
    # done on the host with numpy rather than inside the Pallas kernel.
    adj_np = np.asarray(adj)
    edge = np.stack(np.nonzero(adj_np))                   # (2, E) == adj.nonzero().t()
    att_np = np.asarray(att_dense).astype(np.float32)     # bf16 -> f32 on host
    attention_out = att_np[edge[0], edge[1]]              # per-edge edge_e values (E,)

    out_np = np.asarray(out)
    assert out_np.shape == (N, embed_dim)
    assert edge.shape[0] == 2 and attention_out.shape[0] == edge.shape[1]
    assert np.all(np.isfinite(out_np)) and np.all(np.isfinite(att_np))
    assert np.all(att_np[adj_np == 0] == 0.0)             # non-edges exactly zero

    # Compare against the pure-JAX f32 reference (loose tolerance: the kernel
    # uses bf16 MXU operands for x, W, e and h, and a bf16 attention output).
    out_ref, att_ref = spgat_forward_ref(adj, x, params, alpha=alpha)
    assert np.allclose(out_np, np.asarray(out_ref), rtol=1e-1, atol=1e-1)
    assert np.allclose(att_np, np.asarray(att_ref), rtol=1e-1, atol=1e-1)

    print("KERNEL_OK")
</pallas_src>

<mosaic_0001>
module attributes {stable_mosaic.version = 11 : i64} {
  func.func @_proj_kernel(%arg0: i32, %arg1: memref<256x32xbf16, #tpu.memory_space<vmem>>, %arg2: memref<32x384xbf16, #tpu.memory_space<vmem>>, %arg3: memref<256x256xbf16, #tpu.memory_space<vmem>>, %arg4: memref<256x128xf32, #tpu.memory_space<vmem>>) attributes {dimension_semantics = [#tpu.dimension_semantics<parallel>], iteration_bounds = array<i64: 1>, scalar_prefetch = 0 : i64, scratch_operands = 0 : i64, tpu.core_type = #tpu.core_type<tc>, window_params = [{transform_indices = @transform_0, window_bounds = array<i64: 256, 32>}, {pipeline_mode = #tpu.pipeline_mode<synchronous>, transform_indices = @transform_1, window_bounds = array<i64: 32, 384>}, {transform_indices = @transform_2, window_bounds = array<i64: 256, 256>}, {transform_indices = @transform_3, window_bounds = array<i64: 256, 128>}]} {
    %c0 = arith.constant 0 : index
    %c0_0 = arith.constant 0 : index
    %0 = vector.load %arg1[%c0, %c0_0] : memref<256x32xbf16, #tpu.memory_space<vmem>>, vector<256x32xbf16>
    %c0_1 = arith.constant 0 : index
    %c0_2 = arith.constant 0 : index
    %1 = vector.load %arg2[%c0_1, %c0_2] : memref<32x384xbf16, #tpu.memory_space<vmem>>, vector<32x384xbf16>
    %cst = arith.constant dense<0.000000e+00> : vector<256x384xf32>
    %2 = tpu.matmul %0, %1, %cst {dimension_numbers = #tpu.dot_dimension_numbers<[1], [0], [0], [1], [0, 0, 1, 1], [], []>} : vector<256x32xbf16>, vector<32x384xbf16>, vector<256x384xf32> -> vector<256x384xf32>
    %3 = vector.extract_strided_slice %2 {offsets = [0, 0], sizes = [256, 256], strides = [1, 1]} : vector<256x384xf32> to vector<256x256xf32>
    %4 = tpu.iota {dimensions = array<i32: 1>} : vector<256x256xi32>
    %c128_i32 = arith.constant 128 : i32
    %c0_i32 = arith.constant 0 : i32
    %5 = arith.cmpi eq, %c128_i32, %c0_i32 : i32
    %c1_i32 = arith.constant 1 : i32
    %6 = arith.select %5, %c1_i32, %c128_i32 : i32
    %7 = vector.broadcast %6 : i32 to vector<256x256xi32>
    %8 = arith.remsi %4, %7 : vector<256x256xi32>
    %c0_i32_3 = arith.constant 0 : i32
    %9 = vector.broadcast %c0_i32_3 : i32 to vector<256x256xi32>
    %10 = arith.cmpi ne, %8, %9 : vector<256x256xi32>
    %c0_i32_4 = arith.constant 0 : i32
    %11 = vector.broadcast %c0_i32_4 : i32 to vector<256x256xi32>
    %12 = arith.cmpi slt, %8, %11 : vector<256x256xi32>
    %c0_i32_5 = arith.constant 0 : i32
    %13 = arith.cmpi slt, %6, %c0_i32_5 : i32
    %14 = vector.broadcast %13 : i1 to vector<256x256xi1>
    %15 = vector.broadcast %14 : vector<256x256xi1> to vector<256x256xi1>
    %16 = arith.xori %12, %15 : vector<256x256xi1>
    %17 = arith.andi %16, %10 : vector<256x256xi1>
    %18 = vector.broadcast %6 : i32 to vector<256x256xi32>
    %19 = arith.addi %8, %18 : vector<256x256xi32>
    %20 = arith.select %17, %19, %8 : vector<256x256xi1>, vector<256x256xi32>
    %c16_i32 = arith.constant 16 : i32
    %21 = vector.broadcast %c16_i32 : i32 to vector<256x256xi32>
    %22 = arith.cmpi eq, %20, %21 : vector<256x256xi32>
    %cst_6 = arith.constant 1.000000e+00 : f32
    %23 = vector.broadcast %cst_6 : f32 to vector<256x256xf32>
    %24 = arith.select %22, %23, %3 : vector<256x256xi1>, vector<256x256xf32>
    %25 = arith.truncf %24 : vector<256x256xf32> to vector<256x256xbf16>
    %c0_7 = arith.constant 0 : index
    %c0_8 = arith.constant 0 : index
    %26 = vector.load %arg3[%c0_7, %c0_8] : memref<256x256xbf16, #tpu.memory_space<vmem>>, vector<256x256xbf16>
    tpu.vector_store %arg3[%c0_7, %c0_8], %25 {strides = array<i32>} : memref<256x256xbf16, #tpu.memory_space<vmem>>, vector<256x256xbf16>,
    %27 = vector.extract_strided_slice %2 {offsets = [0, 256], sizes = [256, 128], strides = [1, 1]} : vector<256x384xf32> to vector<256x128xf32>
    %c0_9 = arith.constant 0 : index
    %c0_10 = arith.constant 0 : index
    %28 = vector.load %arg4[%c0_9, %c0_10] : memref<256x128xf32, #tpu.memory_space<vmem>>, vector<256x128xf32>
    tpu.vector_store %arg4[%c0_9, %c0_10], %27 {strides = array<i32>} : memref<256x128xf32, #tpu.memory_space<vmem>>, vector<256x128xf32>,
    return
  }
  func.func @transform_0(%arg0: i32) -> (i32, i32) {
    %c0_i32 = arith.constant 0 : i32
    %c0_i32_0 = arith.constant 0 : i32
    return %arg0, %c0_i32 : i32, i32
  }
  func.func @transform_1(%arg0: i32) -> (i32, i32) {
    %c0_i32 = arith.constant 0 : i32
    %c0_i32_0 = arith.constant 0 : i32
    %c0_i32_1 = arith.constant 0 : i32
    return %c0_i32, %c0_i32_0 : i32, i32
  }
  func.func @transform_2(%arg0: i32) -> (i32, i32) {
    %c0_i32 = arith.constant 0 : i32
    %c0_i32_0 = arith.constant 0 : i32
    return %arg0, %c0_i32 : i32, i32
  }
  func.func @transform_3(%arg0: i32) -> (i32, i32) {
    %c0_i32 = arith.constant 0 : i32
    %c0_i32_0 = arith.constant 0 : i32
    return %arg0, %c0_i32 : i32, i32
  }
}

module attributes {stable_mosaic.version = 11 : i64} {
  func.func @_attn_kernel(%arg0: i32, %arg1: i32, %arg2: memref<128x128xf32, #tpu.memory_space<vmem>>, %arg3: memref<2x256xf32, #tpu.memory_space<vmem>>, %arg4: memref<256x256xbf16, #tpu.memory_space<vmem>>, %arg5: memref<128x256xi8, #tpu.memory_space<vmem>>, %arg6: memref<128x256xbf16, #tpu.memory_space<vmem>>, %arg7: memref<128x256xf32, #tpu.memory_space<vmem>>) attributes {dimension_semantics = [#tpu.dimension_semantics<parallel>, #tpu.dimension_semantics<arbitrary>], iteration_bounds = array<i64: 2, 1>, scalar_prefetch = 0 : i64, scratch_operands = 1 : i64, tpu.core_type = #tpu.core_type<tc>, window_params = [{transform_indices = @transform_0, window_bounds = array<i64: 128, 128>}, {transform_indices = @transform_1, window_bounds = array<i64: 2, 256>}, {pipeline_mode = #tpu.pipeline_mode<synchronous>, transform_indices = @transform_2, window_bounds = array<i64: 256, 256>}, {transform_indices = @transform_3, window_bounds = array<i64: 128, 256>}, {transform_indices = @transform_4, window_bounds = array<i64: 128, 256>}]} {
    %c0_i32 = arith.constant 0 : i32
    %0 = arith.cmpi eq, %arg1, %c0_i32 : i32
    %1 = arith.extui %0 : i1 to i32
    %c0_i32_0 = arith.constant 0 : i32
    %2 = arith.cmpi ne, %1, %c0_i32_0 : i32
    scf.if %2 {
      %cst_27 = arith.constant 0.000000e+00 : f32
      %72 = vector.broadcast %cst_27 : f32 to vector<128x256xf32>
      %c0_28 = arith.constant 0 : index
      %c0_29 = arith.constant 0 : index
      %73 = vector.load %arg7[%c0_28, %c0_29] : memref<128x256xf32, #tpu.memory_space<vmem>>, vector<128x256xf32>
      tpu.vector_store %arg7[%c0_28, %c0_29], %72 {strides = array<i32>} : memref<128x256xf32, #tpu.memory_space<vmem>>, vector<128x256xf32>,
    } else {
    }
    %c0 = arith.constant 0 : index
    %c0_1 = arith.constant 0 : index
    %3 = vector.load %arg2[%c0, %c0_1] : memref<128x128xf32, #tpu.memory_space<vmem>>, vector<128x128xf32>
    %c0_2 = arith.constant 0 : index
    %c0_3 = arith.constant 0 : index
    %4 = vector.load %arg3[%c0_2, %c0_3] : memref<2x256xf32, #tpu.memory_space<vmem>>, vector<2x256xf32>
    %c0_4 = arith.constant 0 : index
    %c0_5 = arith.constant 0 : index
    %5 = vector.load %arg5[%c0_4, %c0_5] : memref<128x256xi8, #tpu.memory_space<vmem>>, vector<128x256xi8>
    %6 = arith.sitofp %5 : vector<128x256xi8> to vector<128x256xf32>
    %c256_i32 = arith.constant 256 : i32
    %7 = arith.muli %arg1, %c256_i32 : i32
    %8 = tpu.assume_multiple %7, 256 : i32
    %9 = arith.index_cast %8 : i32 to index
    %c0_6 = arith.constant 0 : index
    %10 = vector.load %arg4[%9, %c0_6] : memref<256x256xbf16, #tpu.memory_space<vmem>>, vector<256x256xbf16>
    %11 = vector.extract_strided_slice %3 {offsets = [0, 0], sizes = [128, 1], strides = [1, 1]} : vector<128x128xf32> to vector<128x1xf32>
    %cst = arith.constant 0.000000e+00 : f32
    %12 = vector.broadcast %cst : f32 to vector<128x1xf32>
    %13 = arith.subf %12, %11 : vector<128x1xf32>
    %14 = vector.extract_strided_slice %3 {offsets = [0, 0], sizes = [128, 1], strides = [1, 1]} : vector<128x128xf32> to vector<128x1xf32>
    %cst_7 = arith.constant -2.000000e-01 : f32
    %15 = vector.broadcast %cst_7 : f32 to vector<128x1xf32>
    %16 = arith.mulf %15, %14 : vector<128x1xf32>
    %17 = vector.extract_strided_slice %4 {offsets = [0, 0], sizes = [1, 256], strides = [1, 1]} : vector<2x256xf32> to vector<1x256xf32>
    %cst_8 = arith.constant 0.000000e+00 : f32
    %18 = vector.broadcast %cst_8 : f32 to vector<1x256xf32>
    %19 = arith.subf %18, %17 : vector<1x256xf32>
    %20 = vector.extract_strided_slice %4 {offsets = [0, 0], sizes = [1, 256], strides = [1, 1]} : vector<2x256xf32> to vector<1x256xf32>
    %cst_9 = arith.constant -2.000000e-01 : f32
    %21 = vector.broadcast %cst_9 : f32 to vector<1x256xf32>
    %22 = arith.mulf %21, %20 : vector<1x256xf32>
    %23 = vector.broadcast %13 : vector<128x1xf32> to vector<128x256xf32>
    %24 = vector.broadcast %19 : vector<1x256xf32> to vector<128x256xf32>
    %25 = arith.addf %23, %24 : vector<128x256xf32>
    %26 = vector.broadcast %16 : vector<128x1xf32> to vector<128x256xf32>
    %27 = vector.broadcast %22 : vector<1x256xf32> to vector<128x256xf32>
    %28 = arith.addf %26, %27 : vector<128x256xf32>
    %29 = arith.minimumf %25, %28 : vector<128x256xf32>
    %cst_10 = arith.constant 8.000000e+01 : f32
    %30 = vector.broadcast %cst_10 : f32 to vector<128x256xf32>
    %31 = arith.minimumf %29, %30 : vector<128x256xf32>
    %32 = math.exp %31 : vector<128x256xf32>
    %33 = arith.mulf %32, %6 : vector<128x256xf32>
    %34 = arith.truncf %33 : vector<128x256xf32> to vector<128x256xbf16>
    %c0_11 = arith.constant 0 : index
    %c0_12 = arith.constant 0 : index
    %35 = vector.load %arg7[%c0_11, %c0_12] : memref<128x256xf32, #tpu.memory_space<vmem>>, vector<128x128xf32>
    %36 = vector.extract_strided_slice %10 {offsets = [0, 0], sizes = [256, 128], strides = [1, 1]} : vector<256x256xbf16> to vector<256x128xbf16>
    %cst_13 = arith.constant dense<0.000000e+00> : vector<128x128xf32>
    %37 = tpu.matmul %34, %36, %cst_13 {dimension_numbers = #tpu.dot_dimension_numbers<[1], [0], [0], [1], [0, 0, 1, 1], [], []>} : vector<128x256xbf16>, vector<256x128xbf16>, vector<128x128xf32> -> vector<128x128xf32>
    %38 = arith.addf %35, %37 : vector<128x128xf32>
    %c0_14 = arith.constant 0 : index
    %c0_15 = arith.constant 0 : index
    %39 = vector.load %arg7[%c0_14, %c0_15] : memref<128x256xf32, #tpu.memory_space<vmem>>, vector<128x128xf32>
    tpu.vector_store %arg7[%c0_14, %c0_15], %38 {strides = array<i32>} : memref<128x256xf32, #tpu.memory_space<vmem>>, vector<128x128xf32>,
    %40 = vector.extract_strided_slice %3 {offsets = [0, 1], sizes = [128, 1], strides = [1, 1]} : vector<128x128xf32> to vector<128x1xf32>
    %cst_16 = arith.constant 0.000000e+00 : f32
    %41 = vector.broadcast %cst_16 : f32 to vector<128x1xf32>
    %42 = arith.subf %41, %40 : vector<128x1xf32>
    %43 = vector.extract_strided_slice %3 {offsets = [0, 1], sizes = [128, 1], strides = [1, 1]} : vector<128x128xf32> to vector<128x1xf32>
    %cst_17 = arith.constant -2.000000e-01 : f32
    %44 = vector.broadcast %cst_17 : f32 to vector<128x1xf32>
    %45 = arith.mulf %44, %43 : vector<128x1xf32>
    %46 = vector.extract_strided_slice %4 {offsets = [1, 0], sizes = [1, 256], strides = [1, 1]} : vector<2x256xf32> to vector<1x256xf32>
    %cst_18 = arith.constant 0.000000e+00 : f32
    %47 = vector.broadcast %cst_18 : f32 to vector<1x256xf32>
    %48 = arith.subf %47, %46 : vector<1x256xf32>
    %49 = vector.extract_strided_slice %4 {offsets = [1, 0], sizes = [1, 256], strides = [1, 1]} : vector<2x256xf32> to vector<1x256xf32>
    %cst_19 = arith.constant -2.000000e-01 : f32
    %50 = vector.broadcast %cst_19 : f32 to vector<1x256xf32>
    %51 = arith.mulf %50, %49 : vector<1x256xf32>
    %52 = vector.broadcast %42 : vector<128x1xf32> to vector<128x256xf32>
    %53 = vector.broadcast %48 : vector<1x256xf32> to vector<128x256xf32>
    %54 = arith.addf %52, %53 : vector<128x256xf32>
    %55 = vector.broadcast %45 : vector<128x1xf32> to vector<128x256xf32>
    %56 = vector.broadcast %51 : vector<1x256xf32> to vector<128x256xf32>
    %57 = arith.addf %55, %56 : vector<128x256xf32>
    %58 = arith.minimumf %54, %57 : vector<128x256xf32>
    %cst_20 = arith.constant 8.000000e+01 : f32
    %59 = vector.broadcast %cst_20 : f32 to vector<128x256xf32>
    %60 = arith.minimumf %58, %59 : vector<128x256xf32>
    %61 = math.exp %60 : vector<128x256xf32>
    %62 = arith.mulf %61, %6 : vector<128x256xf32>
    %63 = arith.truncf %62 : vector<128x256xf32> to vector<128x256xbf16>
    %c0_21 = arith.constant 0 : index
    %c128 = arith.constant 128 : index
    %64 = vector.load %arg7[%c0_21, %c128] : memref<128x256xf32, #tpu.memory_space<vmem>>, vector<128x128xf32>
    %65 = vector.extract_strided_slice %10 {offsets = [0, 128], sizes = [256, 128], strides = [1, 1]} : vector<256x256xbf16> to vector<256x128xbf16>
    %cst_22 = arith.constant dense<0.000000e+00> : vector<128x128xf32>
    %66 = tpu.matmul %63, %65, %cst_22 {dimension_numbers = #tpu.dot_dimension_numbers<[1], [0], [0], [1], [0, 0, 1, 1], [], []>} : vector<128x256xbf16>, vector<256x128xbf16>, vector<128x128xf32> -> vector<128x128xf32>
    %67 = arith.addf %64, %66 : vector<128x128xf32>
    %c0_23 = arith.constant 0 : index
    %c128_24 = arith.constant 128 : index
    %68 = vector.load %arg7[%c0_23, %c128_24] : memref<128x256xf32, #tpu.memory_space<vmem>>, vector<128x128xf32>
    tpu.vector_store %arg7[%c0_23, %c128_24], %67 {strides = array<i32>} : memref<128x256xf32, #tpu.memory_space<vmem>>, vector<128x128xf32>,
    %c0_i32_25 = arith.constant 0 : i32
    %69 = arith.cmpi eq, %arg1, %c0_i32_25 : i32
    %70 = arith.extui %69 : i1 to i32
    %c0_i32_26 = arith.constant 0 : i32
    %71 = arith.cmpi ne, %70, %c0_i32_26 : i32
    scf.if %71 {
      %c0_27 = arith.constant 0 : index
      %c0_28 = arith.constant 0 : index
      %72 = vector.load %arg7[%c0_27, %c0_28] : memref<128x256xf32, #tpu.memory_space<vmem>>, vector<128x256xf32>
      %73 = vector.extract_strided_slice %72 {offsets = [0, 0], sizes = [128, 128], strides = [1, 1]} : vector<128x256xf32> to vector<128x128xf32>
      %74 = vector.extract_strided_slice %73 {offsets = [0, 16], sizes = [128, 1], strides = [1, 1]} : vector<128x128xf32> to vector<128x1xf32>
      %cst_29 = arith.constant 1.000000e-30 : f32
      %75 = vector.broadcast %cst_29 : f32 to vector<128x1xf32>
      %76 = arith.maximumf %74, %75 : vector<128x1xf32>
      %77 = tpu.reciprocal %76 {approx = true} : vector<128x1xf32> -> vector<128x1xf32>
      %78 = vector.broadcast %77 : vector<128x1xf32> to vector<128x128xf32>
      %79 = arith.mulf %73, %78 : vector<128x128xf32>
      %80 = vector.extract_strided_slice %72 {offsets = [0, 128], sizes = [128, 128], strides = [1, 1]} : vector<128x256xf32> to vector<128x128xf32>
      %81 = vector.extract_strided_slice %80 {offsets = [0, 16], sizes = [128, 1], strides = [1, 1]} : vector<128x128xf32> to vector<128x1xf32>
      %cst_30 = arith.constant 1.000000e-30 : f32
      %82 = vector.broadcast %cst_30 : f32 to vector<128x1xf32>
      %83 = arith.maximumf %81, %82 : vector<128x1xf32>
      %84 = tpu.reciprocal %83 {approx = true} : vector<128x1xf32> -> vector<128x1xf32>
      %85 = vector.broadcast %84 : vector<128x1xf32> to vector<128x128xf32>
      %86 = arith.mulf %80, %85 : vector<128x128xf32>
      %87 = tpu.concatenate %79, %86 in 1 : vector<128x128xf32>, vector<128x128xf32> -> vector<128x256xf32>
      %cst_31 = arith.constant 0.000000e+00 : f32
      %88 = vector.broadcast %cst_31 : f32 to vector<128x256xf32>
      %89 = arith.cmpf ogt, %87, %88 : vector<128x256xf32>
      %90 = math.exp %87 : vector<128x256xf32>
      %cst_32 = arith.constant 1.000000e+00 : f32
      %91 = vector.broadcast %cst_32 : f32 to vector<128x256xf32>
      %92 = arith.subf %90, %91 : vector<128x256xf32>
      %93 = arith.select %89, %87, %92 : vector<128x256xi1>, vector<128x256xf32>
      %94 = arith.truncf %93 : vector<128x256xf32> to vector<128x256xbf16>
      %c0_33 = arith.constant 0 : index
      %c0_34 = arith.constant 0 : index
      %95 = vector.load %arg6[%c0_33, %c0_34] : memref<128x256xbf16, #tpu.memory_space<vmem>>, vector<128x256xbf16>
      tpu.vector_store %arg6[%c0_33, %c0_34], %94 {strides = array<i32>} : memref<128x256xbf16, #tpu.memory_space<vmem>>, vector<128x256xbf16>,
    } else {
    }
    return
  }
  func.func @transform_0(%arg0: i32, %arg1: i32) -> (i32, i32) {
    %c0_i32 = arith.constant 0 : i32
    %c0_i32_0 = arith.constant 0 : i32
    return %arg0, %c0_i32 : i32, i32
  }
  func.func @transform_1(%arg0: i32, %arg1: i32) -> (i32, i32) {
    %c0_i32 = arith.constant 0 : i32
    %c0_i32_0 = arith.constant 0 : i32
    return %c0_i32, %arg1 : i32, i32
  }
  func.func @transform_2(%arg0: i32, %arg1: i32) -> (i32, i32) {
    %c0_i32 = arith.constant 0 : i32
    %c0_i32_0 = arith.constant 0 : i32
    %c0_i32_1 = arith.constant 0 : i32
    return %c0_i32, %c0_i32_0 : i32, i32
  }
  func.func @transform_3(%arg0: i32, %arg1: i32) -> (i32, i32) {
    %c0_i32 = arith.constant 0 : i32
    return %arg0, %arg1 : i32, i32
  }
  func.func @transform_4(%arg0: i32, %arg1: i32) -> (i32, i32) {
    %c0_i32 = arith.constant 0 : i32
    %c0_i32_0 = arith.constant 0 : i32
    return %arg0, %c0_i32 : i32, i32
  }
}

module attributes {stable_mosaic.version = 11 : i64} {
  func.func @_proj_kernel(%arg0: i32, %arg1: memref<256x256xbf16, #tpu.memory_space<vmem>>, %arg2: memref<256x256xbf16, #tpu.memory_space<vmem>>, %arg3: memref<256x128xbf16, #tpu.memory_space<vmem>>, %arg4: memref<256x128xf32, #tpu.memory_space<vmem>>) attributes {dimension_semantics = [#tpu.dimension_semantics<parallel>], iteration_bounds = array<i64: 1>, scalar_prefetch = 0 : i64, scratch_operands = 0 : i64, tpu.core_type = #tpu.core_type<tc>, window_params = [{transform_indices = @transform_0, window_bounds = array<i64: 256, 256>}, {pipeline_mode = #tpu.pipeline_mode<synchronous>, transform_indices = @transform_1, window_bounds = array<i64: 256, 256>}, {transform_indices = @transform_2, window_bounds = array<i64: 256, 128>}, {transform_indices = @transform_3, window_bounds = array<i64: 256, 128>}]} {
    %c0 = arith.constant 0 : index
    %c0_0 = arith.constant 0 : index
    %0 = vector.load %arg1[%c0, %c0_0] : memref<256x256xbf16, #tpu.memory_space<vmem>>, vector<256x256xbf16>
    %c0_1 = arith.constant 0 : index
    %c0_2 = arith.constant 0 : index
    %1 = vector.load %arg2[%c0_1, %c0_2] : memref<256x256xbf16, #tpu.memory_space<vmem>>, vector<256x256xbf16>
    %cst = arith.constant dense<0.000000e+00> : vector<256x256xf32>
    %2 = tpu.matmul %0, %1, %cst {dimension_numbers = #tpu.dot_dimension_numbers<[1], [0], [0], [1], [0, 0, 1, 1], [], []>} : vector<256x256xbf16>, vector<256x256xbf16>, vector<256x256xf32> -> vector<256x256xf32>
    %3 = vector.extract_strided_slice %2 {offsets = [0, 0], sizes = [256, 128], strides = [1, 1]} : vector<256x256xf32> to vector<256x128xf32>
    %4 = tpu.iota {dimensions = array<i32: 1>} : vector<256x128xi32>
    %c128_i32 = arith.constant 128 : i32
    %c0_i32 = arith.constant 0 : i32
    %5 = arith.cmpi eq, %c128_i32, %c0_i32 : i32
    %c1_i32 = arith.constant 1 : i32
    %6 = arith.select %5, %c1_i32, %c128_i32 : i32
    %7 = vector.broadcast %6 : i32 to vector<256x128xi32>
    %8 = arith.remsi %4, %7 : vector<256x128xi32>
    %c0_i32_3 = arith.constant 0 : i32
    %9 = vector.broadcast %c0_i32_3 : i32 to vector<256x128xi32>
    %10 = arith.cmpi ne, %8, %9 : vector<256x128xi32>
    %c0_i32_4 = arith.constant 0 : i32
    %11 = vector.broadcast %c0_i32_4 : i32 to vector<256x128xi32>
    %12 = arith.cmpi slt, %8, %11 : vector<256x128xi32>
    %c0_i32_5 = arith.constant 0 : i32
    %13 = arith.cmpi slt, %6, %c0_i32_5 : i32
    %14 = vector.broadcast %13 : i1 to vector<256x128xi1>
    %15 = vector.broadcast %14 : vector<256x128xi1> to vector<256x128xi1>
    %16 = arith.xori %12, %15 : vector<256x128xi1>
    %17 = arith.andi %16, %10 : vector<256x128xi1>
    %18 = vector.broadcast %6 : i32 to vector<256x128xi32>
    %19 = arith.addi %8, %18 : vector<256x128xi32>
    %20 = arith.select %17, %19, %8 : vector<256x128xi1>, vector<256x128xi32>
    %c8_i32 = arith.constant 8 : i32
    %21 = vector.broadcast %c8_i32 : i32 to vector<256x128xi32>
    %22 = arith.cmpi eq, %20, %21 : vector<256x128xi32>
    %cst_6 = arith.constant 1.000000e+00 : f32
    %23 = vector.broadcast %cst_6 : f32 to vector<256x128xf32>
    %24 = arith.select %22, %23, %3 : vector<256x128xi1>, vector<256x128xf32>
    %25 = arith.truncf %24 : vector<256x128xf32> to vector<256x128xbf16>
    %c0_7 = arith.constant 0 : index
    %c0_8 = arith.constant 0 : index
    %26 = vector.load %arg3[%c0_7, %c0_8] : memref<256x128xbf16, #tpu.memory_space<vmem>>, vector<256x128xbf16>
    tpu.vector_store %arg3[%c0_7, %c0_8], %25 {strides = array<i32>} : memref<256x128xbf16, #tpu.memory_space<vmem>>, vector<256x128xbf16>,
    %27 = vector.extract_strided_slice %2 {offsets = [0, 128], sizes = [256, 128], strides = [1, 1]} : vector<256x256xf32> to vector<256x128xf32>
    %c0_9 = arith.constant 0 : index
    %c0_10 = arith.constant 0 : index
    %28 = vector.load %arg4[%c0_9, %c0_10] : memref<256x128xf32, #tpu.memory_space<vmem>>, vector<256x128xf32>
    tpu.vector_store %arg4[%c0_9, %c0_10], %27 {strides = array<i32>} : memref<256x128xf32, #tpu.memory_space<vmem>>, vector<256x128xf32>,
    return
  }
  func.func @transform_0(%arg0: i32) -> (i32, i32) {
    %c0_i32 = arith.constant 0 : i32
    %c0_i32_0 = arith.constant 0 : i32
    return %arg0, %c0_i32 : i32, i32
  }
  func.func @transform_1(%arg0: i32) -> (i32, i32) {
    %c0_i32 = arith.constant 0 : i32
    %c0_i32_0 = arith.constant 0 : i32
    %c0_i32_1 = arith.constant 0 : i32
    return %c0_i32, %c0_i32_0 : i32, i32
  }
  func.func @transform_2(%arg0: i32) -> (i32, i32) {
    %c0_i32 = arith.constant 0 : i32
    %c0_i32_0 = arith.constant 0 : i32
    return %arg0, %c0_i32 : i32, i32
  }
  func.func @transform_3(%arg0: i32) -> (i32, i32) {
    %c0_i32 = arith.constant 0 : i32
    %c0_i32_0 = arith.constant 0 : i32
    return %arg0, %c0_i32 : i32, i32
  }
}

module attributes {stable_mosaic.version = 11 : i64} {
  func.func @_attn_kernel(%arg0: i32, %arg1: i32, %arg2: memref<128x128xf32, #tpu.memory_space<vmem>>, %arg3: memref<1x256xf32, #tpu.memory_space<vmem>>, %arg4: memref<256x128xbf16, #tpu.memory_space<vmem>>, %arg5: memref<128x256xi8, #tpu.memory_space<vmem>>, %arg6: memref<128x128xf32, #tpu.memory_space<vmem>>, %arg7: memref<128x256xbf16, #tpu.memory_space<vmem>>, %arg8: memref<128x128xf32, #tpu.memory_space<vmem>>) attributes {dimension_semantics = [#tpu.dimension_semantics<parallel>, #tpu.dimension_semantics<arbitrary>], iteration_bounds = array<i64: 2, 1>, scalar_prefetch = 0 : i64, scratch_operands = 1 : i64, tpu.core_type = #tpu.core_type<tc>, window_params = [{transform_indices = @transform_0, window_bounds = array<i64: 128, 128>}, {transform_indices = @transform_1, window_bounds = array<i64: 1, 256>}, {pipeline_mode = #tpu.pipeline_mode<synchronous>, transform_indices = @transform_2, window_bounds = array<i64: 256, 128>}, {transform_indices = @transform_3, window_bounds = array<i64: 128, 256>}, {transform_indices = @transform_4, window_bounds = array<i64: 128, 128>}, {transform_indices = @transform_5, window_bounds = array<i64: 128, 256>}]} {
    %c0_i32 = arith.constant 0 : i32
    %0 = arith.cmpi eq, %arg1, %c0_i32 : i32
    %1 = arith.extui %0 : i1 to i32
    %c0_i32_0 = arith.constant 0 : i32
    %2 = arith.cmpi ne, %1, %c0_i32_0 : i32
    scf.if %2 {
      %cst_20 = arith.constant 0.000000e+00 : f32
      %41 = vector.broadcast %cst_20 : f32 to vector<128x128xf32>
      %c0_21 = arith.constant 0 : index
      %c0_22 = arith.constant 0 : index
      %42 = vector.load %arg8[%c0_21, %c0_22] : memref<128x128xf32, #tpu.memory_space<vmem>>, vector<128x128xf32>
      tpu.vector_store %arg8[%c0_21, %c0_22], %41 {strides = array<i32>} : memref<128x128xf32, #tpu.memory_space<vmem>>, vector<128x128xf32>,
    } else {
    }
    %c0 = arith.constant 0 : index
    %c0_1 = arith.constant 0 : index
    %3 = vector.load %arg2[%c0, %c0_1] : memref<128x128xf32, #tpu.memory_space<vmem>>, vector<128x128xf32>
    %c0_2 = arith.constant 0 : index
    %c0_3 = arith.constant 0 : index
    %4 = vector.load %arg3[%c0_2, %c0_3] : memref<1x256xf32, #tpu.memory_space<vmem>>, vector<1x256xf32>
    %c0_4 = arith.constant 0 : index
    %c0_5 = arith.constant 0 : index
    %5 = vector.load %arg5[%c0_4, %c0_5] : memref<128x256xi8, #tpu.memory_space<vmem>>, vector<128x256xi8>
    %6 = arith.sitofp %5 : vector<128x256xi8> to vector<128x256xf32>
    %c256_i32 = arith.constant 256 : i32
    %7 = arith.muli %arg1, %c256_i32 : i32
    %8 = tpu.assume_multiple %7, 256 : i32
    %9 = arith.index_cast %8 : i32 to index
    %c0_6 = arith.constant 0 : index
    %10 = vector.load %arg4[%9, %c0_6] : memref<256x128xbf16, #tpu.memory_space<vmem>>, vector<256x128xbf16>
    %11 = vector.extract_strided_slice %3 {offsets = [0, 0], sizes = [128, 1], strides = [1, 1]} : vector<128x128xf32> to vector<128x1xf32>
    %cst = arith.constant 0.000000e+00 : f32
    %12 = vector.broadcast %cst : f32 to vector<128x1xf32>
    %13 = arith.subf %12, %11 : vector<128x1xf32>
    %14 = vector.extract_strided_slice %3 {offsets = [0, 0], sizes = [128, 1], strides = [1, 1]} : vector<128x128xf32> to vector<128x1xf32>
    %cst_7 = arith.constant -2.000000e-01 : f32
    %15 = vector.broadcast %cst_7 : f32 to vector<128x1xf32>
    %16 = arith.mulf %15, %14 : vector<128x1xf32>
    %cst_8 = arith.constant 0.000000e+00 : f32
    %17 = vector.broadcast %cst_8 : f32 to vector<1x256xf32>
    %18 = arith.subf %17, %4 : vector<1x256xf32>
    %cst_9 = arith.constant -2.000000e-01 : f32
    %19 = vector.broadcast %cst_9 : f32 to vector<1x256xf32>
    %20 = arith.mulf %19, %4 : vector<1x256xf32>
    %21 = vector.broadcast %13 : vector<128x1xf32> to vector<128x256xf32>
    %22 = vector.broadcast %18 : vector<1x256xf32> to vector<128x256xf32>
    %23 = arith.addf %21, %22 : vector<128x256xf32>
    %24 = vector.broadcast %16 : vector<128x1xf32> to vector<128x256xf32>
    %25 = vector.broadcast %20 : vector<1x256xf32> to vector<128x256xf32>
    %26 = arith.addf %24, %25 : vector<128x256xf32>
    %27 = arith.minimumf %23, %26 : vector<128x256xf32>
    %cst_10 = arith.constant 8.000000e+01 : f32
    %28 = vector.broadcast %cst_10 : f32 to vector<128x256xf32>
    %29 = arith.minimumf %27, %28 : vector<128x256xf32>
    %30 = math.exp %29 : vector<128x256xf32>
    %31 = arith.mulf %30, %6 : vector<128x256xf32>
    %32 = arith.truncf %31 : vector<128x256xf32> to vector<128x256xbf16>
    %c0_11 = arith.constant 0 : index
    %c0_12 = arith.constant 0 : index
    %33 = vector.load %arg8[%c0_11, %c0_12] : memref<128x128xf32, #tpu.memory_space<vmem>>, vector<128x128xf32>
    %cst_13 = arith.constant dense<0.000000e+00> : vector<128x128xf32>
    %34 = tpu.matmul %32, %10, %cst_13 {dimension_numbers = #tpu.dot_dimension_numbers<[1], [0], [0], [1], [0, 0, 1, 1], [], []>} : vector<128x256xbf16>, vector<256x128xbf16>, vector<128x128xf32> -> vector<128x128xf32>
    %35 = arith.addf %33, %34 : vector<128x128xf32>
    %c0_14 = arith.constant 0 : index
    %c0_15 = arith.constant 0 : index
    %36 = vector.load %arg8[%c0_14, %c0_15] : memref<128x128xf32, #tpu.memory_space<vmem>>, vector<128x128xf32>
    tpu.vector_store %arg8[%c0_14, %c0_15], %35 {strides = array<i32>} : memref<128x128xf32, #tpu.memory_space<vmem>>, vector<128x128xf32>,
    %c0_16 = arith.constant 0 : index
    %c0_17 = arith.constant 0 : index
    %37 = vector.load %arg7[%c0_16, %c0_17] : memref<128x256xbf16, #tpu.memory_space<vmem>>, vector<128x256xbf16>
    tpu.vector_store %arg7[%c0_16, %c0_17], %32 {strides = array<i32>} : memref<128x256xbf16, #tpu.memory_space<vmem>>, vector<128x256xbf16>,
    %c0_i32_18 = arith.constant 0 : i32
    %38 = arith.cmpi eq, %arg1, %c0_i32_18 : i32
    %39 = arith.extui %38 : i1 to i32
    %c0_i32_19 = arith.constant 0 : i32
    %40 = arith.cmpi ne, %39, %c0_i32_19 : i32
    scf.if %40 {
      %c0_20 = arith.constant 0 : index
      %c0_21 = arith.constant 0 : index
      %41 = vector.load %arg8[%c0_20, %c0_21] : memref<128x128xf32, #tpu.memory_space<vmem>>, vector<128x128xf32>
      %42 = vector.extract_strided_slice %41 {offsets = [0, 8], sizes = [128, 1], strides = [1, 1]} : vector<128x128xf32> to vector<128x1xf32>
      %cst_22 = arith.constant 1.000000e-30 : f32
      %43 = vector.broadcast %cst_22 : f32 to vector<128x1xf32>
      %44 = arith.maximumf %42, %43 : vector<128x1xf32>
      %45 = tpu.reciprocal %44 {approx = true} : vector<128x1xf32> -> vector<128x1xf32>
      %46 = vector.broadcast %45 : vector<128x1xf32> to vector<128x128xf32>
      %47 = arith.mulf %41, %46 : vector<128x128xf32>
      %cst_23 = arith.constant 0.000000e+00 : f32
      %48 = vector.broadcast %cst_23 : f32 to vector<128x128xf32>
      %49 = arith.cmpf ogt, %47, %48 : vector<128x128xf32>
      %50 = math.exp %47 : vector<128x128xf32>
      %cst_24 = arith.constant 1.000000e+00 : f32
      %51 = vector.broadcast %cst_24 : f32 to vector<128x128xf32>
      %52 = arith.subf %50, %51 : vector<128x128xf32>
      %53 = arith.select %49, %47, %52 : vector<128x128xi1>, vector<128x128xf32>
      %c0_25 = arith.constant 0 : index
      %c0_26 = arith.constant 0 : index
      %54 = vector.load %arg6[%c0_25, %c0_26] : memref<128x128xf32, #tpu.memory_space<vmem>>, vector<128x128xf32>
      tpu.vector_store %arg6[%c0_25, %c0_26], %53 {strides = array<i32>} : memref<128x128xf32, #tpu.memory_space<vmem>>, vector<128x128xf32>,
    } else {
    }
    return
  }
  func.func @transform_0(%arg0: i32, %arg1: i32) -> (i32, i32) {
    %c0_i32 = arith.constant 0 : i32
    %c0_i32_0 = arith.constant 0 : i32
    return %arg0, %c0_i32 : i32, i32
  }
  func.func @transform_1(%arg0: i32, %arg1: i32) -> (i32, i32) {
    %c0_i32 = arith.constant 0 : i32
    %c0_i32_0 = arith.constant 0 : i32
    return %c0_i32, %arg1 : i32, i32
  }
  func.func @transform_2(%arg0: i32, %arg1: i32) -> (i32, i32) {
    %c0_i32 = arith.constant 0 : i32
    %c0_i32_0 = arith.constant 0 : i32
    %c0_i32_1 = arith.constant 0 : i32
    return %c0_i32, %c0_i32_0 : i32, i32
  }
  func.func @transform_3(%arg0: i32, %arg1: i32) -> (i32, i32) {
    %c0_i32 = arith.constant 0 : i32
    return %arg0, %arg1 : i32, i32
  }
  func.func @transform_4(%arg0: i32, %arg1: i32) -> (i32, i32) {
    %c0_i32 = arith.constant 0 : i32
    %c0_i32_0 = arith.constant 0 : i32
    return %arg0, %c0_i32 : i32, i32
  }
  func.func @transform_5(%arg0: i32, %arg1: i32) -> (i32, i32) {
    %c0_i32 = arith.constant 0 : i32
    return %arg0, %arg1 : i32, i32
  }
}

</mosaic_0001>

<bundles_post_ra>
// kernel: _lambda_.4
= control target key start
LH: loop header
LB: loop body
LE: loop exit
PB: predicated region body
PF: predicated region fallthrough
CT: control target
= control target key end

     0   :  { %v1127_v1 = vmov 0   ;;  %vm166_vm0 = vcmask 261120   ;;  %v569_v23 = vlaneseq  ;;  %s1590_s1 = inlined_call_operand.vmem [shape: bf16[32,384], index: 1, kind: input, shape index: {}]   ;;  %s1591_s0 = inlined_call_operand.vmem [shape: bf16[256,32], index: 0, kind: input, shape index: {}]   ;;  %s1592_s2 = inlined_call_operand.vmem [shape: bf16[256,256], index: 2, kind: output, shape index: {0}]   ;;  %s1593_s3 = inlined_call_operand.vmem [shape: f32[256,128], index: 3, kind: output, shape index: {1}]  }
   0x1   :  { %v1103_v0 = vld [vmem:[%s1590_s1 + $0x1c] ss:$12 sps:$4 sm:$0xff]   ;;  %247 = vmatprep.mubr.bf16.mxu0 %v1127_v1  ;;  %367 = vmatprep.mubr.bf16.mxu1 %v1127_v1  ;;  %v1105_v2 = vld [vmem:[%s1590_s1 + $0x18] ss:$12 sps:$4 sm:$0xff]   ;;  %v1108_v4 = vld [vmem:[%s1590_s1] ss:$12 sps:$4 sm:$0xff]  }
   0x2   :  { %227 = vmatprep.subr.bf16.mxu0 %v1103_v0  ;;  %1098 = vmatprep.subr.bf16.mxu1 %v1103_v0  ;;  %v1106_v3 = vld [vmem:[%s1590_s1 + $0x4] ss:$12 sps:$4 sm:$0xff]   ;;  %v1111_v6 = vld [vmem:[%s1590_s1 + $0x20] ss:$12 sps:$4 sm:$0xff]   ;;  %v1116_v8 = vld [vmem:[%s1590_s1 + $0x8] ss:$12 sps:$4 sm:$0xff]  }
   0x3   :  { %228 = vmatpush1.bf16.msra.mxu0 %v1105_v2  ;;  %1100 = vmatpush1.bf16.msra.mxu1 %v1105_v2  ;;  %v1109_v5 = vld [vmem:[%s1591_s0] sm:$0xff]   ;;  %v1112_v9 = vld [vmem:[%s1591_s0 + $0x8] sm:$0xff]   ;;  %v1114_v11 = vld [vmem:[%s1591_s0 + $0x10] sm:$0xff]   ;;  %v1262_v24 = vand.u32 127, %v569_v23 }
   0x4   :  { %229 = vmatprep.subr.bf16.mxu0 %v1106_v3  ;;  %1099 = vmatprep.subr.bf16.mxu1 %v1106_v3  ;;  %v1110_v7 = vld [vmem:[%s1591_s0 + $0x60] sm:$0xff]   ;;  %v1113_v10 = vld [vmem:[%s1591_s0 + $0x68] sm:$0xff]   ;;  %v1115_v12 = vld [vmem:[%s1591_s0 + $0x70] sm:$0xff]  }
   0x5   :  { %v1117_v13 = vld [vmem:[%s1591_s0 + $0x18] sm:$0xff]   ;;  %v1119_v15 = vld [vmem:[%s1591_s0 + $0x20] sm:$0xff]   ;;  %v1120_v16 = vld [vmem:[%s1591_s0 + $0x28] sm:$0xff]   ;;  %v571_v25 = vadd.s32 128, %v1262_v24  ;;  %vm596_vm1 = vcmp.eq.s32.totalorder %v1262_v24, 16 }
   0x6   :  { %v1118_v14 = vld [vmem:[%s1591_s0 + $0x78] sm:$0xff]   ;;  %v1121_v17 = vld [vmem:[%s1591_s0 + $0x30] sm:$0xff]   ;;  %v1123_v19 = vld [vmem:[%s1591_s0 + $0x40] sm:$0xff]  }
   0x7   :  { %230 = vmatpush1.bf16.msra.mxu0 %v1108_v4  ;;  %1101 = vmatpush1.bf16.msra.mxu1 %v1108_v4  ;;  %v1122_v18 = vld [vmem:[%s1591_s0 + $0x38] sm:$0xff]   ;;  %v1124_v20 = vld [vmem:[%s1591_s0 + $0x48] sm:$0xff]   ;;  %v1125_v21 = vld [vmem:[%s1591_s0 + $0x50] sm:$0xff]   ;;  %v583_v26 = vand.u32 127, %v571_v25 }
   0x8   :  { %1062 = vmatprep.subr.bf16.mxu1 %v1111_v6  ;;  %v1126_v22 = vld [vmem:[%s1591_s0 + $0x58] sm:$0xff]  }
   0x9   :  { %vm1266_vm2 = vcmp.eq.s32.totalorder %v583_v26, 16 }
   0xa   :  { %948 = vmatmul.mubr.msk.bf16.vlgmr.msra.gmra.mxu0 %vm166_vm0, %v1109_v5  ;;  %960 = vmatmul.mubr.msk.bf16.vlgmr.msra.gmra.mxu1 %vm166_vm0, %v1110_v7 }
   0xb   :  { %1063 = vmatpush3.bf16.msra.mxu1 %v1111_v6  ;;  %257 = vmatprep.mubr.bf16.mxu0 %v1127_v1 }
   0xc   :  { %377 = vmatprep.mubr.bf16.mxu1 %v1127_v1  ;;  %1064 = vmatprep.subr.bf16.mxu1 %v1116_v8 }
   0xf   :  { %1065 = vmatpush3.bf16.msra.mxu1 %v1116_v8 }
  0x12   :  { %949 = vmatmul.mubr.msk.bf16.gmra.mxu0 %vm166_vm0, %v1112_v9  ;;  %961 = vmatmul.mubr.msk.bf16.gmra.mxu1 %vm166_vm0, %v1113_v10 }
  0x13   :  { %267 = vmatprep.mubr.bf16.mxu0 %v1127_v1  ;;  %387 = vmatprep.mubr.bf16.mxu1 %v1127_v1 }
  0x1a   :  { %950 = vmatmul.mubr.msk.bf16.gmra.mxu0 %vm166_vm0, %v1114_v11  ;;  %962 = vmatmul.mubr.msk.bf16.gmra.mxu1 %vm166_vm0, %v1115_v12 }
  0x1b   :  { %277 = vmatprep.mubr.bf16.mxu0 %v1127_v1  ;;  %397 = vmatprep.mubr.bf16.mxu1 %v1127_v1 }
  0x22   :  { %951 = vmatmul.mubr.msk.bf16.gmra.mxu0 %vm166_vm0, %v1117_v13  ;;  %963 = vmatmul.mubr.msk.bf16.gmra.mxu1 %vm166_vm0, %v1118_v14 }
  0x23   :  { %287 = vmatprep.mubr.bf16.mxu0 %v1127_v1  ;;  %1066 = vmatprep.mubr.msk.bf16.mxu1 %vm166_vm0, %v1109_v5 }
  0x2a   :  { %952 = vmatmul.mubr.msk.bf16.gmra.mxu0 %vm166_vm0, %v1119_v15  ;;  %1067 = vmatmul.mubr.msk.bf16.vlgmr.msra.gmra.mxu1 %vm166_vm0, %v1112_v9 }
  0x2b   :  { %297 = vmatprep.mubr.bf16.mxu0 %v1127_v1  ;;  %1070 = vmatprep.mubr.msk.bf16.mxu1 %vm166_vm0, %v1114_v11 }
  0x32   :  { %953 = vmatmul.mubr.msk.bf16.gmra.mxu0 %vm166_vm0, %v1120_v16  ;;  %1071 = vmatmul.mubr.msk.bf16.gmra.mxu1 %vm166_vm0, %v1117_v13 }
  0x33   :  { %307 = vmatprep.mubr.bf16.mxu0 %v1127_v1  ;;  %1074 = vmatprep.mubr.msk.bf16.mxu1 %vm166_vm0, %v1119_v15 }
  0x3a   :  { %954 = vmatmul.mubr.msk.bf16.gmra.mxu0 %vm166_vm0, %v1121_v17  ;;  %1075 = vmatmul.mubr.msk.bf16.gmra.mxu1 %vm166_vm0, %v1120_v16 }
  0x3b   :  { %317 = vmatprep.mubr.bf16.mxu0 %v1127_v1  ;;  %1078 = vmatprep.mubr.msk.bf16.mxu1 %vm166_vm0, %v1121_v17 }
  0x42   :  { %955 = vmatmul.mubr.msk.bf16.gmra.mxu0 %vm166_vm0, %v1122_v18  ;;  %1079 = vmatmul.mubr.msk.bf16.gmra.mxu1 %vm166_vm0, %v1122_v18 }
  0x43   :  { %327 = vmatprep.mubr.bf16.mxu0 %v1127_v1  ;;  %1082 = vmatprep.mubr.msk.bf16.mxu1 %vm166_vm0, %v1123_v19 }
  0x4a   :  { %956 = vmatmul.mubr.msk.bf16.gmra.mxu0 %vm166_vm0, %v1123_v19  ;;  %1083 = vmatmul.mubr.msk.bf16.gmra.mxu1 %vm166_vm0, %v1124_v20 }
  0x4b   :  { %337 = vmatprep.mubr.bf16.mxu0 %v1127_v1  ;;  %1086 = vmatprep.mubr.msk.bf16.mxu1 %vm166_vm0, %v1125_v21 }
  0x52   :  { %957 = vmatmul.mubr.msk.bf16.gmra.mxu0 %vm166_vm0, %v1124_v20  ;;  %1087 = vmatmul.mubr.msk.bf16.gmra.mxu1 %vm166_vm0, %v1126_v22 }
  0x53   :  { %347 = vmatprep.mubr.bf16.mxu0 %v1127_v1  ;;  %1090 = vmatprep.mubr.msk.bf16.mxu1 %vm166_vm0, %v1110_v7 }
  0x5a   :  { %958 = vmatmul.mubr.msk.bf16.gmra.mxu0 %vm166_vm0, %v1125_v21  ;;  %1091 = vmatmul.mubr.msk.bf16.gmra.mxu1 %vm166_vm0, %v1113_v10 }
  0x5b   :  { %357 = vmatprep.mubr.bf16.mxu0 %v1127_v1  ;;  %1094 = vmatprep.mubr.msk.bf16.mxu1 %vm166_vm0, %v1115_v12 }
  0x62   :  { %959 = vmatmul.mubr.msk.bf16.gmra.mxu0 %vm166_vm0, %v1126_v22  ;;  %1095 = vmatmul.mubr.msk.bf16.gmra.mxu1 %vm166_vm0, %v1118_v14 }
  0xca   :  { %v249_v27 = vpop.f32.mrf.mxu0  ;;  %v369_v28 = vpop.f32.mrf.mxu1 }
  0xcb   :  { %v646_v30 = vsel %vm596_vm1, 1.0, %v369_v28  ;;  %v598_v33 = vsel %vm596_vm1, 1.0, %v249_v27 }
  0xcc   :  { %v251_v31 = vpop.f32.mrf.mxu0  ;;  %v371_v32 = vpop.f32.mrf.mxu1 }
  0xcd   :  { %v599_v34 = vsel %vm1266_vm2, 1.0, %v251_v31  ;;  %v647_v35 = vsel %vm1266_vm2, 1.0, %v371_v32 }
  0xce   :  { %v1012_v36 = vpack.c.bf16 %v599_v34, %v598_v33  ;;  %v1036_v37 = vpack.c.bf16 %v647_v35, %v646_v30  ;;  %v253_v38 = vpop.f32.mrf.mxu0  ;;  %v373_v39 = vpop.f32.mrf.mxu1 }
  0xcf   :  { %v600_v42 = vsel %vm596_vm1, 1.0, %v253_v38  ;;  %v648_v43 = vsel %vm596_vm1, 1.0, %v373_v39 }
  0xd0   :  { %854 = vst [vmem:[%s1592_s2] sm:$0xff] %v1012_v36  ;;  %878 = vst [vmem:[%s1592_s2 + $0xc0] sm:$0xff] %v1036_v37  ;;  %v255_v40 = vpop.f32.mrf.mxu0  ;;  %v375_v41 = vpop.f32.mrf.mxu1 }
  0xd1   :  { %v601_v44 = vsel %vm1266_vm2, 1.0, %v255_v40  ;;  %v649_v45 = vsel %vm1266_vm2, 1.0, %v375_v41 }
  0xd2   :  { %v1013_v46 = vpack.c.bf16 %v601_v44, %v600_v42  ;;  %v1037_v47 = vpack.c.bf16 %v649_v45, %v648_v43  ;;  %v259_v48 = vpop.f32.mrf.mxu0  ;;  %v379_v49 = vpop.f32.mrf.mxu1 }
  0xd3   :  { %v650_v50 = vsel %vm596_vm1, 1.0, %v379_v49  ;;  %v602_v53 = vsel %vm596_vm1, 1.0, %v259_v48 }
  0xd4   :  { %855 = vst [vmem:[%s1592_s2 + $0x8] sm:$0xff] %v1013_v46  ;;  %879 = vst [vmem:[%s1592_s2 + $0xc8] sm:$0xff] %v1037_v47  ;;  %v261_v51 = vpop.f32.mrf.mxu0  ;;  %v381_v52 = vpop.f32.mrf.mxu1 }
  0xd5   :  { %v603_v54 = vsel %vm1266_vm2, 1.0, %v261_v51  ;;  %v651_v55 = vsel %vm1266_vm2, 1.0, %v381_v52 }
  0xd6   :  { %v1014_v56 = vpack.c.bf16 %v603_v54, %v602_v53  ;;  %v1038_v57 = vpack.c.bf16 %v651_v55, %v650_v50  ;;  %v263_v58 = vpop.f32.mrf.mxu0  ;;  %v383_v59 = vpop.f32.mrf.mxu1 }
  0xd7   :  { %v604_v62 = vsel %vm596_vm1, 1.0, %v263_v58  ;;  %v652_v63 = vsel %vm596_vm1, 1.0, %v383_v59 }
  0xd8   :  { %856 = vst [vmem:[%s1592_s2 + $0x10] sm:$0xff] %v1014_v56  ;;  %880 = vst [vmem:[%s1592_s2 + $0xd0] sm:$0xff] %v1038_v57  ;;  %v265_v60 = vpop.f32.mrf.mxu0  ;;  %v385_v61 = vpop.f32.mrf.mxu1 }
  0xd9   :  { %v605_v0 = vsel %vm1266_vm2, 1.0, %v265_v60  ;;  %v653_v1 = vsel %vm1266_vm2, 1.0, %v385_v61 }
  0xda   :  { %v1015_v2 = vpack.c.bf16 %v605_v0, %v604_v62  ;;  %v1039_v3 = vpack.c.bf16 %v653_v1, %v652_v63  ;;  %v269_v4 = vpop.f32.mrf.mxu0  ;;  %v389_v5 = vpop.f32.mrf.mxu1 }
  0xdb   :  { %v654_v6 = vsel %vm596_vm1, 1.0, %v389_v5  ;;  %v606_v9 = vsel %vm596_vm1, 1.0, %v269_v4 }
  0xdc   :  { %857 = vst [vmem:[%s1592_s2 + $0x18] sm:$0xff] %v1015_v2  ;;  %881 = vst [vmem:[%s1592_s2 + $0xd8] sm:$0xff] %v1039_v3  ;;  %v271_v7 = vpop.f32.mrf.mxu0  ;;  %v391_v8 = vpop.f32.mrf.mxu1 }
  0xdd   :  { %v607_v10 = vsel %vm1266_vm2, 1.0, %v271_v7  ;;  %v655_v11 = vsel %vm1266_vm2, 1.0, %v391_v8 }
  0xde   :  { %v1016_v12 = vpack.c.bf16 %v607_v10, %v606_v9  ;;  %v1040_v13 = vpack.c.bf16 %v655_v11, %v654_v6  ;;  %v273_v14 = vpop.f32.mrf.mxu0  ;;  %v393_v15 = vpop.f32.mrf.mxu1 }
  0xdf   :  { %v608_v18 = vsel %vm596_vm1, 1.0, %v273_v14  ;;  %v656_v19 = vsel %vm596_vm1, 1.0, %v393_v15 }
  0xe0   :  { %858 = vst [vmem:[%s1592_s2 + $0x20] sm:$0xff] %v1016_v12  ;;  %882 = vst [vmem:[%s1592_s2 + $0xe0] sm:$0xff] %v1040_v13  ;;  %v275_v16 = vpop.f32.mrf.mxu0  ;;  %v395_v17 = vpop.f32.mrf.mxu1 }
  0xe1   :  { %v609_v20 = vsel %vm1266_vm2, 1.0, %v275_v16  ;;  %v657_v21 = vsel %vm1266_vm2, 1.0, %v395_v17 }
  0xe2   :  { %v1017_v22 = vpack.c.bf16 %v609_v20, %v608_v18  ;;  %v1041_v23 = vpack.c.bf16 %v657_v21, %v656_v19  ;;  %v279_v25 = vpop.f32.mrf.mxu0  ;;  %v399_v26 = vpop.f32.mrf.mxu1 }
  0xe3   :  { %v658_v27 = vsel %vm596_vm1, 1.0, %v399_v26  ;;  %v610_v31 = vsel %vm596_vm1, 1.0, %v279_v25 }
  0xe4   :  { %859 = vst [vmem:[%s1592_s2 + $0x28] sm:$0xff] %v1017_v22  ;;  %883 = vst [vmem:[%s1592_s2 + $0xe8] sm:$0xff] %v1041_v23  ;;  %v281_v28 = vpop.f32.mrf.mxu0  ;;  %v401_v30 = vpop.f32.mrf.mxu1 }
  0xe5   :  { %v611_v32 = vsel %vm1266_vm2, 1.0, %v281_v28  ;;  %v659_v33 = vsel %vm1266_vm2, 1.0, %v401_v30 }
  0xe6   :  { %v1018_v34 = vpack.c.bf16 %v611_v32, %v610_v31  ;;  %v1042_v35 = vpack.c.bf16 %v659_v33, %v658_v27  ;;  %v283_v36 = vpop.f32.mrf.mxu0  ;;  %v403_v37 = vpop.f32.mrf.mxu1 }
  0xe7   :  { %v612_v40 = vsel %vm596_vm1, 1.0, %v283_v36  ;;  %v660_v41 = vsel %vm596_vm1, 1.0, %v403_v37 }
  0xe8   :  { %860 = vst [vmem:[%s1592_s2 + $0x30] sm:$0xff] %v1018_v34  ;;  %884 = vst [vmem:[%s1592_s2 + $0xf0] sm:$0xff] %v1042_v35  ;;  %v285_v38 = vpop.f32.mrf.mxu0  ;;  %v405_v39 = vpop.f32.mrf.mxu1 }
  0xe9   :  { %v613_v42 = vsel %vm1266_vm2, 1.0, %v285_v38  ;;  %v661_v43 = vsel %vm1266_vm2, 1.0, %v405_v39 }
  0xea   :  { %v1019_v44 = vpack.c.bf16 %v613_v42, %v612_v40  ;;  %v1043_v45 = vpack.c.bf16 %v661_v43, %v660_v41  ;;  %v289_v46 = vpop.f32.mrf.mxu0  ;;  %v1068_v47 = vpop.f32.mrf.mxu1 }
  0xeb   :  { %888 = vst [vmem:[%s1593_s3 + $0x10] sm:$0xff] %v1068_v47  ;;  %v614_v50 = vsel %vm596_vm1, 1.0, %v289_v46 }
  0xec   :  { %861 = vst [vmem:[%s1592_s2 + $0x38] sm:$0xff] %v1019_v44  ;;  %885 = vst [vmem:[%s1592_s2 + $0xf8] sm:$0xff] %v1043_v45  ;;  %v291_v48 = vpop.f32.mrf.mxu0  ;;  %v442_v49 = vpop.f32.mrf.mxu1 }
  0xed   :  { %v615_v51 = vsel %vm1266_vm2, 1.0, %v291_v48  ;;  %886 = vst [vmem:[%s1593_s3] sm:$0xff] %v442_v49 }
  0xee   :  { %v1020_v52 = vpack.c.bf16 %v615_v51, %v614_v50  ;;  %v293_v53 = vpop.f32.mrf.mxu0  ;;  %v1069_v54 = vpop.f32.mrf.mxu1 }
  0xef   :  { %889 = vst [vmem:[%s1593_s3 + $0x18] sm:$0xff] %v1069_v54  ;;  %v616_v57 = vsel %vm596_vm1, 1.0, %v293_v53 }
  0xf0   :  { %862 = vst [vmem:[%s1592_s2 + $0x40] sm:$0xff] %v1020_v52  ;;  %v295_v55 = vpop.f32.mrf.mxu0  ;;  %v445_v56 = vpop.f32.mrf.mxu1 }
  0xf1   :  { %v617_v58 = vsel %vm1266_vm2, 1.0, %v295_v55  ;;  %887 = vst [vmem:[%s1593_s3 + $0x8] sm:$0xff] %v445_v56 }
  0xf2   :  { %v1021_v59 = vpack.c.bf16 %v617_v58, %v616_v57  ;;  %v299_v60 = vpop.f32.mrf.mxu0  ;;  %v1072_v61 = vpop.f32.mrf.mxu1 }
  0xf3   :  { %892 = vst [vmem:[%s1593_s3 + $0x30] sm:$0xff] %v1072_v61  ;;  %v618_v0 = vsel %vm596_vm1, 1.0, %v299_v60 }
  0xf4   :  { %863 = vst [vmem:[%s1592_s2 + $0x48] sm:$0xff] %v1021_v59  ;;  %v301_v62 = vpop.f32.mrf.mxu0  ;;  %v458_v63 = vpop.f32.mrf.mxu1 }
  0xf5   :  { %v619_v1 = vsel %vm1266_vm2, 1.0, %v301_v62  ;;  %890 = vst [vmem:[%s1593_s3 + $0x20] sm:$0xff] %v458_v63 }
  0xf6   :  { %v1022_v2 = vpack.c.bf16 %v619_v1, %v618_v0  ;;  %v303_v3 = vpop.f32.mrf.mxu0  ;;  %v1073_v4 = vpop.f32.mrf.mxu1 }
  0xf7   :  { %893 = vst [vmem:[%s1593_s3 + $0x38] sm:$0xff] %v1073_v4  ;;  %v620_v7 = vsel %vm596_vm1, 1.0, %v303_v3 }
  0xf8   :  { %864 = vst [vmem:[%s1592_s2 + $0x50] sm:$0xff] %v1022_v2  ;;  %v305_v5 = vpop.f32.mrf.mxu0  ;;  %v461_v6 = vpop.f32.mrf.mxu1 }
  0xf9   :  { %v621_v8 = vsel %vm1266_vm2, 1.0, %v305_v5  ;;  %891 = vst [vmem:[%s1593_s3 + $0x28] sm:$0xff] %v461_v6 }
  0xfa   :  { %v1023_v9 = vpack.c.bf16 %v621_v8, %v620_v7  ;;  %v309_v10 = vpop.f32.mrf.mxu0  ;;  %v1076_v11 = vpop.f32.mrf.mxu1 }
  0xfb   :  { %896 = vst [vmem:[%s1593_s3 + $0x50] sm:$0xff] %v1076_v11  ;;  %v622_v14 = vsel %vm596_vm1, 1.0, %v309_v10 }
  0xfc   :  { %865 = vst [vmem:[%s1592_s2 + $0x58] sm:$0xff] %v1023_v9  ;;  %v311_v12 = vpop.f32.mrf.mxu0  ;;  %v474_v13 = vpop.f32.mrf.mxu1 }
  0xfd   :  { %v623_v15 = vsel %vm1266_vm2, 1.0, %v311_v12  ;;  %894 = vst [vmem:[%s1593_s3 + $0x40] sm:$0xff] %v474_v13 }
  0xfe   :  { %v1024_v16 = vpack.c.bf16 %v623_v15, %v622_v14  ;;  %v313_v17 = vpop.f32.mrf.mxu0  ;;  %v1077_v18 = vpop.f32.mrf.mxu1 }
  0xff   :  { %897 = vst [vmem:[%s1593_s3 + $0x58] sm:$0xff] %v1077_v18  ;;  %v624_v21 = vsel %vm596_vm1, 1.0, %v313_v17 }
 0x100   :  { %866 = vst [vmem:[%s1592_s2 + $0x60] sm:$0xff] %v1024_v16  ;;  %v315_v19 = vpop.f32.mrf.mxu0  ;;  %v477_v20 = vpop.f32.mrf.mxu1 }
 0x101   :  { %v625_v22 = vsel %vm1266_vm2, 1.0, %v315_v19  ;;  %895 = vst [vmem:[%s1593_s3 + $0x48] sm:$0xff] %v477_v20 }
 0x102   :  { %v1025_v23 = vpack.c.bf16 %v625_v22, %v624_v21  ;;  %v319_v25 = vpop.f32.mrf.mxu0  ;;  %v1080_v26 = vpop.f32.mrf.mxu1 }
 0x103   :  { %900 = vst [vmem:[%s1593_s3 + $0x70] sm:$0xff] %v1080_v26  ;;  %v626_v30 = vsel %vm596_vm1, 1.0, %v319_v25 }
 0x104   :  { %867 = vst [vmem:[%s1592_s2 + $0x68] sm:$0xff] %v1025_v23  ;;  %v321_v27 = vpop.f32.mrf.mxu0  ;;  %v490_v28 = vpop.f32.mrf.mxu1 }
 0x105   :  { %v627_v31 = vsel %vm1266_vm2, 1.0, %v321_v27  ;;  %898 = vst [vmem:[%s1593_s3 + $0x60] sm:$0xff] %v490_v28 }
 0x106   :  { %v1026_v32 = vpack.c.bf16 %v627_v31, %v626_v30  ;;  %v323_v33 = vpop.f32.mrf.mxu0  ;;  %v1081_v34 = vpop.f32.mrf.mxu1 }
 0x107   :  { %901 = vst [vmem:[%s1593_s3 + $0x78] sm:$0xff] %v1081_v34  ;;  %v628_v37 = vsel %vm596_vm1, 1.0, %v323_v33 }
 0x108   :  { %868 = vst [vmem:[%s1592_s2 + $0x70] sm:$0xff] %v1026_v32  ;;  %v325_v35 = vpop.f32.mrf.mxu0  ;;  %v493_v36 = vpop.f32.mrf.mxu1 }
 0x109   :  { %v629_v38 = vsel %vm1266_vm2, 1.0, %v325_v35  ;;  %899 = vst [vmem:[%s1593_s3 + $0x68] sm:$0xff] %v493_v36 }
 0x10a   :  { %v1027_v39 = vpack.c.bf16 %v629_v38, %v628_v37  ;;  %v329_v40 = vpop.f32.mrf.mxu0  ;;  %v1084_v41 = vpop.f32.mrf.mxu1 }
 0x10b   :  { %904 = vst [vmem:[%s1593_s3 + $0x90] sm:$0xff] %v1084_v41  ;;  %v630_v44 = vsel %vm596_vm1, 1.0, %v329_v40 }
 0x10c   :  { %869 = vst [vmem:[%s1592_s2 + $0x78] sm:$0xff] %v1027_v39  ;;  %v331_v42 = vpop.f32.mrf.mxu0  ;;  %v506_v43 = vpop.f32.mrf.mxu1 }
 0x10d   :  { %v631_v45 = vsel %vm1266_vm2, 1.0, %v331_v42  ;;  %902 = vst [vmem:[%s1593_s3 + $0x80] sm:$0xff] %v506_v43 }
 0x10e   :  { %v1028_v46 = vpack.c.bf16 %v631_v45, %v630_v44  ;;  %v333_v47 = vpop.f32.mrf.mxu0  ;;  %v1085_v48 = vpop.f32.mrf.mxu1 }
 0x10f   :  { %905 = vst [vmem:[%s1593_s3 + $0x98] sm:$0xff] %v1085_v48  ;;  %v632_v51 = vsel %vm596_vm1, 1.0, %v333_v47 }
 0x110   :  { %870 = vst [vmem:[%s1592_s2 + $0x80] sm:$0xff] %v1028_v46  ;;  %v335_v49 = vpop.f32.mrf.mxu0  ;;  %v509_v50 = vpop.f32.mrf.mxu1 }
 0x111   :  { %v633_v52 = vsel %vm1266_vm2, 1.0, %v335_v49  ;;  %903 = vst [vmem:[%s1593_s3 + $0x88] sm:$0xff] %v509_v50 }
 0x112   :  { %v1029_v53 = vpack.c.bf16 %v633_v52, %v632_v51  ;;  %v339_v54 = vpop.f32.mrf.mxu0  ;;  %v1088_v55 = vpop.f32.mrf.mxu1 }
 0x113   :  { %908 = vst [vmem:[%s1593_s3 + $0xb0] sm:$0xff] %v1088_v55  ;;  %v634_v58 = vsel %vm596_vm1, 1.0, %v339_v54 }
 0x114   :  { %871 = vst [vmem:[%s1592_s2 + $0x88] sm:$0xff] %v1029_v53  ;;  %v341_v56 = vpop.f32.mrf.mxu0  ;;  %v522_v57 = vpop.f32.mrf.mxu1 }
 0x115   :  { %v635_v59 = vsel %vm1266_vm2, 1.0, %v341_v56  ;;  %906 = vst [vmem:[%s1593_s3 + $0xa0] sm:$0xff] %v522_v57 }
 0x116   :  { %v1030_v60 = vpack.c.bf16 %v635_v59, %v634_v58  ;;  %v343_v61 = vpop.f32.mrf.mxu0  ;;  %v1089_v62 = vpop.f32.mrf.mxu1 }
 0x117   :  { %909 = vst [vmem:[%s1593_s3 + $0xb8] sm:$0xff] %v1089_v62  ;;  %v636_v1 = vsel %vm596_vm1, 1.0, %v343_v61 }
 0x118   :  { %872 = vst [vmem:[%s1592_s2 + $0x90] sm:$0xff] %v1030_v60  ;;  %v345_v63 = vpop.f32.mrf.mxu0  ;;  %v525_v0 = vpop.f32.mrf.mxu1 }
 0x119   :  { %v637_v2 = vsel %vm1266_vm2, 1.0, %v345_v63  ;;  %907 = vst [vmem:[%s1593_s3 + $0xa8] sm:$0xff] %v525_v0 }
 0x11a   :  { %v1031_v3 = vpack.c.bf16 %v637_v2, %v636_v1  ;;  %v349_v4 = vpop.f32.mrf.mxu0  ;;  %v1092_v5 = vpop.f32.mrf.mxu1 }
 0x11b   :  { %912 = vst [vmem:[%s1593_s3 + $0xd0] sm:$0xff] %v1092_v5  ;;  %v638_v8 = vsel %vm596_vm1, 1.0, %v349_v4 }
 0x11c   :  { %873 = vst [vmem:[%s1592_s2 + $0x98] sm:$0xff] %v1031_v3  ;;  %v351_v6 = vpop.f32.mrf.mxu0  ;;  %v538_v7 = vpop.f32.mrf.mxu1 }
 0x11d   :  { %v639_v9 = vsel %vm1266_vm2, 1.0, %v351_v6  ;;  %910 = vst [vmem:[%s1593_s3 + $0xc0] sm:$0xff] %v538_v7 }
 0x11e   :  { %v1032_v10 = vpack.c.bf16 %v639_v9, %v638_v8  ;;  %v353_v11 = vpop.f32.mrf.mxu0  ;;  %v1093_v12 = vpop.f32.mrf.mxu1 }
 0x11f   :  { %913 = vst [vmem:[%s1593_s3 + $0xd8] sm:$0xff] %v1093_v12  ;;  %v640_v15 = vsel %vm596_vm1, 1.0, %v353_v11 }
 0x120   :  { %874 = vst [vmem:[%s1592_s2 + $0xa0] sm:$0xff] %v1032_v10  ;;  %v355_v13 = vpop.f32.mrf.mxu0  ;;  %v541_v14 = vpop.f32.mrf.mxu1 }
 0x121   :  { %v641_v16 = vsel %vm1266_vm2, 1.0, %v355_v13  ;;  %911 = vst [vmem:[%s1593_s3 + $0xc8] sm:$0xff] %v541_v14 }
 0x122   :  { %v1033_v17 = vpack.c.bf16 %v641_v16, %v640_v15  ;;  %v359_v18 = vpop.f32.mrf.mxu0  ;;  %v1096_v19 = vpop.f32.mrf.mxu1 }
 0x123   :  { %916 = vst [vmem:[%s1593_s3 + $0xf0] sm:$0xff] %v1096_v19  ;;  %v642_v22 = vsel %vm596_vm1, 1.0, %v359_v18 }
 0x124   :  { %875 = vst [vmem:[%s1592_s2 + $0xa8] sm:$0xff] %v1033_v17  ;;  %v361_v20 = vpop.f32.mrf.mxu0  ;;  %v554_v21 = vpop.f32.mrf.mxu1 }
 0x125   :  { %v643_v23 = vsel %vm1266_vm2, 1.0, %v361_v20  ;;  %914 = vst [vmem:[%s1593_s3 + $0xe0] sm:$0xff] %v554_v21 }
 0x126   :  { %v1034_v25 = vpack.c.bf16 %v643_v23, %v642_v22  ;;  %v363_v26 = vpop.f32.mrf.mxu0  ;;  %v1097_v27 = vpop.f32.mrf.mxu1 }
 0x127   :  { %917 = vst [vmem:[%s1593_s3 + $0xf8] sm:$0xff] %v1097_v27  ;;  %v644_v31 = vsel %vm596_vm1, 1.0, %v363_v26 }
 0x128   :  { %876 = vst [vmem:[%s1592_s2 + $0xb0] sm:$0xff] %v1034_v25  ;;  %v365_v28 = vpop.f32.mrf.mxu0  ;;  %v557_v30 = vpop.f32.mrf.mxu1 }
 0x129   :  { %v645_v32 = vsel %vm1266_vm2, 1.0, %v365_v28  ;;  %915 = vst [vmem:[%s1593_s3 + $0xe8] sm:$0xff] %v557_v30 }
 0x12a   :  { %v1035_v33 = vpack.c.bf16 %v645_v32, %v644_v31 }
 0x12c   :  { %877 = vst [vmem:[%s1592_s2 + $0xb8] sm:$0xff] %v1035_v33 }

// kernel: _lambda_.6
= control target key start
LH: loop header
LB: loop body
LE: loop exit
PB: predicated region body
PF: predicated region fallthrough
CT: control target
= control target key end

     0   :  { %s1611_s1 = inlined_call_operand.vmem [shape: bf16[256,256], index: 1, kind: input, shape index: {}]   ;;  %s1612_s0 = inlined_call_operand.vmem [shape: bf16[256,256], index: 0, kind: input, shape index: {}]   ;;  %s1613_s3 = inlined_call_operand.vmem [shape: f32[256,128], index: 3, kind: output, shape index: {1}]   ;;  %s1614_s2 = inlined_call_operand.vmem [shape: bf16[256,128], index: 2, kind: output, shape index: {0}]  }
   0x1   :  { %v1092_v0 = vld [vmem:[%s1611_s1 + $0x74] ss:$8 sps:$4 sm:$0xff]   ;;  %v1094_v1 = vld [vmem:[%s1611_s1 + $0x70] ss:$8 sps:$4 sm:$0xff]   ;;  %v1095_v2 = vld [vmem:[%s1611_s1 + $0x64] ss:$8 sps:$4 sm:$0xff]  }
   0x2   :  { %397 = vmatprep.subr.bf16.mxu0 %v1092_v0  ;;  %1060 = vmatprep.subr.bf16.mxu1 %v1092_v0  ;;  %v1097_v3 = vld [vmem:[%s1611_s1 + $0x60] ss:$8 sps:$4 sm:$0xff]   ;;  %v1098_v4 = vld [vmem:[%s1611_s1 + $0x54] ss:$8 sps:$4 sm:$0xff]   ;;  %v1100_v5 = vld [vmem:[%s1611_s1 + $0x50] ss:$8 sps:$4 sm:$0xff]   ;;  %v590_v0 = vlaneseq }
   0x3   :  { %398 = vmatpush1.bf16.msra.mxu0 %v1094_v1  ;;  %1076 = vmatpush1.bf16.msra.mxu1 %v1094_v1  ;;  %v1101_v6 = vld [vmem:[%s1611_s1 + $0x44] ss:$8 sps:$4 sm:$0xff]   ;;  %v1103_v7 = vld [vmem:[%s1611_s1 + $0x40] ss:$8 sps:$4 sm:$0xff]   ;;  %v1104_v8 = vld [vmem:[%s1611_s1 + $0x34] ss:$8 sps:$4 sm:$0xff]  }
   0x4   :  { %399 = vmatprep.subr.bf16.mxu0 %v1095_v2  ;;  %1061 = vmatprep.subr.bf16.mxu1 %v1095_v2  ;;  %v1106_v9 = vld [vmem:[%s1611_s1 + $0x30] ss:$8 sps:$4 sm:$0xff]   ;;  %v1107_v10 = vld [vmem:[%s1611_s1 + $0x24] ss:$8 sps:$4 sm:$0xff]   ;;  %v1109_v11 = vld [vmem:[%s1611_s1 + $0x20] ss:$8 sps:$4 sm:$0xff]  }
   0x5   :  { %v1110_v12 = vld [vmem:[%s1611_s1 + $0x14] ss:$8 sps:$4 sm:$0xff]   ;;  %v1142_v13 = vld [vmem:[%s1612_s0 + $0x4] ss:$8 sps:$4 sm:$0xff]   ;;  %v1112_v14 = vld [vmem:[%s1611_s1 + $0x10] ss:$8 sps:$4 sm:$0xff]  }
   0x6   :  { %v1145_v15 = vld [vmem:[%s1612_s0 + $0x84] ss:$8 sps:$4 sm:$0xff]   ;;  %429 = vmatprep.mubr.bf16.mxu0 %v1142_v13  ;;  %v1115_v17 = vld [vmem:[%s1611_s1] ss:$8 sps:$4 sm:$0xff]   ;;  %v1116_v18 = vld [vmem:[%s1611_s1 + $0xf4] ss:$8 sps:$4 sm:$0xff]  }
   0x7   :  { %400 = vmatpush1.bf16.msra.mxu0 %v1097_v3  ;;  %1077 = vmatpush1.bf16.msra.mxu1 %v1097_v3  ;;  %v1113_v16 = vld [vmem:[%s1611_s1 + $0x4] ss:$8 sps:$4 sm:$0xff]   ;;  %v1118_v19 = vld [vmem:[%s1611_s1 + $0xf0] ss:$8 sps:$4 sm:$0xff]   ;;  %v1121_v21 = vld [vmem:[%s1611_s1 + $0xe0] ss:$8 sps:$4 sm:$0xff]  }
   0x8   :  { %401 = vmatprep.subr.bf16.mxu0 %v1098_v4  ;;  %1062 = vmatprep.subr.bf16.mxu1 %v1098_v4  ;;  %v1119_v20 = vld [vmem:[%s1611_s1 + $0xe4] ss:$8 sps:$4 sm:$0xff]   ;;  %v1122_v22 = vld [vmem:[%s1611_s1 + $0xd4] ss:$8 sps:$4 sm:$0xff]   ;;  %v1124_v23 = vld [vmem:[%s1611_s1 + $0xd0] ss:$8 sps:$4 sm:$0xff]  }
   0x9   :  { %509 = vmatprep.mubr.bf16.mxu1 %v1145_v15  ;;  %v1125_v24 = vld [vmem:[%s1611_s1 + $0xc4] ss:$8 sps:$4 sm:$0xff]   ;;  %v1127_v25 = vld [vmem:[%s1611_s1 + $0xc0] ss:$8 sps:$4 sm:$0xff]   ;;  %v1128_v26 = vld [vmem:[%s1611_s1 + $0xb4] ss:$8 sps:$4 sm:$0xff]  }
   0xa   :  { %v1130_v27 = vld [vmem:[%s1611_s1 + $0xb0] ss:$8 sps:$4 sm:$0xff]   ;;  %v1131_v28 = vld [vmem:[%s1611_s1 + $0xa4] ss:$8 sps:$4 sm:$0xff]   ;;  %v1133_v29 = vld [vmem:[%s1611_s1 + $0xa0] ss:$8 sps:$4 sm:$0xff]  }
   0xb   :  { %402 = vmatpush1.bf16.msra.mxu0 %v1100_v5  ;;  %1078 = vmatpush1.bf16.msra.mxu1 %v1100_v5  ;;  %v1134_v30 = vld [vmem:[%s1611_s1 + $0x94] ss:$8 sps:$4 sm:$0xff]   ;;  %v1136_v31 = vld [vmem:[%s1611_s1 + $0x90] ss:$8 sps:$4 sm:$0xff]   ;;  %v1137_v32 = vld [vmem:[%s1611_s1 + $0x84] ss:$8 sps:$4 sm:$0xff]  }
   0xc   :  { %403 = vmatprep.subr.bf16.mxu0 %v1101_v6  ;;  %1063 = vmatprep.subr.bf16.mxu1 %v1101_v6  ;;  %v1139_v33 = vld [vmem:[%s1611_s1 + $0x80] ss:$8 sps:$4 sm:$0xff]   ;;  %v1146_v36 = vld [vmem:[%s1612_s0 + $0x14] ss:$8 sps:$4 sm:$0xff]   ;;  %v1150_v38 = vld [vmem:[%s1612_s0 + $0x10] ss:$8 sps:$4 sm:$0xff]  }
   0xd   :  { %v1140_v34 = vld [vmem:[%s1612_s0] ss:$8 sps:$4 sm:$0xff]   ;;  %v1148_v37 = vld [vmem:[%s1612_s0 + $0x94] ss:$8 sps:$4 sm:$0xff]   ;;  %v1151_v39 = vld [vmem:[%s1612_s0 + $0x90] ss:$8 sps:$4 sm:$0xff]  }
   0xe   :  { %v1143_v35 = vld [vmem:[%s1612_s0 + $0x80] ss:$8 sps:$4 sm:$0xff]   ;;  %v1152_v40 = vld [vmem:[%s1612_s0 + $0x24] ss:$8 sps:$4 sm:$0xff]   ;;  %v1158_v44 = vld [vmem:[%s1612_s0 + $0x34] ss:$8 sps:$4 sm:$0xff]  }
   0xf   :  { %404 = vmatpush1.bf16.msra.mxu0 %v1103_v7  ;;  %1079 = vmatpush1.bf16.msra.mxu1 %v1103_v7  ;;  %v1154_v41 = vld [vmem:[%s1612_s0 + $0xa4] ss:$8 sps:$4 sm:$0xff]   ;;  %v1156_v42 = vld [vmem:[%s1612_s0 + $0x20] ss:$8 sps:$4 sm:$0xff]   ;;  %v1160_v45 = vld [vmem:[%s1612_s0 + $0xb4] ss:$8 sps:$4 sm:$0xff]  }
  0x10   :  { %405 = vmatprep.subr.bf16.mxu0 %v1104_v8  ;;  %1064 = vmatprep.subr.bf16.mxu1 %v1104_v8  ;;  %v1157_v43 = vld [vmem:[%s1612_s0 + $0xa0] ss:$8 sps:$4 sm:$0xff]   ;;  %v1162_v46 = vld [vmem:[%s1612_s0 + $0x30] ss:$8 sps:$4 sm:$0xff]   ;;  %v1164_v48 = vld [vmem:[%s1612_s0 + $0x44] ss:$8 sps:$4 sm:$0xff]  }
  0x11   :  { %v1163_v47 = vld [vmem:[%s1612_s0 + $0xb0] ss:$8 sps:$4 sm:$0xff]   ;;  %v1166_v49 = vld [vmem:[%s1612_s0 + $0xc4] ss:$8 sps:$4 sm:$0xff]   ;;  %v1168_v50 = vld [vmem:[%s1612_s0 + $0x40] ss:$8 sps:$4 sm:$0xff]  }
  0x12   :  { %v1169_v51 = vld [vmem:[%s1612_s0 + $0xc0] ss:$8 sps:$4 sm:$0xff]   ;;  %v1170_v52 = vld [vmem:[%s1612_s0 + $0x54] ss:$8 sps:$4 sm:$0xff]   ;;  %v1174_v54 = vld [vmem:[%s1612_s0 + $0x50] ss:$8 sps:$4 sm:$0xff]  }
  0x13   :  { %406 = vmatpush1.bf16.msra.mxu0 %v1106_v9  ;;  %1080 = vmatpush1.bf16.msra.mxu1 %v1106_v9  ;;  %v1172_v53 = vld [vmem:[%s1612_s0 + $0xd4] ss:$8 sps:$4 sm:$0xff]   ;;  %v1175_v55 = vld [vmem:[%s1612_s0 + $0xd0] ss:$8 sps:$4 sm:$0xff]   ;;  %v1176_v56 = vld [vmem:[%s1612_s0 + $0x64] ss:$8 sps:$4 sm:$0xff]  }
  0x14   :  { %407 = vmatprep.subr.bf16.mxu0 %v1107_v10  ;;  %1065 = vmatprep.subr.bf16.mxu1 %v1107_v10  ;;  %v1178_v57 = vld [vmem:[%s1612_s0 + $0xe4] ss:$8 sps:$4 sm:$0xff]   ;;  %v1180_v58 = vld [vmem:[%s1612_s0 + $0x60] ss:$8 sps:$4 sm:$0xff]   ;;  %v1182_v60 = vld [vmem:[%s1612_s0 + $0x74] ss:$8 sps:$4 sm:$0xff]  }
  0x15   :  { %v1181_v59 = vld [vmem:[%s1612_s0 + $0xe0] ss:$8 sps:$4 sm:$0xff]   ;;  %v1184_v61 = vld [vmem:[%s1612_s0 + $0xf4] ss:$8 sps:$4 sm:$0xff]   ;;  %v1186_v62 = vld [vmem:[%s1612_s0 + $0x70] ss:$8 sps:$4 sm:$0xff]  }
  0x16   :  { %v1187_v63 = vld [vmem:[%s1612_s0 + $0xf0] ss:$8 sps:$4 sm:$0xff]   ;;  %v1400_v1 = vand.u32 127, %v590_v0 }
  0x17   :  { %408 = vmatpush1.bf16.msra.mxu0 %v1109_v11  ;;  %1081 = vmatpush1.bf16.msra.mxu1 %v1109_v11 }
  0x18   :  { %409 = vmatprep.subr.bf16.mxu0 %v1110_v12  ;;  %1066 = vmatprep.subr.bf16.mxu1 %v1110_v12  ;;  %vm604_vm0 = vcmp.eq.s32.totalorder %v1400_v1, 8 }
  0x1b   :  { %410 = vmatpush1.bf16.msra.mxu0 %v1112_v14  ;;  %1082 = vmatpush1.bf16.msra.mxu1 %v1112_v14 }
  0x1c   :  { %411 = vmatprep.subr.bf16.mxu0 %v1113_v16  ;;  %1067 = vmatprep.subr.bf16.mxu1 %v1113_v16 }
  0x1f   :  { %412 = vmatpush1.bf16.msra.mxu0 %v1115_v17  ;;  %1083 = vmatpush1.bf16.msra.mxu1 %v1115_v17 }
  0x20   :  { %413 = vmatprep.subr.bf16.mxu0 %v1116_v18  ;;  %1068 = vmatprep.subr.bf16.mxu1 %v1116_v18 }
  0x23   :  { %414 = vmatpush2.bf16.msra.mxu0 %v1118_v19  ;;  %1084 = vmatpush2.bf16.msra.mxu1 %v1118_v19 }
  0x24   :  { %415 = vmatprep.subr.bf16.mxu0 %v1119_v20  ;;  %1069 = vmatprep.subr.bf16.mxu1 %v1119_v20 }
  0x27   :  { %416 = vmatpush2.bf16.msra.mxu0 %v1121_v21  ;;  %1085 = vmatpush2.bf16.msra.mxu1 %v1121_v21 }
  0x28   :  { %417 = vmatprep.subr.bf16.mxu0 %v1122_v22  ;;  %1070 = vmatprep.subr.bf16.mxu1 %v1122_v22 }
  0x2b   :  { %418 = vmatpush2.bf16.msra.mxu0 %v1124_v23  ;;  %1086 = vmatpush2.bf16.msra.mxu1 %v1124_v23 }
  0x2c   :  { %419 = vmatprep.subr.bf16.mxu0 %v1125_v24  ;;  %1071 = vmatprep.subr.bf16.mxu1 %v1125_v24 }
  0x2f   :  { %420 = vmatpush2.bf16.msra.mxu0 %v1127_v25  ;;  %1087 = vmatpush2.bf16.msra.mxu1 %v1127_v25 }
  0x30   :  { %421 = vmatprep.subr.bf16.mxu0 %v1128_v26  ;;  %1072 = vmatprep.subr.bf16.mxu1 %v1128_v26 }
  0x33   :  { %422 = vmatpush2.bf16.msra.mxu0 %v1130_v27  ;;  %1088 = vmatpush2.bf16.msra.mxu1 %v1130_v27 }
  0x34   :  { %423 = vmatprep.subr.bf16.mxu0 %v1131_v28  ;;  %1073 = vmatprep.subr.bf16.mxu1 %v1131_v28 }
  0x37   :  { %424 = vmatpush2.bf16.msra.mxu0 %v1133_v29  ;;  %1089 = vmatpush2.bf16.msra.mxu1 %v1133_v29 }
  0x38   :  { %425 = vmatprep.subr.bf16.mxu0 %v1134_v30  ;;  %1074 = vmatprep.subr.bf16.mxu1 %v1134_v30 }
  0x3b   :  { %426 = vmatpush2.bf16.msra.mxu0 %v1136_v31  ;;  %1090 = vmatpush2.bf16.msra.mxu1 %v1136_v31 }
  0x3c   :  { %427 = vmatprep.subr.bf16.mxu0 %v1137_v32  ;;  %1075 = vmatprep.subr.bf16.mxu1 %v1137_v32 }
  0x3f   :  { %428 = vmatpush2.bf16.msra.mxu0 %v1139_v33  ;;  %1091 = vmatpush2.bf16.msra.mxu1 %v1139_v33 }
  0x42   :  { %430 = vmatmul.mubr.bf16.vlgmr.msra.gmra.mxu0 %v1140_v34  ;;  %510 = vmatmul.mubr.bf16.vlgmr.msra.gmra.mxu1 %v1143_v35 }
  0x43   :  { %439 = vmatprep.mubr.bf16.mxu0 %v1146_v36  ;;  %519 = vmatprep.mubr.bf16.mxu1 %v1148_v37 }
  0x4a   :  { %440 = vmatmul.mubr.bf16.gmra.mxu0 %v1150_v38  ;;  %520 = vmatmul.mubr.bf16.gmra.mxu1 %v1151_v39 }
  0x4b   :  { %449 = vmatprep.mubr.bf16.mxu0 %v1152_v40  ;;  %529 = vmatprep.mubr.bf16.mxu1 %v1154_v41 }
  0x52   :  { %450 = vmatmul.mubr.bf16.gmra.mxu0 %v1156_v42  ;;  %530 = vmatmul.mubr.bf16.gmra.mxu1 %v1157_v43 }
  0x53   :  { %459 = vmatprep.mubr.bf16.mxu0 %v1158_v44  ;;  %539 = vmatprep.mubr.bf16.mxu1 %v1160_v45 }
  0x5a   :  { %460 = vmatmul.mubr.bf16.gmra.mxu0 %v1162_v46  ;;  %540 = vmatmul.mubr.bf16.gmra.mxu1 %v1163_v47 }
  0x5b   :  { %469 = vmatprep.mubr.bf16.mxu0 %v1164_v48  ;;  %549 = vmatprep.mubr.bf16.mxu1 %v1166_v49 }
  0x62   :  { %470 = vmatmul.mubr.bf16.gmra.mxu0 %v1168_v50  ;;  %550 = vmatmul.mubr.bf16.gmra.mxu1 %v1169_v51 }
  0x63   :  { %479 = vmatprep.mubr.bf16.mxu0 %v1170_v52  ;;  %559 = vmatprep.mubr.bf16.mxu1 %v1172_v53 }
  0x6a   :  { %480 = vmatmul.mubr.bf16.gmra.mxu0 %v1174_v54  ;;  %560 = vmatmul.mubr.bf16.gmra.mxu1 %v1175_v55 }
  0x6b   :  { %489 = vmatprep.mubr.bf16.mxu0 %v1176_v56  ;;  %569 = vmatprep.mubr.bf16.mxu1 %v1178_v57 }
  0x72   :  { %490 = vmatmul.mubr.bf16.gmra.mxu0 %v1180_v58  ;;  %570 = vmatmul.mubr.bf16.gmra.mxu1 %v1181_v59 }
  0x73   :  { %499 = vmatprep.mubr.bf16.mxu0 %v1182_v60  ;;  %579 = vmatprep.mubr.bf16.mxu1 %v1184_v61 }
  0x7a   :  { %500 = vmatmul.mubr.bf16.gmra.mxu0 %v1186_v62  ;;  %580 = vmatmul.mubr.bf16.gmra.mxu1 %v1187_v63 }
 0x102   :  { %v431_v2 = vpop.f32.mrf.mxu0  ;;  %v511_v3 = vpop.f32.mrf.mxu1 }
 0x103   :  { %v605_v8 = vsel %vm604_vm0, 1.0, %v431_v2  ;;  %v621_v9 = vsel %vm604_vm0, 1.0, %v511_v3 }
 0x104   :  { %v433_v4 = vpop.f32.mrf.mxu0  ;;  %v513_v5 = vpop.f32.mrf.mxu1 }
 0x105   :  { %797 = vst [vmem:[%s1613_s3] sm:$0xff] %v433_v4  ;;  %813 = vst [vmem:[%s1613_s3 + $0x80] sm:$0xff] %v513_v5 }
 0x106   :  { %v435_v6 = vpop.f32.mrf.mxu0  ;;  %v515_v7 = vpop.f32.mrf.mxu1 }
 0x107   :  { %v606_v10 = vsel %vm604_vm0, 1.0, %v435_v6  ;;  %v622_v11 = vsel %vm604_vm0, 1.0, %v515_v7 }
 0x108   :  { %v968_v12 = vpack.c.bf16 %v606_v10, %v605_v8  ;;  %v1008_v13 = vpack.c.bf16 %v622_v11, %v621_v9  ;;  %v437_v14 = vpop.f32.mrf.mxu0  ;;  %v517_v15 = vpop.f32.mrf.mxu1 }
 0x109   :  { %798 = vst [vmem:[%s1613_s3 + $0x8] sm:$0xff] %v437_v14  ;;  %814 = vst [vmem:[%s1613_s3 + $0x88] sm:$0xff] %v517_v15 }
 0x10a   :  { %969 = vst [vmem:[%s1614_s2] sm:$0xff] %v968_v12   ;;  %1052 = vst [vmem:[%s1614_s2 + $0x40] sm:$0xff] %v1008_v13   ;;  %v441_v16 = vpop.f32.mrf.mxu0  ;;  %v521_v17 = vpop.f32.mrf.mxu1 }
 0x10b   :  { %v607_v22 = vsel %vm604_vm0, 1.0, %v441_v16  ;;  %v623_v23 = vsel %vm604_vm0, 1.0, %v521_v17 }
 0x10c   :  { %v443_v18 = vpop.f32.mrf.mxu0  ;;  %v523_v19 = vpop.f32.mrf.mxu1 }
 0x10d   :  { %799 = vst [vmem:[%s1613_s3 + $0x10] sm:$0xff] %v443_v18  ;;  %815 = vst [vmem:[%s1613_s3 + $0x90] sm:$0xff] %v523_v19 }
 0x10e   :  { %v445_v20 = vpop.f32.mrf.mxu0  ;;  %v525_v21 = vpop.f32.mrf.mxu1 }
 0x10f   :  { %v608_v24 = vsel %vm604_vm0, 1.0, %v445_v20  ;;  %v624_v25 = vsel %vm604_vm0, 1.0, %v525_v21 }
 0x110   :  { %v973_v26 = vpack.c.bf16 %v608_v24, %v607_v22  ;;  %v1013_v27 = vpack.c.bf16 %v624_v25, %v623_v23  ;;  %v447_v28 = vpop.f32.mrf.mxu0  ;;  %v527_v29 = vpop.f32.mrf.mxu1 }
 0x111   :  { %800 = vst [vmem:[%s1613_s3 + $0x18] sm:$0xff] %v447_v28  ;;  %816 = vst [vmem:[%s1613_s3 + $0x98] sm:$0xff] %v527_v29 }
 0x112   :  { %1045 = vst [vmem:[%s1614_s2 + $0x8] sm:$0xff] %v973_v26   ;;  %1053 = vst [vmem:[%s1614_s2 + $0x48] sm:$0xff] %v1013_v27   ;;  %v451_v30 = vpop.f32.mrf.mxu0  ;;  %v531_v31 = vpop.f32.mrf.mxu1 }
 0x113   :  { %v609_v36 = vsel %vm604_vm0, 1.0, %v451_v30  ;;  %v625_v37 = vsel %vm604_vm0, 1.0, %v531_v31 }
 0x114   :  { %v453_v32 = vpop.f32.mrf.mxu0  ;;  %v533_v33 = vpop.f32.mrf.mxu1 }
 0x115   :  { %801 = vst [vmem:[%s1613_s3 + $0x20] sm:$0xff] %v453_v32  ;;  %817 = vst [vmem:[%s1613_s3 + $0xa0] sm:$0xff] %v533_v33 }
 0x116   :  { %v455_v34 = vpop.f32.mrf.mxu0  ;;  %v535_v35 = vpop.f32.mrf.mxu1 }
 0x117   :  { %v610_v38 = vsel %vm604_vm0, 1.0, %v455_v34  ;;  %v626_v39 = vsel %vm604_vm0, 1.0, %v535_v35 }
 0x118   :  { %v978_v40 = vpack.c.bf16 %v610_v38, %v609_v36  ;;  %v1018_v41 = vpack.c.bf16 %v626_v39, %v625_v37  ;;  %v457_v42 = vpop.f32.mrf.mxu0  ;;  %v537_v43 = vpop.f32.mrf.mxu1 }
 0x119   :  { %802 = vst [vmem:[%s1613_s3 + $0x28] sm:$0xff] %v457_v42  ;;  %818 = vst [vmem:[%s1613_s3 + $0xa8] sm:$0xff] %v537_v43 }
 0x11a   :  { %1046 = vst [vmem:[%s1614_s2 + $0x10] sm:$0xff] %v978_v40   ;;  %1054 = vst [vmem:[%s1614_s2 + $0x50] sm:$0xff] %v1018_v41   ;;  %v461_v44 = vpop.f32.mrf.mxu0  ;;  %v541_v45 = vpop.f32.mrf.mxu1 }
 0x11b   :  { %v611_v50 = vsel %vm604_vm0, 1.0, %v461_v44  ;;  %v627_v51 = vsel %vm604_vm0, 1.0, %v541_v45 }
 0x11c   :  { %v463_v46 = vpop.f32.mrf.mxu0  ;;  %v543_v47 = vpop.f32.mrf.mxu1 }
 0x11d   :  { %803 = vst [vmem:[%s1613_s3 + $0x30] sm:$0xff] %v463_v46  ;;  %819 = vst [vmem:[%s1613_s3 + $0xb0] sm:$0xff] %v543_v47 }
 0x11e   :  { %v465_v48 = vpop.f32.mrf.mxu0  ;;  %v545_v49 = vpop.f32.mrf.mxu1 }
 0x11f   :  { %v612_v52 = vsel %vm604_vm0, 1.0, %v465_v48  ;;  %v628_v53 = vsel %vm604_vm0, 1.0, %v545_v49 }
 0x120   :  { %v983_v54 = vpack.c.bf16 %v612_v52, %v611_v50  ;;  %v1023_v55 = vpack.c.bf16 %v628_v53, %v627_v51  ;;  %v467_v56 = vpop.f32.mrf.mxu0  ;;  %v547_v57 = vpop.f32.mrf.mxu1 }
 0x121   :  { %804 = vst [vmem:[%s1613_s3 + $0x38] sm:$0xff] %v467_v56  ;;  %820 = vst [vmem:[%s1613_s3 + $0xb8] sm:$0xff] %v547_v57 }
 0x122   :  { %1047 = vst [vmem:[%s1614_s2 + $0x18] sm:$0xff] %v983_v54   ;;  %1055 = vst [vmem:[%s1614_s2 + $0x58] sm:$0xff] %v1023_v55   ;;  %v471_v58 = vpop.f32.mrf.mxu0  ;;  %v551_v59 = vpop.f32.mrf.mxu1 }
 0x123   :  { %v613_v0 = vsel %vm604_vm0, 1.0, %v471_v58  ;;  %v629_v2 = vsel %vm604_vm0, 1.0, %v551_v59 }
 0x124   :  { %v473_v60 = vpop.f32.mrf.mxu0  ;;  %v553_v61 = vpop.f32.mrf.mxu1 }
 0x125   :  { %805 = vst [vmem:[%s1613_s3 + $0x40] sm:$0xff] %v473_v60  ;;  %821 = vst [vmem:[%s1613_s3 + $0xc0] sm:$0xff] %v553_v61 }
 0x126   :  { %v475_v62 = vpop.f32.mrf.mxu0  ;;  %v555_v63 = vpop.f32.mrf.mxu1 }
 0x127   :  { %v614_v3 = vsel %vm604_vm0, 1.0, %v475_v62  ;;  %v630_v4 = vsel %vm604_vm0, 1.0, %v555_v63 }
 0x128   :  { %v988_v5 = vpack.c.bf16 %v614_v3, %v613_v0  ;;  %v1028_v6 = vpack.c.bf16 %v630_v4, %v629_v2  ;;  %v477_v7 = vpop.f32.mrf.mxu0  ;;  %v557_v8 = vpop.f32.mrf.mxu1 }
 0x129   :  { %806 = vst [vmem:[%s1613_s3 + $0x48] sm:$0xff] %v477_v7  ;;  %822 = vst [vmem:[%s1613_s3 + $0xc8] sm:$0xff] %v557_v8 }
 0x12a   :  { %1048 = vst [vmem:[%s1614_s2 + $0x20] sm:$0xff] %v988_v5   ;;  %1056 = vst [vmem:[%s1614_s2 + $0x60] sm:$0xff] %v1028_v6   ;;  %v481_v9 = vpop.f32.mrf.mxu0  ;;  %v561_v10 = vpop.f32.mrf.mxu1 }
 0x12b   :  { %v615_v15 = vsel %vm604_vm0, 1.0, %v481_v9  ;;  %v631_v16 = vsel %vm604_vm0, 1.0, %v561_v10 }
 0x12c   :  { %v483_v11 = vpop.f32.mrf.mxu0  ;;  %v563_v12 = vpop.f32.mrf.mxu1 }
 0x12d   :  { %807 = vst [vmem:[%s1613_s3 + $0x50] sm:$0xff] %v483_v11  ;;  %823 = vst [vmem:[%s1613_s3 + $0xd0] sm:$0xff] %v563_v12 }
 0x12e   :  { %v485_v13 = vpop.f32.mrf.mxu0  ;;  %v565_v14 = vpop.f32.mrf.mxu1 }
 0x12f   :  { %v616_v17 = vsel %vm604_vm0, 1.0, %v485_v13  ;;  %v632_v18 = vsel %vm604_vm0, 1.0, %v565_v14 }
 0x130   :  { %v993_v19 = vpack.c.bf16 %v616_v17, %v615_v15  ;;  %v1033_v20 = vpack.c.bf16 %v632_v18, %v631_v16  ;;  %v487_v21 = vpop.f32.mrf.mxu0  ;;  %v567_v22 = vpop.f32.mrf.mxu1 }
 0x131   :  { %808 = vst [vmem:[%s1613_s3 + $0x58] sm:$0xff] %v487_v21  ;;  %824 = vst [vmem:[%s1613_s3 + $0xd8] sm:$0xff] %v567_v22 }
 0x132   :  { %1049 = vst [vmem:[%s1614_s2 + $0x28] sm:$0xff] %v993_v19   ;;  %1057 = vst [vmem:[%s1614_s2 + $0x68] sm:$0xff] %v1033_v20   ;;  %v491_v23 = vpop.f32.mrf.mxu0  ;;  %v571_v24 = vpop.f32.mrf.mxu1 }
 0x133   :  { %v617_v29 = vsel %vm604_vm0, 1.0, %v491_v23  ;;  %v633_v30 = vsel %vm604_vm0, 1.0, %v571_v24 }
 0x134   :  { %v493_v25 = vpop.f32.mrf.mxu0  ;;  %v573_v26 = vpop.f32.mrf.mxu1 }
 0x135   :  { %809 = vst [vmem:[%s1613_s3 + $0x60] sm:$0xff] %v493_v25  ;;  %825 = vst [vmem:[%s1613_s3 + $0xe0] sm:$0xff] %v573_v26 }
 0x136   :  { %v495_v27 = vpop.f32.mrf.mxu0  ;;  %v575_v28 = vpop.f32.mrf.mxu1 }
 0x137   :  { %v618_v31 = vsel %vm604_vm0, 1.0, %v495_v27  ;;  %v634_v32 = vsel %vm604_vm0, 1.0, %v575_v28 }
 0x138   :  { %v998_v33 = vpack.c.bf16 %v618_v31, %v617_v29  ;;  %v1038_v34 = vpack.c.bf16 %v634_v32, %v633_v30  ;;  %v497_v35 = vpop.f32.mrf.mxu0  ;;  %v577_v36 = vpop.f32.mrf.mxu1 }
 0x139   :  { %810 = vst [vmem:[%s1613_s3 + $0x68] sm:$0xff] %v497_v35  ;;  %826 = vst [vmem:[%s1613_s3 + $0xe8] sm:$0xff] %v577_v36 }
 0x13a   :  { %1050 = vst [vmem:[%s1614_s2 + $0x30] sm:$0xff] %v998_v33   ;;  %1058 = vst [vmem:[%s1614_s2 + $0x70] sm:$0xff] %v1038_v34   ;;  %v501_v37 = vpop.f32.mrf.mxu0  ;;  %v581_v38 = vpop.f32.mrf.mxu1 }
 0x13b   :  { %v619_v43 = vsel %vm604_vm0, 1.0, %v501_v37  ;;  %v635_v44 = vsel %vm604_vm0, 1.0, %v581_v38 }
 0x13c   :  { %v503_v39 = vpop.f32.mrf.mxu0  ;;  %v583_v40 = vpop.f32.mrf.mxu1 }
 0x13d   :  { %811 = vst [vmem:[%s1613_s3 + $0x70] sm:$0xff] %v503_v39  ;;  %827 = vst [vmem:[%s1613_s3 + $0xf0] sm:$0xff] %v583_v40 }
 0x13e   :  { %v505_v41 = vpop.f32.mrf.mxu0  ;;  %v585_v42 = vpop.f32.mrf.mxu1 }
 0x13f   :  { %v620_v45 = vsel %vm604_vm0, 1.0, %v505_v41  ;;  %v636_v46 = vsel %vm604_vm0, 1.0, %v585_v42 }
 0x140   :  { %v1003_v47 = vpack.c.bf16 %v620_v45, %v619_v43  ;;  %v1043_v48 = vpack.c.bf16 %v636_v46, %v635_v44  ;;  %v507_v49 = vpop.f32.mrf.mxu0  ;;  %v587_v50 = vpop.f32.mrf.mxu1 }
 0x141   :  { %812 = vst [vmem:[%s1613_s3 + $0x78] sm:$0xff] %v507_v49  ;;  %828 = vst [vmem:[%s1613_s3 + $0xf8] sm:$0xff] %v587_v50 }
 0x142   :  { %1051 = vst [vmem:[%s1614_s2 + $0x38] sm:$0xff] %v1003_v47   ;;  %1059 = vst [vmem:[%s1614_s2 + $0x78] sm:$0xff] %v1043_v48  }

// kernel: _lambda_.5
= control target key start
LH: loop header
LB: loop body
LE: loop exit
PB: predicated region body
PF: predicated region fallthrough
CT: control target
= control target key end

     0   :  { %s3078_s15 = smov 0   ;;  %s3080_s16 = smov 0   ;;  %s3834_s0 = inlined_call_operand.vmem [shape: f32[256,128], index: 0, kind: input, shape index: {}]   ;;  %s3835_s1 = inlined_call_operand.vmem [shape: f32[2,256], index: 1, kind: input, shape index: {}]   ;;  %s3836_s2 = inlined_call_operand.vmem [shape: bf16[256,256], index: 2, kind: input, shape index: {}]   ;;  %s3837_s3 = inlined_call_operand.vmem [shape: s8[256,256], index: 3, kind: input, shape index: {}]   ;;  %s3838_s4 = inlined_call_operand.vmem [shape: bf16[256,256], index: 4, kind: output, shape index: {}]  }
   0x1   :  { %s3082_s17 = smov 0  }
   0x2 LB: > { %s26_s18 = sadd.s32 1, %s3044_s16  ;;  %p2438_p0 = scmp.ge.s32.totalorder %s3048_s17, 1  ;;  %s3048_s17 = sphi %s3082_s17, %s14_s17   ;;  %s3044_s16 = sphi %s3080_s16, %s3840_s16   ;;  %s3040_s15 = sphi %s3078_s15, %s3839_s15  }
   0x3   : > { %p28_p1 = scmp.ge.s32.totalorder %s26_s18, 2  ;;  %p205_p2 = scmp.lt.s32.totalorder %s3048_s17, 3 }
   0x5   : > { %s3842_s18 = smov (%p28_p1, %s26_s18), 0  ;;  %p206_p3 = pnand %p2438_p0, %p205_p2 }
   0x6   : > { %s2439_s19 = sshll.u32 (!%p206_p3), %s3040_s15, 4  ;;  %s2441_s6 = sshll.u32 (!%p206_p3), %s3040_s15, 2 }
   0x7   : > { %209 = sbr.rel (%p206_p3) target bundleno = 702 (0x2be), region = 36  ;;  %p248_p4 = scmp.lt.s32.totalorder (!%p206_p3), %s2439_s19, 31 }
   0x8   : > { %p261_p5 = scmp.lt.s32.totalorder (!%p206_p3), %s2441_s6, 7 }
   0xc   : > { %v3050_v0 = vmov 0   ;;  %v2722_v1 = vld [vmem:[%s3836_s2 + $0xf0] ss:$8 sps:$4 sm:$0xff]   ;;  %s3844_s19 = smov (!%p248_p4, %s2439_s19), 31  ;;  %v2726_v12 = vld [vmem:[%s3836_s2 + $0xe0] ss:$8 sps:$4 sm:$0xff]  }
   0xd   : > { %2703 = vset.pattern.permute.xlu1 %v3050_v0  ;;  %2702 = vset.pattern.permute.xlu0 %v3050_v0  ;;  %s2440_s22 = sshll.u32 %s3844_s19, 3  ;;  %v2724_v2 = vld [vmem:[%s3836_s2 + $0x70] ss:$8 sps:$4 sm:$0xff]   ;;  %v3051_v13 = vmov 1   ;;  %v2728_v15 = vld [vmem:[%s3836_s2 + $0x60] ss:$8 sps:$4 sm:$0xff]  }
   0xe   : > { %2547 = vmatprep.subr.bf16.mxu0 %v2722_v1  ;;  %s3115_s27 = scalar_lea.vmem %s3834_s0, %s2440_s22  ;;  %v2730_v16 = vld [vmem:[%s3836_s2 + $0xd0] ss:$8 sps:$4 sm:$0xff]   ;;  %v2734_v21 = vld [vmem:[%s3836_s2 + $0xc0] ss:$8 sps:$4 sm:$0xff]   ;;  %v2754_v42 = vld [vmem:[%s3836_s2 + $0xf4] ss:$8 sps:$4 sm:$0xff]   ;;  %s3768_s12 = scalar_lea.vmem %s3838_s4, %s2440_s22 }
   0xf   : > { %v3118_v3 = vld [vmem:[%s3115_s27] sm:$0xff]  ;;  %v316_v4 = vld [vmem:[%s3115_s27 + $0x8] sm:$0xff]  ;;  %2548 = vmatpush3.bf16.msra.mxu0 %v2724_v2  ;;  %v318_v9 = vld [vmem:[%s3115_s27 + $0x18] sm:$0xff]  ;;  %2611 = vmatprep.subr.bf16.mxu1 %v2754_v42  ;;  %s3846_s6 = smov (!%p261_p5, %s2441_s6), 7 }
  0x10   : > { %v458_v5 = vmul.f32 -0.2, %v3118_v3  ;;  %v442_v6 = vsub.f32 0.0, %v3118_v3  ;;  %v3125_v7 = vmul.f32 -0.2, %v316_v4  ;;  %v443_v8 = vsub.f32 0.0, %v316_v4  ;;  %2549 = vmatprep.subr.bf16.mxu0 %v2726_v12 }
  0x11   : > { %v445_v10 = vsub.f32 0.0, %v318_v9  ;;  %v3130_v11 = vld [vmem:[%s3115_s27 + $0x28] sm:$0xff]  ;;  %v3144_v17 = vld [vmem:[%s3115_s27 + $0x38] sm:$0xff]  ;;  %v3147_v18 = vld [vmem:[%s3115_s27 + $0x10] sm:$0xff]  ;;  %v461_v33 = vmul.f32 -0.2, %v318_v9 }
  0x12   : > { %609 = vperm.xlu1 %2703, %v458_v5   ;;  %478 = vperm.xlu0 %2702, %v442_v6   ;;  %v447_v14 = vsub.f32 0.0, %v3130_v11  ;;  %v2732_v19 = vld [vmem:[%s3836_s2 + $0x50] ss:$8 sps:$4 sm:$0xff]   ;;  %v3153_v20 = vld [vmem:[%s3115_s27 + $0x48] sm:$0xff]  ;;  %v449_v22 = vsub.f32 0.0, %v3144_v17  ;;  %v444_v23 = vsub.f32 0.0, %v3147_v18 }
  0x13   : > { %2550 = vmatpush3.bf16.msra.mxu0 %v2728_v15  ;;  %v2736_v24 = vld [vmem:[%s3836_s2 + $0x40] ss:$8 sps:$4 sm:$0xff]   ;;  %v2738_v25 = vld [vmem:[%s3836_s2 + $0xb0] ss:$8 sps:$4 sm:$0xff]   ;;  %v451_v26 = vsub.f32 0.0, %v3153_v20  ;;  %s2529_s15 = sshll.u32 %s3846_s6, 4 }
  0x14   : > { %2551 = vmatprep.subr.bf16.mxu0 %v2730_v16  ;;  %v3173_v27 = vld [vmem:[%s3115_s27 + $0x58] sm:$0xff]  ;;  %v460_v28 = vmul.f32 -0.2, %v3147_v18  ;;  %v2742_v30 = vld [vmem:[%s3836_s2 + $0xa0] ss:$8 sps:$4 sm:$0xff]   ;;  %v321_v55 = vld [vmem:[%s3115_s27 + $0x30] sm:$0xff]  ;;  %s3353_s9 = scalar_lea.vmem %s3837_s3, %s2529_s15 }
  0x15   : > { %v2740_v29 = vld [vmem:[%s3836_s2 + $0x30] ss:$8 sps:$4 sm:$0xff]   ;;  %v453_v31 = vsub.f32 0.0, %v3173_v27  ;;  %v3188_v32 = vld [vmem:[%s3115_s27 + $0x68] sm:$0xff]  ;;  %v319_v43 = vld [vmem:[%s3115_s27 + $0x20] sm:$0xff]  ;;  %v448_v58 = vsub.f32 0.0, %v321_v55 }
  0x16   : > { %614 = vperm.xlu1 %2703, %v3125_v7   ;;  %483 = vperm.xlu0 %2702, %v443_v8   ;;  %v2744_v34 = vld [vmem:[%s3836_s2 + $0x20] ss:$8 sps:$4 sm:$0xff]   ;;  %v2746_v35 = vld [vmem:[%s3836_s2 + $0x90] ss:$8 sps:$4 sm:$0xff]   ;;  %v455_v36 = vsub.f32 0.0, %v3188_v32  ;;  %v446_v45 = vsub.f32 0.0, %v319_v43 }
  0x17   : > { %2552 = vmatpush3.bf16.msra.mxu0 %v2732_v19  ;;  %v3200_v37 = vld [vmem:[%s3115_s27 + $0x78] sm:$0xff]  ;;  %v2750_v39 = vld [vmem:[%s3836_s2 + $0x80] ss:$8 sps:$4 sm:$0xff]   ;;  %v2756_v46 = vld [vmem:[%s3836_s2 + $0xe4] ss:$8 sps:$4 sm:$0xff]  }
  0x18   : > { %2553 = vmatprep.subr.bf16.mxu0 %v2734_v21  ;;  %v2748_v38 = vld [vmem:[%s3836_s2 + $0x10] ss:$8 sps:$4 sm:$0xff]   ;;  %v457_v40 = vsub.f32 0.0, %v3200_v37  ;;  %v2752_v41 = vld [vmem:[%s3836_s2] ss:$8 sps:$4 sm:$0xff]  }
  0x19   : > { %v2755_v44 = vld [vmem:[%s3836_s2 + $0x74] ss:$8 sps:$4 sm:$0xff]   ;;  %v2757_v47 = vld [vmem:[%s3836_s2 + $0x64] ss:$8 sps:$4 sm:$0xff]   ;;  %v462_v48 = vmul.f32 -0.2, %v319_v43 }
  0x1a   : > { %2704 = vset.pattern.permute.xlu1 %v3051_v13  ;;  %493 = vperm.xlu0 %2702, %v445_v10   ;;  %v2758_v49 = vld [vmem:[%s3836_s2 + $0xd4] ss:$8 sps:$4 sm:$0xff]   ;;  %v463_v51 = vmul.f32 -0.2, %v3130_v11  ;;  %v2760_v52 = vld [vmem:[%s3836_s2 + $0xc4] ss:$8 sps:$4 sm:$0xff]  }
  0x1b   : > { %1160 = vperm.xlu1 %2704, %v443_v8   ;;  %2554 = vmatpush3.bf16.msra.mxu0 %v2736_v24  ;;  %v2759_v50 = vld [vmem:[%s3836_s2 + $0x54] ss:$8 sps:$4 sm:$0xff]   ;;  %v2761_v53 = vld [vmem:[%s3836_s2 + $0x44] ss:$8 sps:$4 sm:$0xff]   ;;  %v465_v60 = vmul.f32 -0.2, %v3144_v17  ;;  %v557_v17 = vlaneseq }
  0x1c   : > { %2555 = vmatprep.subr.bf16.mxu0 %v2738_v25  ;;  %2612 = vmatpush3.bf16.msra.mxu1 %v2755_v44  ;;  %v2762_v54 = vld [vmem:[%s3836_s2 + $0xb4] ss:$8 sps:$4 sm:$0xff]   ;;  %v2764_v57 = vld [vmem:[%s3836_s2 + $0xa4] ss:$8 sps:$4 sm:$0xff]   ;;  %v464_v61 = vmul.f32 -0.2, %v321_v55 }
  0x1d   : > { %2613 = vmatprep.subr.bf16.mxu1 %v2756_v46  ;;  %v2763_v56 = vld [vmem:[%s3836_s2 + $0x34] ss:$8 sps:$4 sm:$0xff]   ;;  %v2765_v59 = vld [vmem:[%s3836_s2 + $0x24] ss:$8 sps:$4 sm:$0xff]   ;;  %v469_v8 = vmul.f32 -0.2, %v3173_v27 }
  0x1e   : > { %503 = vperm.xlu0 %2702, %v447_v14   ;;  %v323_v62 = vld [vmem:[%s3115_s27 + $0x40] sm:$0xff]  ;;  %v2766_v63 = vld [vmem:[%s3836_s2 + $0x94] ss:$8 sps:$4 sm:$0xff]   ;;  %v3290_v12 = vmul.f32 -0.2, %v3188_v32  ;;  %v3307_v19 = vshrl.u32 %v557_v17, 7 }
  0x1f   : > { %1270 = vperm.xlu1 %2704, %v458_v5   ;;  %2556 = vmatpush3.bf16.msra.mxu0 %v2740_v29  ;;  %v2767_v1 = vld [vmem:[%s3836_s2 + $0x14] ss:$8 sps:$4 sm:$0xff]   ;;  %v2768_v2 = vld [vmem:[%s3836_s2 + $0x84] ss:$8 sps:$4 sm:$0xff]   ;;  %v450_v3 = vsub.f32 0.0, %v323_v62 }
  0x20   : > { %2557 = vmatprep.subr.bf16.mxu0 %v2742_v30  ;;  %2614 = vmatpush3.bf16.msra.mxu1 %v2757_v47  ;;  %v2769_v4 = vld [vmem:[%s3836_s2 + $0x4] ss:$8 sps:$4 sm:$0xff]   ;;  %v467_v5 = vmul.f32 -0.2, %v3153_v20  ;;  %v466_v11 = vmul.f32 -0.2, %v323_v62 }
  0x21   : > { %2615 = vmatprep.subr.bf16.mxu1 %v2758_v49  ;;  %v327_v9 = vld [vmem:[%s3115_s27 + $0x60] sm:$0xff]  ;;  %v3300_v16 = vmul.f32 -0.2, %v3200_v37  ;;  %v559_v20 = vsub.s32 0, %v3307_v19 }
  0x22   : > { %513 = vperm.xlu0 %2702, %v449_v22   ;;  %v331_v21 = vld [vmem:[%s3835_s1] sm:$0xf]  ;;  %v470_v47 = vmul.f32 -0.2, %v327_v9 }
  0x23   : > { %2705 = vset.pattern.permute.xlu1 %v3050_v0  ;;  %2558 = vmatpush3.bf16.msra.mxu0 %v2744_v34  ;;  %v3316_v24 = vsub.f32 0.0, %v331_v21 }
  0x24   : > { %488 = vperm.xlu1 %2705, %v444_v23   ;;  %2559 = vmatprep.subr.bf16.mxu0 %v2746_v35 }
  0x25   : > { %2616 = vmatpush3.bf16.msra.mxu1 %v2759_v50 }
  0x26   : > { %523 = vperm.xlu0 %2702, %v451_v26   ;;  %2617 = vmatprep.subr.bf16.mxu1 %v2760_v52 }
  0x27   : > { %2560 = vmatpush3.bf16.msra.mxu0 %v2748_v38 }
  0x28   : > { %619 = vperm.xlu1 %2705, %v460_v28   ;;  %2561 = vmatprep.subr.bf16.mxu0 %v2750_v39 }
  0x29   : > { %2618 = vmatpush3.bf16.msra.mxu1 %v2761_v53 }
  0x2a   : > { %533 = vperm.xlu0 %2702, %v453_v31   ;;  %2619 = vmatprep.subr.bf16.mxu1 %v2762_v54 }
  0x2b   : > { %2562 = vmatpush3.bf16.msra.mxu0 %v2752_v41 }
  0x2c   : > { %624 = vperm.xlu1 %2705, %v461_v33  }
  0x2d   : > { %2620 = vmatpush3.bf16.msra.mxu1 %v2763_v56 }
  0x2e   : > { %543 = vperm.xlu0 %2702, %v455_v36   ;;  %2621 = vmatprep.subr.bf16.mxu1 %v2764_v57 }
  0x30   : > { %2706 = vset.pattern.permute.xlu1 %v3051_v13 }
  0x31   : > { %1168 = vperm.xlu1 %2706, %v445_v10   ;;  %2622 = vmatpush3.bf16.msra.mxu1 %v2765_v59  ;;  %v454_v10 = vsub.f32 0.0, %v327_v9 }
  0x32   : > { %553 = vperm.xlu0 %2702, %v457_v40   ;;  %2623 = vmatprep.subr.bf16.mxu1 %v2766_v63 }
  0x35   : > { %1278 = vperm.xlu1 %2706, %v460_v28   ;;  %2624 = vmatpush3.bf16.msra.mxu1 %v2767_v1  ;;  %v560_v28 = vrot.slane %v3316_v24, %v559_v20 }
  0x36   : > { %2718 = vset.pattern.permute.xlu0 %v3051_v13  ;;  %2625 = vmatprep.subr.bf16.mxu1 %v2768_v2 }
  0x37   : > { %1156 = vperm.xlu0 %2718, %v442_v6   ;;  %v325_v6 = vld [vmem:[%s3115_s27 + $0x50] sm:$0xff]  ;;  %v3329_v34 = vrot.slane %v560_v28, %v559_v20 }
  0x38   : > { %v468_v18 = vmul.f32 -0.2, %v325_v6 }
  0x39   : > { %2707 = vset.pattern.permute.xlu1 %v3050_v0  ;;  %2626 = vmatpush3.bf16.msra.mxu1 %v2769_v4  ;;  %v3359_v4 = vld [vmem:[%s3353_s9] sm:$0xff] }
  0x3a   : > { %498 = vperm.xlu1 %2707, %v446_v45   ;;  %v342_v9 = vunpack.c.1.s8 %v3359_v4 }
  0x3b   : > { %1274 = vperm.xlu0 %2718, %v3125_v7   ;;  %v452_v7 = vsub.f32 0.0, %v325_v6  ;;  %v3364_v6 = vld [vmem:[%s3353_s9 + $0x8] sm:$0xff] }
  0x3e   : > { %629 = vperm.xlu1 %2707, %v462_v48  }
  0x3f   : > { %1164 = vperm.xlu0 %2718, %v444_v23   ;;  %v563_v23 = vsub.s32 2, %v3307_v19 }
  0x41   : > { %v564_v29 = vrot.slane %v3316_v24, %v563_v23 }
  0x42   : > { %634 = vperm.xlu1 %2707, %v463_v51  }
  0x43   : > { %1282 = vperm.xlu0 %2718, %v461_v33   ;;  %v3331_v35 = vrot.slane %v564_v29, %v559_v20 }
  0x46   : > { %2708 = vset.pattern.permute.xlu1 %v3051_v13 }
  0x47   : > { %1176 = vperm.xlu1 %2708, %v447_v14   ;;  %1172 = vperm.xlu0 %2718, %v446_v45   ;;  %v3293_v14 = vld [vmem:[%s3115_s27 + $0x70] sm:$0xff] }
  0x48   : > { %v456_v15 = vsub.f32 0.0, %v3293_v14 }
  0x4b   : > { %1286 = vperm.xlu1 %2708, %v462_v48   ;;  %1290 = vperm.xlu0 %2718, %v463_v51  }
  0x4f   : > { %2709 = vset.pattern.permute.xlu1 %v3050_v0  ;;  %1180 = vperm.xlu0 %2718, %v448_v58  }
  0x50   : > { %508 = vperm.xlu1 %2709, %v448_v58  }
  0x53   : > { %1298 = vperm.xlu0 %2718, %v465_v60  }
  0x54   : > { %639 = vperm.xlu1 %2709, %v464_v61  }
  0x57   : > { %1188 = vperm.xlu0 %2718, %v450_v3  }
  0x58   : > { %644 = vperm.xlu1 %2709, %v465_v60  }
  0x5b   : > { %1306 = vperm.xlu0 %2718, %v467_v5  }
  0x5c   : > { %2710 = vset.pattern.permute.xlu1 %v3051_v13 }
  0x5d   : > { %1184 = vperm.xlu1 %2710, %v449_v22   ;;  %v3312_v22 = vmul.f32 -0.2, %v331_v21 }
  0x5f   : > { %1196 = vperm.xlu0 %2718, %v452_v7   ;;  %v691_v25 = vrot.slane %v3312_v22, %v559_v20 }
  0x61   : > { %1294 = vperm.xlu1 %2710, %v464_v61   ;;  %v3325_v30 = vrot.slane %v691_v25, %v559_v20 }
  0x63   : > { %1314 = vperm.xlu0 %2718, %v469_v8  }
  0x65   : > { %2711 = vset.pattern.permute.xlu1 %v3050_v0 }
  0x66   : > { %518 = vperm.xlu1 %2711, %v450_v3  }
  0x67   : > { %1204 = vperm.xlu0 %2718, %v454_v10  }
  0x6a   : > { %649 = vperm.xlu1 %2711, %v466_v11  }
  0x6b   : > { %1322 = vperm.xlu0 %2718, %v3290_v12  }
  0x6e   : > { %654 = vperm.xlu1 %2711, %v467_v5  }
  0x6f   : > { %1212 = vperm.xlu0 %2718, %v456_v15  }
  0x72   : > { %2712 = vset.pattern.permute.xlu1 %v3051_v13 }
  0x73   : > { %1192 = vperm.xlu1 %2712, %v451_v26   ;;  %1330 = vperm.xlu0 %2718, %v3300_v16   ;;  %v695_v26 = vrot.slane %v3312_v22, %v563_v23  ;;  %v3380_v23 = vcvt.s32.f32 %v342_v9 }
  0x75   : > { %v3327_v33 = vrot.slane %v695_v26, %v559_v20 }
  0x77   : > { %1302 = vperm.xlu1 %2712, %v466_v11   ;;  %v341_v11 = vunpack.c.0.s8 %v3364_v6 }
  0x7b   : > { %2713 = vset.pattern.permute.xlu1 %v3050_v0 }
  0x7c   : > { %528 = vperm.xlu1 %2713, %v452_v7  }
  0x80   : > { %659 = vperm.xlu1 %2713, %v468_v18  }
  0x84   : > { %664 = vperm.xlu1 %2713, %v469_v8   ;;  %v340_v8 = vunpack.c.0.s8 %v3359_v4 }
  0x86   : > { %v3378_v20 = vcvt.s32.f32 %v340_v8 }
  0x88   : > { %2714 = vset.pattern.permute.xlu1 %v3051_v13 }
  0x89   : > { %1200 = vperm.xlu1 %2714, %v453_v31  }
  0x8d   : > { %1310 = vperm.xlu1 %2714, %v468_v18   ;;  %v610_v38 = vpop.permute.xlu1 %609  ;;  %v479_v39 = vpop.permute.xlu0 %478 }
  0x8e   : > { %v706_v41 = vadd.f32 %v3325_v30, %v610_v38  ;;  %v707_v42 = vadd.f32 %v3327_v33, %v610_v38  ;;  %v575_v43 = vadd.f32 %v3329_v34, %v479_v39  ;;  %v576_v27 = vadd.f32 %v3331_v35, %v479_v39 }
  0x90   : > { %v738_v31 = vmin.f32 %v575_v43, %v706_v41  ;;  %v739_v44 = vmin.f32 %v576_v27, %v707_v42  ;;  %v3386_v42 = vmul.f32 -0.2, %v3293_v14  ;;  %v3388_v43 = vcvt.s32.f32 %v341_v11 }
  0x91   : > { %2715 = vset.pattern.permute.xlu1 %v3050_v0  ;;  %v615_v45 = vpop.permute.xlu1 %614  ;;  %v484_v46 = vpop.permute.xlu0 %483 }
  0x92   : > { %v770_v48 = vmin.f32 %v738_v31, 80.0  ;;  %v771_v49 = vmin.f32 %v739_v44, 80.0  ;;  %v708_v50 = vadd.f32 %v3325_v30, %v615_v45  ;;  %v709_v51 = vadd.f32 %v3327_v33, %v615_v45  ;;  %538 = vperm.xlu1 %2715, %v454_v10  }
  0x93   : > { %v577_v52 = vadd.f32 %v3329_v34, %v484_v46  ;;  %v578_v53 = vadd.f32 %v3331_v35, %v484_v46 }
  0x94   : > { %v802_v54 = vmul.f32 1.442695, %v770_v48  ;;  %v804_v58 = vmul.f32 1.442695, %v771_v49  ;;  %v1225_v49 = vsub.s32 3, %v3307_v19 }
  0x95   : > { %v740_v55 = vmin.f32 %v577_v52, %v708_v50  ;;  %v741_v56 = vmin.f32 %v578_v53, %v709_v51  ;;  %v494_v57 = vpop.permute.xlu0 %493 }
  0x96   : > { %669 = vperm.xlu1 %2715, %v470_v47   ;;  %v3343_v59 = vpop.permute.xlu1 %1160  ;;  %2770 = vpow2.f32 %v802_v54  ;;  %v581_v26 = vadd.f32 %v3329_v34, %v494_v57  ;;  %v582_v28 = vadd.f32 %v3331_v35, %v494_v57  ;;  %v1340_v14 = vrot.slane %v3312_v22, %v1225_v49 }
  0x97   : > { %v772_v60 = vmin.f32 %v740_v55, 80.0  ;;  %v773_v61 = vmin.f32 %v741_v56, 80.0  ;;  %2772 = vpow2.f32 %v804_v58 }
  0x99   : > { %v806_v62 = vmul.f32 1.442695, %v772_v60  ;;  %v808_v63 = vmul.f32 1.442695, %v773_v61  ;;  %v3345_v1 = vpop.permute.xlu0 %503 }
  0x9a   : > { %674 = vperm.xlu1 %2715, %v3290_v12   ;;  %v3348_v2 = vpop.permute.xlu1 %1270  ;;  %v343_v12 = vunpack.c.1.s8 %v3364_v6 }
  0x9b   : > { %2774 = vpow2.f32 %v806_v62 }
  0x9c   : > { %2776 = vpow2.f32 %v808_v63  ;;  %v3390_v27 = vcvt.s32.f32 %v343_v12  ;;  %v1226_v63 = vrot.slane %v3316_v24, %v1225_v49 }
  0x9d   : > { %v3355_v3 = vpop.permute.xlu0 %513 }
  0x9e   : > { %2716 = vset.pattern.permute.xlu1 %v3051_v13 }
  0x9f   : > { %1208 = vperm.xlu1 %2716, %v455_v36   ;;  %v489_v5 = vpop.permute.xlu1 %488 }
  0xa0   : > { %v579_v17 = vadd.f32 %v3329_v34, %v489_v5  ;;  %v580_v32 = vadd.f32 %v3331_v35, %v489_v5 }
  0xa1   : > { %v3366_v7 = vpop.permute.xlu0 %523 }
  0xa3   : > { %1318 = vperm.xlu1 %2716, %v470_v47   ;;  %v620_v10 = vpop.permute.xlu1 %619  ;;  %v2771_v25 = vpop.eup %2770 }
  0xa4   : > { %v710_v36 = vadd.f32 %v3325_v30, %v620_v10  ;;  %v711_v18 = vadd.f32 %v3327_v33, %v620_v10  ;;  %v2773_v39 = vpop.eup %2772  ;;  %v866_v51 = vmul.f32 %v2771_v25, %v3378_v20 }
  0xa5   : > { %v3376_v21 = vpop.permute.xlu0 %533 }
  0xa6   : > { %v742_v29 = vmin.f32 %v579_v17, %v710_v36  ;;  %v743_v38 = vmin.f32 %v580_v32, %v711_v18  ;;  %v345_v17 = vunpack.c.2.s8 %v3364_v6  ;;  %v347_v32 = vunpack.c.3.s8 %v3364_v6 }
  0xa7   : > { %2717 = vset.pattern.permute.xlu1 %v3050_v0  ;;  %v625_v41 = vpop.permute.xlu1 %624  ;;  %v1221_v0 = vsub.s32 1, %v3307_v19  ;;  %v346_v36 = vunpack.c.3.s8 %v3359_v4 }
  0xa8   : > { %v2775_v31 = vpop.eup %2774  ;;  %v774_v44 = vmin.f32 %v742_v29, 80.0  ;;  %v775_v45 = vmin.f32 %v743_v38, 80.0  ;;  %v712_v46 = vadd.f32 %v3325_v30, %v625_v41  ;;  %v713_v47 = vadd.f32 %v3327_v33, %v625_v41  ;;  %548 = vperm.xlu1 %2717, %v456_v15  }
  0xa9   : > { %v2777_v48 = vpop.eup %2776  ;;  %v3398_v50 = vpop.permute.xlu0 %543  ;;  %v868_v52 = vmul.f32 %v2775_v31, %v3380_v23  ;;  %v1336_v57 = vrot.slane %v3312_v22, %v1221_v0  ;;  %v867_v15 = vmul.f32 %v2773_v39, %v3388_v43  ;;  %v1222_v62 = vrot.slane %v3316_v24, %v1221_v0 }
  0xaa   : > { %v810_v53 = vmul.f32 1.442695, %v774_v44  ;;  %v812_v54 = vmul.f32 1.442695, %v775_v45  ;;  %v744_v55 = vmin.f32 %v581_v26, %v712_v46  ;;  %v745_v56 = vmin.f32 %v582_v28, %v713_v47 }
  0xab   : > { %v869_v58 = vmul.f32 %v2777_v48, %v3390_v27  ;;  %v898_v61 = vpack.c.bf16 %v868_v52, %v866_v51  ;;  %v3411_v10 = vrot.slane %v1336_v57, %v1221_v0  ;;  %v3413_v11 = vrot.slane %v1340_v14, %v1221_v0 }
  0xac   : > { %2778 = vpow2.f32 %v810_v53  ;;  %v777_v19 = vmin.f32 %v745_v56, 80.0  ;;  %679 = vperm.xlu1 %2717, %v3386_v42   ;;  %v1169_v60 = vpop.permute.xlu1 %1168  ;;  %v776_v9 = vmin.f32 %v744_v55, 80.0  ;;  %v344_v24 = vunpack.c.2.s8 %v3359_v4 }
  0xad   : > { %2780 = vpow2.f32 %v812_v54  ;;  %v899_v5 = vpack.c.bf16 %v869_v58, %v867_v15  ;;  %v3409_v8 = vpop.permute.xlu0 %553  ;;  %v3420_v18 = vrot.slane %v1222_v62, %v1221_v0  ;;  %v3422_v25 = vrot.slane %v1226_v63, %v1221_v0 }
  0xae   : > { %v816_v22 = vmul.f32 1.442695, %v777_v19  ;;  %v814_v26 = vmul.f32 1.442695, %v776_v9  ;;  %v1351_v29 = vadd.f32 %v3411_v10, %v3348_v2  ;;  %v3431_v4 = vcvt.s32.f32 %v345_v17 }
  0xaf   : > { %1058 = vmatprep.mubr.bf16.mxu0 %v899_v5  ;;  %v3433_v39 = vcvt.s32.f32 %v347_v32  ;;  %v3435_v41 = vcvt.s32.f32 %v344_v24  ;;  %v3437_v31 = vcvt.s32.f32 %v346_v36  ;;  %v1239_v44 = vadd.f32 %v3420_v18, %v3343_v59 }
  0xb0   : > { %1059 = vmatmul.mubr.bf16.vlgmr.msra.gmra.mxu0 %v898_v61  ;;  %684 = vperm.xlu1 %2717, %v3300_v16   ;;  %v1279_v12 = vpop.permute.xlu1 %1278  ;;  %2782 = vpow2.f32 %v816_v22  ;;  %v1352_v16 = vadd.f32 %v3413_v11, %v3348_v2  ;;  %v1240_v2 = vadd.f32 %v3422_v25, %v3343_v59  ;;  %v3447_v47 = vadd.f32 %v3329_v34, %v3345_v1 }
  0xb1   : > { %v3451_v48 = vadd.f32 %v3331_v35, %v3345_v1  ;;  %2784 = vpow2.f32 %v814_v26  ;;  %v3454_v0 = vadd.f32 %v3420_v18, %v1169_v60  ;;  %v1355_v53 = vadd.f32 %v3411_v10, %v1279_v12 }
  0xb2   : > { %v1157_v28 = vpop.permute.xlu0 %1156  ;;  %v1356_v54 = vadd.f32 %v3413_v11, %v1279_v12 }
  0xb3   : > { %v1237_v38 = vadd.f32 %v3420_v18, %v1157_v28  ;;  %v1238_v6 = vadd.f32 %v3422_v25, %v1157_v28 }
  0xb4   : > { %2719 = vset.pattern.permute.xlu1 %v3051_v13 }
  0xb5   : > { %v1383_v45 = vmin.f32 %v1237_v38, %v1351_v29  ;;  %v1384_v46 = vmin.f32 %v1238_v6, %v1352_v16  ;;  %1216 = vperm.xlu1 %2719, %v457_v40   ;;  %v499_v13 = vpop.permute.xlu1 %498  ;;  %v3459_v40 = vadd.f32 %v3422_v25, %v1169_v60 }
  0xb6   : > { %v1275_v49 = vpop.permute.xlu0 %1274  ;;  %v583_v1 = vadd.f32 %v3329_v34, %v499_v13  ;;  %v584_v61 = vadd.f32 %v3331_v35, %v499_v13 }
  0xb7   : > { %v1415_v59 = vmin.f32 %v1383_v45, 80.0  ;;  %v1416_v51 = vmin.f32 %v1384_v46, 80.0  ;;  %v1353_v52 = vadd.f32 %v3411_v10, %v1275_v49  ;;  %v1354_v37 = vadd.f32 %v3413_v11, %v1275_v49 }
  0xb9   : > { %v2779_v55 = vpop.eup %2778  ;;  %v1447_v56 = vmul.f32 1.442695, %v1415_v59  ;;  %v1449_v57 = vmul.f32 1.442695, %v1416_v51  ;;  %v1385_v14 = vmin.f32 %v1239_v44, %v1353_v52  ;;  %v1386_v15 = vmin.f32 %v1240_v2, %v1354_v37  ;;  %1326 = vperm.xlu1 %2719, %v3386_v42   ;;  %v630_v58 = vpop.permute.xlu1 %629 }
  0xba   : > { %v2781_v19 = vpop.eup %2780  ;;  %v714_v60 = vadd.f32 %v3325_v30, %v630_v58  ;;  %v715_v62 = vadd.f32 %v3327_v33, %v630_v58  ;;  %v1165_v63 = vpop.permute.xlu0 %1164  ;;  %v3469_v5 = vmul.f32 %v2779_v55, %v3435_v41 }
  0xbb   : > { %2786 = vpow2.f32 %v1447_v56  ;;  %v1417_v9 = vmin.f32 %v1385_v14, 80.0  ;;  %v1418_v22 = vmin.f32 %v1386_v15, 80.0  ;;  %v1241_v12 = vadd.f32 %v3420_v18, %v1165_v63 }
  0xbc   : > { %2788 = vpow2.f32 %v1449_v57  ;;  %v746_v17 = vmin.f32 %v583_v1, %v714_v60  ;;  %v747_v42 = vmin.f32 %v584_v61, %v715_v62  ;;  %v1242_v32 = vadd.f32 %v3422_v25, %v1165_v63 }
  0xbd   : > { %v1451_v24 = vmul.f32 1.442695, %v1417_v9  ;;  %v1453_v36 = vmul.f32 1.442695, %v1418_v22  ;;  %v1387_v26 = vmin.f32 %v1241_v12, %v1355_v53  ;;  %v635_v28 = vpop.permute.xlu1 %634  ;;  %v871_v29 = vmul.f32 %v2781_v19, %v3431_v4  ;;  %v2783_v45 = vpop.eup %2782 }
  0xbe   : > { %v778_v16 = vmin.f32 %v746_v17, 80.0  ;;  %v779_v38 = vmin.f32 %v747_v42, 80.0  ;;  %v1388_v6 = vmin.f32 %v1242_v32, %v1356_v54  ;;  %v716_v44 = vadd.f32 %v3325_v30, %v635_v28  ;;  %v1283_v2 = vpop.permute.xlu0 %1282  ;;  %v2785_v58 = vpop.eup %2784 }
  0xbf   : > { %2790 = vpow2.f32 %v1451_v24  ;;  %v1419_v46 = vmin.f32 %v1387_v26, 80.0  ;;  %v717_v13 = vadd.f32 %v3327_v33, %v635_v28  ;;  %v1357_v49 = vadd.f32 %v3411_v10, %v1283_v2 }
  0xc0   : > { %2792 = vpow2.f32 %v1453_v36  ;;  %v818_v59 = vmul.f32 1.442695, %v778_v16  ;;  %v820_v51 = vmul.f32 1.442695, %v779_v38  ;;  %v1420_v52 = vmin.f32 %v1388_v6, 80.0  ;;  %v3493_v6 = vld [vmem:[%s3353_s9 + $0x18] sm:$0xff] }
  0xc1   : > { %v1455_v37 = vmul.f32 1.442695, %v1419_v46  ;;  %v748_v53 = vmin.f32 %v3447_v47, %v716_v44  ;;  %v749_v1 = vmin.f32 %v3451_v48, %v717_v13  ;;  %v1358_v54 = vadd.f32 %v3413_v11, %v1283_v2  ;;  %v3496_v44 = vld [vmem:[%s3353_s9 + $0x10] sm:$0xff] }
  0xc2   : > { %2794 = vpow2.f32 %v818_v59  ;;  %v1457_v55 = vmul.f32 1.442695, %v1420_v52  ;;  %v1389_v56 = vmin.f32 %v3454_v0, %v1357_v49  ;;  %v1177_v57 = vpop.permute.xlu1 %1176  ;;  %v873_v14 = vmul.f32 %v2783_v45, %v3433_v39  ;;  %v1173_v15 = vpop.permute.xlu0 %1172 }
  0xc3   : > { %2796 = vpow2.f32 %v820_v51  ;;  %v780_v19 = vmin.f32 %v748_v53, 80.0  ;;  %v781_v61 = vmin.f32 %v749_v1, 80.0  ;;  %v1390_v60 = vmin.f32 %v3459_v40, %v1358_v54 }
  0xc4   : > { %2798 = vpow2.f32 %v1455_v37  ;;  %v1421_v47 = vmin.f32 %v1389_v56, 80.0  ;;  %v1247_v48 = vadd.f32 %v3420_v18, %v1177_v57  ;;  %v1248_v62 = vadd.f32 %v3422_v25, %v1177_v57 }
  0xc5   : > { %2800 = vpow2.f32 %v1457_v55  ;;  %v822_v63 = vmul.f32 1.442695, %v780_v19  ;;  %v824_v9 = vmul.f32 1.442695, %v781_v61  ;;  %v1422_v0 = vmin.f32 %v1390_v60, 80.0 }
  0xc6   : > { %v1459_v22 = vmul.f32 1.442695, %v1421_v47  ;;  %v901_v12 = vpack.c.bf16 %v873_v14, %v871_v29  ;;  %v1245_v17 = vadd.f32 %v3420_v18, %v1173_v15  ;;  %v1246_v42 = vadd.f32 %v3422_v25, %v1173_v15  ;;  %v1287_v32 = vpop.permute.xlu1 %1286  ;;  %v1291_v40 = vpop.permute.xlu0 %1290 }
  0xc7   : > { %2802 = vpow2.f32 %v822_v63  ;;  %v1461_v24 = vmul.f32 1.442695, %v1422_v0  ;;  %v872_v36 = vmul.f32 %v2785_v58, %v3437_v31  ;;  %v1359_v26 = vadd.f32 %v3411_v10, %v1287_v32 }
  0xc8   : > { %v2787_v28 = vpop.eup %2786  ;;  %2804 = vpow2.f32 %v824_v9  ;;  %1066 = vmatprep.mubr.bf16.mxu0 %v901_v12  ;;  %v1360_v16 = vadd.f32 %v3413_v11, %v1287_v32  ;;  %v1361_v29 = vadd.f32 %v3411_v10, %v1291_v40  ;;  %v1362_v38 = vadd.f32 %v3413_v11, %v1291_v40 }
  0xc9   : > { %v2789_v2 = vpop.eup %2788  ;;  %2806 = vpow2.f32 %v1459_v22  ;;  %v900_v45 = vpack.c.bf16 %v872_v36, %v3469_v5  ;;  %v1391_v46 = vmin.f32 %v1245_v17, %v1359_v26  ;;  %v349_v37 = vunpack.c.0.s8 %v3493_v6 }
  0xca   : > { %2808 = vpow2.f32 %v1461_v24  ;;  %v1392_v13 = vmin.f32 %v1246_v42, %v1360_v16  ;;  %v1393_v49 = vmin.f32 %v1247_v48, %v1361_v29  ;;  %v1394_v59 = vmin.f32 %v1248_v62, %v1362_v38  ;;  %v3502_v14 = vpop.permute.xlu0 %1180 }
  0xcb   : > { %1067 = vmatmul.mubr.bf16.gmra.mxu0 %v900_v45  ;;  %v1423_v51 = vmin.f32 %v1391_v46, 80.0  ;;  %v509_v52 = vpop.permute.xlu1 %508  ;;  %v351_v53 = vunpack.c.1.s8 %v3493_v6  ;;  %v348_v1 = vunpack.c.0.s8 %v3496_v44  ;;  %v350_v5 = vunpack.c.1.s8 %v3496_v44 }
  0xcc   : > { %v2791_v54 = vpop.eup %2790  ;;  %v1424_v55 = vmin.f32 %v1392_v13, 80.0  ;;  %v1425_v56 = vmin.f32 %v1393_v49, 80.0  ;;  %v1426_v57 = vmin.f32 %v1394_v59, 80.0  ;;  %v1512_v19 = vmul.f32 %v2789_v2, %v3388_v43 }
  0xcd   : > { %v2793_v15 = vpop.eup %2792  ;;  %v1463_v58 = vmul.f32 1.442695, %v1423_v51  ;;  %v1511_v61 = vmul.f32 %v2787_v28, %v3378_v20  ;;  %v1513_v60 = vmul.f32 %v2791_v54, %v3380_v23  ;;  %v587_v0 = vadd.f32 %v3329_v34, %v509_v52 }
  0xce   : > { %v1465_v47 = vmul.f32 1.442695, %v1424_v55  ;;  %v1467_v48 = vmul.f32 1.442695, %v1425_v56  ;;  %v1469_v62 = vmul.f32 1.442695, %v1426_v57  ;;  %v1514_v63 = vmul.f32 %v2793_v15, %v3390_v27  ;;  %v1299_v16 = vpop.permute.xlu0 %1298 }
  0xcf   : > { %v2795_v9 = vpop.eup %2794  ;;  %2810 = vpow2.f32 %v1463_v58  ;;  %v588_v22 = vadd.f32 %v3331_v35, %v509_v52  ;;  %v640_v12 = vpop.permute.xlu1 %639  ;;  %v1543_v17 = vpack.c.bf16 %v1513_v60, %v1511_v61  ;;  %v3513_v40 = vcvt.s32.f32 %v349_v37 }
  0xd0   : > { %v2797_v42 = vpop.eup %2796  ;;  %2812 = vpow2.f32 %v1465_v47  ;;  %v718_v43 = vadd.f32 %v3325_v30, %v640_v12  ;;  %v719_v20 = vadd.f32 %v3327_v33, %v640_v12  ;;  %v1544_v23 = vpack.c.bf16 %v1514_v63, %v1512_v19 }
  0xd1   : > { %v2799_v32 = vpop.eup %2798  ;;  %2814 = vpow2.f32 %v1467_v48  ;;  %v3515_v27 = vcvt.s32.f32 %v348_v1  ;;  %v3517_v24 = vcvt.s32.f32 %v350_v5  ;;  %v589_v29 = vadd.f32 %v3329_v34, %v3355_v3 }
  0xd2   : > { %v2801_v36 = vpop.eup %2800  ;;  %2816 = vpow2.f32 %v1469_v62  ;;  %v750_v26 = vmin.f32 %v587_v0, %v718_v43  ;;  %v751_v28 = vmin.f32 %v588_v22, %v719_v20  ;;  %1671 = vmatprep.mubr.bf16.mxu1 %v1544_v23  ;;  %v590_v38 = vadd.f32 %v3331_v35, %v3355_v3 }
  0xd3   : > { %1672 = vmatmul.mubr.bf16.vlgmr.msra.gmra.mxu1 %v1543_v17  ;;  %v645_v2 = vpop.permute.xlu1 %644  ;;  %v1365_v45 = vadd.f32 %v3411_v10, %v1299_v16  ;;  %v383_v46 = vcvt.s32.f32 %v351_v53  ;;  %v1366_v1 = vadd.f32 %v3413_v11, %v1299_v16  ;;  %v875_v54 = vmul.f32 %v2797_v42, %v3513_v40 }
  0xd4   : > { %v2803_v13 = vpop.eup %2802  ;;  %v782_v49 = vmin.f32 %v750_v26, 80.0  ;;  %v783_v59 = vmin.f32 %v751_v28, 80.0  ;;  %v720_v51 = vadd.f32 %v3325_v30, %v645_v2  ;;  %v721_v52 = vadd.f32 %v3327_v33, %v645_v2 }
  0xd5   : > { %v2805_v37 = vpop.eup %2804  ;;  %v874_v55 = vmul.f32 %v2795_v9, %v3515_v27  ;;  %v876_v3 = vmul.f32 %v2803_v13, %v3517_v24  ;;  %v1515_v15 = vmul.f32 %v2799_v32, %v3435_v41  ;;  %v1516_v60 = vmul.f32 %v2801_v36, %v3431_v4 }
  0xd6   : > { %v2807_v56 = vpop.eup %2806  ;;  %v826_v57 = vmul.f32 1.442695, %v782_v49  ;;  %v752_v5 = vmin.f32 %v589_v29, %v720_v51  ;;  %v753_v53 = vmin.f32 %v590_v38, %v721_v52  ;;  %v828_v19 = vmul.f32 1.442695, %v783_v59 }
  0xd7   : > { %v2809_v58 = vpop.eup %2808  ;;  %v877_v61 = vmul.f32 %v2805_v37, %v383_v46  ;;  %v1517_v47 = vmul.f32 %v2807_v56, %v3437_v31  ;;  %v902_v0 = vpack.c.bf16 %v876_v3, %v874_v55  ;;  %v1249_v4 = vadd.f32 %v3420_v18, %v3502_v14 }
  0xd8   : > { %v784_v48 = vmin.f32 %v752_v5, 80.0  ;;  %v785_v62 = vmin.f32 %v753_v53, 80.0  ;;  %v1185_v63 = vpop.permute.xlu1 %1184  ;;  %v1518_v9 = vmul.f32 %v2809_v58, %v3433_v39  ;;  %2818 = vpow2.f32 %v826_v57  ;;  %v1189_v58 = vpop.permute.xlu0 %1188 }
  0xd9   : > { %v1251_v22 = vadd.f32 %v3420_v18, %v1185_v63  ;;  %v1252_v12 = vadd.f32 %v3422_v25, %v1185_v63  ;;  %v903_v17 = vpack.c.bf16 %v877_v61, %v875_v54  ;;  %v1545_v20 = vpack.c.bf16 %v1517_v47, %v1515_v15 }
  0xda   : > { %v830_v41 = vmul.f32 1.442695, %v784_v48  ;;  %v832_v42 = vmul.f32 1.442695, %v785_v62  ;;  %v1546_v43 = vpack.c.bf16 %v1518_v9, %v1516_v60  ;;  %2820 = vpow2.f32 %v828_v19 }
  0xdb   : > { %v1397_v31 = vmin.f32 %v1251_v22, %v1365_v45  ;;  %v1398_v23 = vmin.f32 %v1252_v12, %v1366_v1  ;;  %1074 = vmatprep.mubr.bf16.mxu0 %v903_v17  ;;  %v1250_v39 = vadd.f32 %v3422_v25, %v3502_v14  ;;  %v353_v3 = vunpack.c.2.s8 %v3493_v6 }
  0xdc   : > { %v2811_v32 = vpop.eup %2810  ;;  %2822 = vpow2.f32 %v830_v41  ;;  %1075 = vmatmul.mubr.bf16.gmra.mxu0 %v902_v0  ;;  %1679 = vmatprep.mubr.bf16.mxu1 %v1546_v43  ;;  %v1295_v36 = vpop.permute.xlu1 %1294  ;;  %v352_v5 = vunpack.c.2.s8 %v3496_v44  ;;  %v355_v15 = vunpack.c.3.s8 %v3493_v6  ;;  %v593_v17 = vadd.f32 %v3329_v34, %v3366_v7 }
  0xdd   : > { %v2813_v26 = vpop.eup %2812  ;;  %2824 = vpow2.f32 %v832_v42  ;;  %v1429_v28 = vmin.f32 %v1397_v31, 80.0  ;;  %v1430_v16 = vmin.f32 %v1398_v23, 80.0  ;;  %1680 = vmatmul.mubr.bf16.gmra.mxu1 %v1545_v20  ;;  %v1363_v29 = vadd.f32 %v3411_v10, %v1295_v36 }
  0xde   : > { %v2815_v38 = vpop.eup %2814  ;;  %v1364_v2 = vadd.f32 %v3413_v11, %v1295_v36  ;;  %v1519_v45 = vmul.f32 %v2811_v32, %v3515_v27  ;;  %v1520_v14 = vmul.f32 %v2813_v26, %v3513_v40  ;;  %v354_v40 = vunpack.c.3.s8 %v3496_v44  ;;  %v1307_v32 = vpop.permute.xlu0 %1306 }
  0xdf   : > { %v2817_v13 = vpop.eup %2816  ;;  %v1477_v49 = vmul.f32 1.442695, %v1430_v16  ;;  %v1395_v59 = vmin.f32 %v1249_v4, %v1363_v29  ;;  %v1521_v51 = vmul.f32 %v2815_v38, %v3517_v24  ;;  %v1475_v52 = vmul.f32 1.442695, %v1429_v28 }
  0xe0   : > { %v1396_v37 = vmin.f32 %v1250_v39, %v1364_v2  ;;  %v1522_v1 = vmul.f32 %v2817_v13, %v383_v46  ;;  %v385_v6 = vcvt.s32.f32 %v353_v3  ;;  %v387_v62 = vcvt.s32.f32 %v355_v15 }
  0xe1   : > { %v1427_v54 = vmin.f32 %v1395_v59, 80.0  ;;  %v519_v55 = vpop.permute.xlu1 %518  ;;  %2826 = vpow2.f32 %v1477_v49  ;;  %v1547_v57 = vpack.c.bf16 %v1521_v51, %v1519_v45  ;;  %v384_v44 = vcvt.s32.f32 %v352_v5 }
  0xe2   : > { %v1428_v56 = vmin.f32 %v1396_v37, 80.0  ;;  %v1548_v53 = vpack.c.bf16 %v1522_v1, %v1520_v14  ;;  %2828 = vpow2.f32 %v1475_v52  ;;  %v591_v46 = vadd.f32 %v3329_v34, %v519_v55 }
  0xe3   : > { %v1471_v27 = vmul.f32 1.442695, %v1427_v54  ;;  %v592_v60 = vadd.f32 %v3331_v35, %v519_v55  ;;  %v386_v63 = vcvt.s32.f32 %v354_v40  ;;  %v594_v41 = vadd.f32 %v3331_v35, %v3366_v7 }
  0xe4   : > { %v1473_v24 = vmul.f32 1.442695, %v1428_v56  ;;  %1687 = vmatprep.mubr.bf16.mxu1 %v1548_v53  ;;  %v1369_v16 = vadd.f32 %v3411_v10, %v1307_v32  ;;  %v1370_v7 = vadd.f32 %v3413_v11, %v1307_v32  ;;  %v1253_v56 = vadd.f32 %v3420_v18, %v1189_v58 }
  0xe5   : > { %2830 = vpow2.f32 %v1471_v27  ;;  %v650_v19 = vpop.permute.xlu1 %649  ;;  %v2819_v61 = vpop.eup %2818  ;;  %1688 = vmatmul.mubr.bf16.gmra.mxu1 %v1547_v57  ;;  %v1254_v53 = vadd.f32 %v3422_v25, %v1189_v58 }
  0xe6   : > { %2832 = vpow2.f32 %v1473_v24  ;;  %v722_v47 = vadd.f32 %v3325_v30, %v650_v19  ;;  %v723_v48 = vadd.f32 %v3327_v33, %v650_v19  ;;  %v878_v26 = vmul.f32 %v2819_v61, %v384_v44 }
  0xe7   : > { %v2821_v0 = vpop.eup %2820 }
  0xe8   : > { %v754_v9 = vmin.f32 %v591_v46, %v722_v47  ;;  %v755_v22 = vmin.f32 %v592_v60, %v723_v48  ;;  %v879_v39 = vmul.f32 %v2821_v0, %v385_v6 }
  0xe9   : > { %v2823_v12 = vpop.eup %2822  ;;  %v655_v42 = vpop.permute.xlu1 %654 }
  0xea   : > { %v2825_v43 = vpop.eup %2824  ;;  %v786_v20 = vmin.f32 %v754_v9, 80.0  ;;  %v787_v4 = vmin.f32 %v755_v22, 80.0  ;;  %v724_v31 = vadd.f32 %v3325_v30, %v655_v42  ;;  %v725_v23 = vadd.f32 %v3327_v33, %v655_v42  ;;  %v3571_v42 = vld [vmem:[%s3353_s9 + $0x20] sm:$0xff] }
  0xeb   : > { %v881_v36 = vmul.f32 %v2825_v43, %v387_v62  ;;  %v880_v28 = vmul.f32 %v2823_v12, %v386_v63  ;;  %v3568_v12 = vld [vmem:[%s3353_s9 + $0x28] sm:$0xff] }
  0xec   : > { %v834_v29 = vmul.f32 1.442695, %v786_v20  ;;  %v756_v38 = vmin.f32 %v593_v17, %v724_v31  ;;  %v757_v2 = vmin.f32 %v594_v41, %v725_v23  ;;  %v836_v45 = vmul.f32 1.442695, %v787_v4 }
  0xed   : > { %v905_v13 = vpack.c.bf16 %v881_v36, %v879_v39  ;;  %v904_v49 = vpack.c.bf16 %v880_v28, %v878_v26  ;;  %v357_v31 = vunpack.c.0.s8 %v3568_v12  ;;  %v358_v23 = vunpack.c.1.s8 %v3571_v42 }
  0xee   : > { %v788_v59 = vmin.f32 %v756_v38, 80.0  ;;  %v789_v14 = vmin.f32 %v757_v2, 80.0  ;;  %v1193_v51 = vpop.permute.xlu1 %1192  ;;  %v2827_v52 = vpop.eup %2826  ;;  %2834 = vpow2.f32 %v834_v29  ;;  %v3052_v29 = vmov 16  }
  0xef   : > { %v1255_v37 = vadd.f32 %v3420_v18, %v1193_v51  ;;  %v1256_v1 = vadd.f32 %v3422_v25, %v1193_v51  ;;  %1082 = vmatprep.mubr.bf16.mxu0 %v905_v13  ;;  %v2829_v3 = vpop.eup %2828  ;;  %2836 = vpow2.f32 %v836_v45  ;;  %v1526_v40 = vmul.f32 %v2827_v52, %v387_v62  ;;  %2720 = vset.pattern.permute.xlu1 %v3052_v29 }
  0xf0   : > { %v838_v54 = vmul.f32 1.442695, %v788_v59  ;;  %v840_v55 = vmul.f32 1.442695, %v789_v14  ;;  %1083 = vmatmul.mubr.bf16.gmra.mxu0 %v904_v49  ;;  %v1525_v0 = vmul.f32 %v2829_v3, %v386_v63  ;;  %v356_v63 = vunpack.c.0.s8 %v3571_v42  ;;  %2721 = vset.pattern.permute.xlu0 %v3052_v29  ;;  %v1197_v59 = vpop.permute.xlu0 %1196 }
  0xf1   : > { %v1401_v57 = vmin.f32 %v1255_v37, %v1369_v16  ;;  %v1402_v5 = vmin.f32 %v1256_v1, %v1370_v7  ;;  %v389_v2 = vcvt.s32.f32 %v357_v31  ;;  %v390_v13 = vcvt.s32.f32 %v358_v23 }
  0xf2   : > { %v2831_v27 = vpop.eup %2830  ;;  %2838 = vpow2.f32 %v838_v54  ;;  %v1303_v15 = vpop.permute.xlu1 %1302  ;;  %v388_v45 = vcvt.s32.f32 %v356_v63  ;;  %v597_v37 = vadd.f32 %v3329_v34, %v3376_v21  ;;  %v598_v1 = vadd.f32 %v3331_v35, %v3376_v21 }
  0xf3   : > { %v2833_v24 = vpop.eup %2832  ;;  %2840 = vpow2.f32 %v840_v55  ;;  %v1433_v46 = vmin.f32 %v1401_v57, 80.0  ;;  %v1434_v19 = vmin.f32 %v1402_v5, 80.0  ;;  %v1367_v61 = vadd.f32 %v3411_v10, %v1303_v15 }
  0xf4   : > { %v1368_v60 = vadd.f32 %v3413_v11, %v1303_v15  ;;  %v1524_v47 = vmul.f32 %v2833_v24, %v385_v6  ;;  %v1523_v48 = vmul.f32 %v2831_v27, %v384_v44  ;;  %v359_v44 = vunpack.c.1.s8 %v3568_v12 }
  0xf5   : > { %v1483_v9 = vmul.f32 1.442695, %v1433_v46  ;;  %v1399_v22 = vmin.f32 %v1253_v56, %v1367_v61  ;;  %v1485_v58 = vmul.f32 1.442695, %v1434_v19  ;;  %v1257_v63 = vadd.f32 %v3420_v18, %v1197_v59 }
  0xf6   : > { %v1400_v17 = vmin.f32 %v1254_v53, %v1368_v60  ;;  %v1550_v41 = vpack.c.bf16 %v1526_v40, %v1524_v47  ;;  %v1549_v62 = vpack.c.bf16 %v1525_v0, %v1523_v48  ;;  %v391_v7 = vcvt.s32.f32 %v359_v44  ;;  %v1315_v48 = vpop.permute.xlu0 %1314 }
  0xf7   : > { %v1431_v43 = vmin.f32 %v1399_v22, 80.0  ;;  %v529_v20 = vpop.permute.xlu1 %528  ;;  %2842 = vpow2.f32 %v1483_v9  ;;  %v1258_v23 = vadd.f32 %v3422_v25, %v1197_v59 }
  0xf8   : > { %v1432_v4 = vmin.f32 %v1400_v17, 80.0  ;;  %1695 = vmatprep.mubr.bf16.mxu1 %v1550_v41  ;;  %2844 = vpow2.f32 %v1485_v58  ;;  %v595_v39 = vadd.f32 %v3329_v34, %v529_v20  ;;  %v596_v26 = vadd.f32 %v3331_v35, %v529_v20 }
  0xf9   : > { %v1479_v6 = vmul.f32 1.442695, %v1431_v43  ;;  %1696 = vmatmul.mubr.bf16.gmra.mxu1 %v1549_v62  ;;  %v1373_v58 = vadd.f32 %v3411_v10, %v1315_v48  ;;  %v1374_v17 = vadd.f32 %v3413_v11, %v1315_v48 }
  0xfa   : > { %v1481_v32 = vmul.f32 1.442695, %v1432_v4 }
  0xfb   : > { %2846 = vpow2.f32 %v1479_v6  ;;  %v660_v36 = vpop.permute.xlu1 %659  ;;  %v2835_v38 = vpop.eup %2834 }
  0xfc   : > { %2848 = vpow2.f32 %v1481_v32  ;;  %v726_v28 = vadd.f32 %v3325_v30, %v660_v36  ;;  %v727_v16 = vadd.f32 %v3327_v33, %v660_v36  ;;  %v2837_v49 = vpop.eup %2836  ;;  %v882_v15 = vmul.f32 %v2835_v38, %v388_v45 }
  0xfd   : > { %v883_v27 = vmul.f32 %v2837_v49, %v389_v2 }
  0xfe   : > { %v758_v14 = vmin.f32 %v595_v39, %v726_v28  ;;  %v759_v51 = vmin.f32 %v596_v26, %v727_v16 }
  0xff   : > { %v2839_v52 = vpop.eup %2838  ;;  %v665_v54 = vpop.permute.xlu1 %664 }
 0x100   : > { %v2841_v55 = vpop.eup %2840  ;;  %v790_v3 = vmin.f32 %v758_v14, 80.0  ;;  %v791_v56 = vmin.f32 %v759_v51, 80.0  ;;  %v728_v57 = vadd.f32 %v3325_v30, %v665_v54  ;;  %v729_v5 = vadd.f32 %v3327_v33, %v665_v54 }
 0x101   : > { %v885_v53 = vmul.f32 %v2841_v55, %v391_v7  ;;  %v884_v40 = vmul.f32 %v2839_v52, %v390_v13 }
 0x102   : > { %v842_v24 = vmul.f32 1.442695, %v790_v3  ;;  %v760_v46 = vmin.f32 %v597_v37, %v728_v57  ;;  %v761_v19 = vmin.f32 %v598_v1, %v729_v5  ;;  %v844_v61 = vmul.f32 1.442695, %v791_v56 }
 0x103   : > { %v907_v60 = vpack.c.bf16 %v885_v53, %v883_v27  ;;  %v906_v47 = vpack.c.bf16 %v884_v40, %v882_v15  ;;  %v361_v56 = vunpack.c.2.s8 %v3568_v12  ;;  %v363_v5 = vunpack.c.3.s8 %v3568_v12 }
 0x104   : > { %v792_v21 = vmin.f32 %v760_v46, 80.0  ;;  %v793_v0 = vmin.f32 %v761_v19, 80.0  ;;  %v1201_v9 = vpop.permute.xlu1 %1200  ;;  %v2843_v22 = vpop.eup %2842  ;;  %2850 = vpow2.f32 %v842_v24 }
 0x105   : > { %v1259_v41 = vadd.f32 %v3420_v18, %v1201_v9  ;;  %v1260_v62 = vadd.f32 %v3422_v25, %v1201_v9  ;;  %1090 = vmatprep.mubr.bf16.mxu0 %v907_v60  ;;  %v2845_v4 = vpop.eup %2844  ;;  %2852 = vpow2.f32 %v844_v61  ;;  %v1529_v39 = vmul.f32 %v2843_v22, %v390_v13 }
 0x106   : > { %v846_v43 = vmul.f32 1.442695, %v792_v21  ;;  %v848_v20 = vmul.f32 1.442695, %v793_v0  ;;  %1091 = vmatmul.mubr.bf16.gmra.mxu0 %v906_v47  ;;  %v1530_v49 = vmul.f32 %v2845_v4, %v391_v7  ;;  %v362_v7 = vunpack.c.3.s8 %v3571_v42 }
 0x107   : > { %v1405_v31 = vmin.f32 %v1259_v41, %v1373_v58  ;;  %v1406_v6 = vmin.f32 %v1260_v62, %v1374_v17  ;;  %v393_v19 = vcvt.s32.f32 %v361_v56  ;;  %v395_v12 = vcvt.s32.f32 %v363_v5 }
 0x108   : > { %v2847_v44 = vpop.eup %2846  ;;  %2854 = vpow2.f32 %v846_v43  ;;  %v1311_v32 = vpop.permute.xlu1 %1310  ;;  %v394_v60 = vcvt.s32.f32 %v362_v7  ;;  %v601_v9 = vadd.f32 %v3329_v34, %v3398_v50  ;;  %v602_v22 = vadd.f32 %v3331_v35, %v3398_v50 }
 0x109   : > { %v2849_v36 = vpop.eup %2848  ;;  %2856 = vpow2.f32 %v848_v20  ;;  %v1437_v26 = vmin.f32 %v1405_v31, 80.0  ;;  %v1438_v28 = vmin.f32 %v1406_v6, 80.0  ;;  %v1371_v16 = vadd.f32 %v3411_v10, %v1311_v32 }
 0x10a   : > { %v1372_v29 = vadd.f32 %v3413_v11, %v1311_v32  ;;  %v1528_v38 = vmul.f32 %v2849_v36, %v389_v2  ;;  %v1527_v14 = vmul.f32 %v2847_v44, %v388_v45  ;;  %v360_v2 = vunpack.c.2.s8 %v3571_v42  ;;  %v1205_v42 = vpop.permute.xlu0 %1204 }
 0x10b   : > { %v1491_v51 = vmul.f32 1.442695, %v1437_v26  ;;  %v1403_v52 = vmin.f32 %v1257_v63, %v1371_v16  ;;  %v1493_v37 = vmul.f32 1.442695, %v1438_v28  ;;  %v1262_v56 = vadd.f32 %v3422_v25, %v1205_v42 }
 0x10c   : > { %v1404_v1 = vmin.f32 %v1258_v23, %v1372_v29  ;;  %v1552_v54 = vpack.c.bf16 %v1530_v49, %v1528_v38  ;;  %v1551_v59 = vpack.c.bf16 %v1529_v39, %v1527_v14  ;;  %v392_v61 = vcvt.s32.f32 %v360_v2 }
 0x10d   : > { %v1435_v55 = vmin.f32 %v1403_v52, 80.0  ;;  %v539_v3 = vpop.permute.xlu1 %538  ;;  %2858 = vpow2.f32 %v1491_v51 }
 0x10e   : > { %v1436_v13 = vmin.f32 %v1404_v1, 80.0  ;;  %1703 = vmatprep.mubr.bf16.mxu1 %v1552_v54  ;;  %2860 = vpow2.f32 %v1493_v37  ;;  %v599_v27 = vadd.f32 %v3329_v34, %v539_v3  ;;  %v600_v15 = vadd.f32 %v3331_v35, %v539_v3  ;;  %v1323_v28 = vpop.permute.xlu0 %1322 }
 0x10f   : > { %v1487_v57 = vmul.f32 1.442695, %v1435_v55  ;;  %1704 = vmatmul.mubr.bf16.gmra.mxu1 %v1551_v59  ;;  %v1377_v49 = vadd.f32 %v3411_v10, %v1323_v28  ;;  %v1378_v14 = vadd.f32 %v3413_v11, %v1323_v28 }
 0x110   : > { %v1489_v45 = vmul.f32 1.442695, %v1436_v13  ;;  %v1261_v13 = vadd.f32 %v3420_v18, %v1205_v42 }
 0x111   : > { %2862 = vpow2.f32 %v1487_v57  ;;  %v670_v53 = vpop.permute.xlu1 %669  ;;  %v2851_v46 = vpop.eup %2850 }
 0x112   : > { %2864 = vpow2.f32 %v1489_v45  ;;  %v730_v40 = vadd.f32 %v3325_v30, %v670_v53  ;;  %v731_v24 = vadd.f32 %v3327_v33, %v670_v53  ;;  %v2853_v47 = vpop.eup %2852  ;;  %v886_v6 = vmul.f32 %v2851_v46, %v392_v61 }
 0x113   : > { %v887_v4 = vmul.f32 %v2853_v47, %v393_v19 }
 0x114   : > { %v762_v48 = vmin.f32 %v599_v27, %v730_v40  ;;  %v763_v21 = vmin.f32 %v600_v15, %v731_v24 }
 0x115   : > { %v2855_v0 = vpop.eup %2854  ;;  %v675_v58 = vpop.permute.xlu1 %674 }
 0x116   : > { %v2857_v17 = vpop.eup %2856  ;;  %v794_v41 = vmin.f32 %v762_v48, 80.0  ;;  %v795_v62 = vmin.f32 %v763_v21, 80.0  ;;  %v732_v43 = vadd.f32 %v3325_v30, %v675_v58  ;;  %v733_v20 = vadd.f32 %v3327_v33, %v675_v58  ;;  %v3618_v48 = vld [vmem:[%s3353_s9 + $0x38] sm:$0xff] }
 0x117   : > { %v889_v31 = vmul.f32 %v2857_v17, %v395_v12  ;;  %v888_v44 = vmul.f32 %v2855_v0, %v394_v60 }
 0x118   : > { %v850_v63 = vmul.f32 1.442695, %v794_v41  ;;  %v764_v23 = vmin.f32 %v601_v9, %v732_v43  ;;  %v765_v32 = vmin.f32 %v602_v22, %v733_v20  ;;  %v852_v39 = vmul.f32 1.442695, %v795_v62  ;;  %v3621_v9 = vld [vmem:[%s3353_s9 + $0x30] sm:$0xff] }
 0x119   : > { %v909_v36 = vpack.c.bf16 %v889_v31, %v887_v4  ;;  %v908_v26 = vpack.c.bf16 %v888_v44, %v886_v6  ;;  %v365_v41 = vunpack.c.0.s8 %v3618_v48  ;;  %v366_v62 = vunpack.c.1.s8 %v3621_v9  ;;  %v1213_v31 = vpop.permute.xlu0 %1212 }
 0x11a   : > { %v796_v50 = vmin.f32 %v764_v23, 80.0  ;;  %v797_v16 = vmin.f32 %v765_v32, 80.0  ;;  %v1209_v29 = vpop.permute.xlu1 %1208  ;;  %v2859_v38 = vpop.eup %2858  ;;  %2866 = vpow2.f32 %v850_v63 }
 0x11b   : > { %v1263_v51 = vadd.f32 %v3420_v18, %v1209_v29  ;;  %v1264_v52 = vadd.f32 %v3422_v25, %v1209_v29  ;;  %1098 = vmatprep.mubr.bf16.mxu0 %v909_v36  ;;  %v2861_v54 = vpop.eup %2860  ;;  %2868 = vpow2.f32 %v852_v39  ;;  %v1533_v5 = vmul.f32 %v2859_v38, %v394_v60 }
 0x11c   : > { %v854_v37 = vmul.f32 1.442695, %v796_v50  ;;  %v856_v1 = vmul.f32 1.442695, %v797_v16  ;;  %1099 = vmatmul.mubr.bf16.gmra.mxu0 %v908_v26  ;;  %v1534_v40 = vmul.f32 %v2861_v54, %v395_v12  ;;  %v367_v12 = vunpack.c.1.s8 %v3618_v48 }
 0x11d   : > { %v1409_v59 = vmin.f32 %v1263_v51, %v1377_v49  ;;  %v1410_v55 = vmin.f32 %v1264_v52, %v1378_v14  ;;  %v397_v32 = vcvt.s32.f32 %v365_v41  ;;  %v398_v26 = vcvt.s32.f32 %v366_v62 }
 0x11e   : > { %v2863_v3 = vpop.eup %2862  ;;  %2870 = vpow2.f32 %v854_v37  ;;  %v1319_v57 = vpop.permute.xlu1 %1318  ;;  %v399_v39 = vcvt.s32.f32 %v367_v12  ;;  %v605_v38 = vadd.f32 %v3329_v34, %v3409_v8  ;;  %v606_v49 = vadd.f32 %v3331_v35, %v3409_v8 }
 0x11f   : > { %v2865_v2 = vpop.eup %2864  ;;  %2872 = vpow2.f32 %v856_v1  ;;  %v1441_v7 = vmin.f32 %v1409_v59, 80.0  ;;  %v1442_v45 = vmin.f32 %v1410_v55, 80.0  ;;  %v1375_v27 = vadd.f32 %v3411_v10, %v1319_v57 }
 0x120   : > { %v1376_v53 = vadd.f32 %v3413_v11, %v1319_v57  ;;  %v1532_v15 = vmul.f32 %v2865_v2, %v393_v19  ;;  %v1531_v24 = vmul.f32 %v2863_v3, %v392_v61  ;;  %v364_v61 = vunpack.c.0.s8 %v3621_v9 }
 0x121   : > { %v1499_v46 = vmul.f32 1.442695, %v1441_v7  ;;  %v1407_v47 = vmin.f32 %v1261_v13, %v1375_v27  ;;  %v1501_v42 = vmul.f32 1.442695, %v1442_v45 }
 0x122   : > { %v1408_v21 = vmin.f32 %v1262_v56, %v1376_v53  ;;  %v1554_v0 = vpack.c.bf16 %v1534_v40, %v1532_v15  ;;  %v1553_v60 = vpack.c.bf16 %v1533_v5, %v1531_v24  ;;  %v396_v36 = vcvt.s32.f32 %v364_v61  ;;  %v1331_v56 = vpop.permute.xlu0 %1330 }
 0x123   : > { %v1439_v22 = vmin.f32 %v1407_v47, 80.0  ;;  %v549_v58 = vpop.permute.xlu1 %548  ;;  %2874 = vpow2.f32 %v1499_v46  ;;  %v1381_v15 = vadd.f32 %v3411_v10, %v1331_v56 }
 0x124   : > { %v1440_v17 = vmin.f32 %v1408_v21, 80.0  ;;  %1711 = vmatprep.mubr.bf16.mxu1 %v1554_v0  ;;  %2876 = vpow2.f32 %v1501_v42  ;;  %v603_v20 = vadd.f32 %v3329_v34, %v549_v58  ;;  %v604_v6 = vadd.f32 %v3331_v35, %v549_v58 }
 0x125   : > { %v1495_v19 = vmul.f32 1.442695, %v1439_v22  ;;  %1712 = vmatmul.mubr.bf16.gmra.mxu1 %v1553_v60  ;;  %v1265_v60 = vadd.f32 %v3420_v18, %v1213_v31  ;;  %v1266_v22 = vadd.f32 %v3422_v25, %v1213_v31 }
 0x126   : > { %v1497_v43 = vmul.f32 1.442695, %v1440_v17 }
 0x127   : > { %2878 = vpow2.f32 %v1495_v19  ;;  %v680_v4 = vpop.permute.xlu1 %679  ;;  %v2867_v23 = vpop.eup %2866 }
 0x128   : > { %2880 = vpow2.f32 %v1497_v43  ;;  %v734_v44 = vadd.f32 %v3325_v30, %v680_v4  ;;  %v735_v63 = vadd.f32 %v3327_v33, %v680_v4  ;;  %v2869_v28 = vpop.eup %2868  ;;  %v890_v3 = vmul.f32 %v2867_v23, %v396_v36 }
 0x129   : > { %v891_v59 = vmul.f32 %v2869_v28, %v397_v32 }
 0x12a   : > { %v766_v50 = vmin.f32 %v603_v20, %v734_v44  ;;  %v767_v16 = vmin.f32 %v604_v6, %v735_v63 }
 0x12b   : > { %v2871_v29 = vpop.eup %2870  ;;  %v685_v14 = vpop.permute.xlu1 %684 }
 0x12c   : > { %v2873_v51 = vpop.eup %2872  ;;  %v798_v52 = vmin.f32 %v766_v50, 80.0  ;;  %v799_v37 = vmin.f32 %v767_v16, 80.0  ;;  %v736_v1 = vadd.f32 %v3325_v30, %v685_v14  ;;  %v737_v54 = vadd.f32 %v3327_v33, %v685_v14 }
 0x12d   : > { %v893_v55 = vmul.f32 %v2873_v51, %v399_v39  ;;  %v892_v13 = vmul.f32 %v2871_v29, %v398_v26  ;;  %v1382_v30 = vadd.f32 %v3413_v11, %v1331_v56  ;;  %v370_v50 = vunpack.c.3.s8 %v3621_v9 }
 0x12e   : > { %v858_v57 = vmul.f32 1.442695, %v798_v52  ;;  %v768_v5 = vmin.f32 %v605_v38, %v736_v1  ;;  %v769_v2 = vmin.f32 %v606_v49, %v737_v54  ;;  %v860_v34 = vmul.f32 1.442695, %v799_v37 }
 0x12f   : > { %v911_v7 = vpack.c.bf16 %v893_v55, %v891_v59  ;;  %v910_v45 = vpack.c.bf16 %v892_v13, %v890_v3  ;;  %v402_v16 = vcvt.s32.f32 %v370_v50 }
 0x130   : > { %v800_v35 = vmin.f32 %v768_v5, 80.0  ;;  %v801_v8 = vmin.f32 %v769_v2, 80.0  ;;  %v1217_v27 = vpop.permute.xlu1 %1216  ;;  %v2875_v53 = vpop.eup %2874  ;;  %2882 = vpow2.f32 %v858_v57 }
 0x131   : > { %v1267_v33 = vadd.f32 %v3420_v18, %v1217_v27  ;;  %v1268_v40 = vadd.f32 %v3422_v25, %v1217_v27  ;;  %1106 = vmatprep.mubr.bf16.mxu0 %v911_v7  ;;  %v2877_v47 = vpop.eup %2876  ;;  %2884 = vpow2.f32 %v860_v34  ;;  %v1537_v17 = vmul.f32 %v2875_v53, %v398_v26 }
 0x132   : > { %v862_v24 = vmul.f32 1.442695, %v800_v35  ;;  %v864_v46 = vmul.f32 1.442695, %v801_v8  ;;  %1107 = vmatmul.mubr.bf16.gmra.mxu0 %v910_v45  ;;  %v1538_v20 = vmul.f32 %v2877_v47, %v399_v39  ;;  %v368_v26 = vunpack.c.2.s8 %v3621_v9 }
 0x133   : > { %v1413_v42 = vmin.f32 %v1267_v33, %v1381_v15  ;;  %v1414_v21 = vmin.f32 %v1268_v40, %v1382_v30 }
 0x134   : > { %v2879_v0 = vpop.eup %2878  ;;  %2886 = vpow2.f32 %v862_v24  ;;  %v1327_v58 = vpop.permute.xlu1 %1326 }
 0x135   : > { %v2881_v41 = vpop.eup %2880  ;;  %2888 = vpow2.f32 %v864_v46  ;;  %v1445_v19 = vmin.f32 %v1413_v42, 80.0  ;;  %v1446_v12 = vmin.f32 %v1414_v21, 80.0  ;;  %v1379_v61 = vadd.f32 %v3411_v10, %v1327_v58 }
 0x136   : > { %v1380_v62 = vadd.f32 %v3413_v11, %v1327_v58  ;;  %v1536_v43 = vmul.f32 %v2881_v41, %v397_v32  ;;  %v1535_v4 = vmul.f32 %v2879_v0, %v396_v36  ;;  %v369_v11 = vunpack.c.2.s8 %v3618_v48 }
 0x137   : > { %v1507_v6 = vmul.f32 1.442695, %v1445_v19  ;;  %v1411_v44 = vmin.f32 %v1265_v60, %v1379_v61  ;;  %v1509_v63 = vmul.f32 1.442695, %v1446_v12  ;;  %v371_v32 = vunpack.c.3.s8 %v3618_v48 }
 0x138   : > { %v1412_v18 = vmin.f32 %v1266_v22, %v1380_v62  ;;  %v1556_v23 = vpack.c.bf16 %v1538_v20, %v1536_v43  ;;  %v1555_v25 = vpack.c.bf16 %v1537_v17, %v1535_v4  ;;  %v400_v36 = vcvt.s32.f32 %v368_v26 }
 0x139   : > { %v1443_v31 = vmin.f32 %v1411_v44, 80.0  ;;  %2890 = vpow2.f32 %v1507_v6  ;;  %v401_v38 = vcvt.s32.f32 %v369_v11  ;;  %v403_v49 = vcvt.s32.f32 %v371_v32 }
 0x13a   : > { %v1444_v28 = vmin.f32 %v1412_v18, 80.0  ;;  %1719 = vmatprep.mubr.bf16.mxu1 %v1556_v23  ;;  %2892 = vpow2.f32 %v1509_v63 }
 0x13b   : > { %v1503_v10 = vmul.f32 1.442695, %v1443_v31  ;;  %1720 = vmatmul.mubr.bf16.gmra.mxu1 %v1555_v25 }
 0x13c   : > { %v1505_v39 = vmul.f32 1.442695, %v1444_v28 }
 0x13d   : > { %2894 = vpow2.f32 %v1503_v10  ;;  %v2883_v29 = vpop.eup %2882 }
 0x13e   : > { %2896 = vpow2.f32 %v1505_v39  ;;  %v2885_v14 = vpop.eup %2884  ;;  %v894_v9 = vmul.f32 %v2883_v29, %v400_v36 }
 0x13f   : > { %v895_v1 = vmul.f32 %v2885_v14, %v401_v38 }
 0x141   : > { %v2887_v51 = vpop.eup %2886 }
 0x142   : > { %v2889_v52 = vpop.eup %2888  ;;  %v896_v37 = vmul.f32 %v2887_v51, %v402_v16 }
 0x143   : > { %v897_v54 = vmul.f32 %v2889_v52, %v403_v49 }
 0x144   : > { %v912_v59 = vpack.c.bf16 %v896_v37, %v894_v9 }
 0x145   : > { %v913_v55 = vpack.c.bf16 %v897_v54, %v895_v1 }
 0x146   : > { %v2891_v48 = vpop.eup %2890 }
 0x147   : > { %1114 = vmatprep.mubr.bf16.mxu0 %v913_v55  ;;  %v2893_v3 = vpop.eup %2892  ;;  %v1541_v5 = vmul.f32 %v2891_v48, %v402_v16 }
 0x148   : > { %1115 = vmatmul.mubr.bf16.gmra.mxu0 %v912_v59  ;;  %v1542_v34 = vmul.f32 %v2893_v3, %v403_v49 }
 0x14a   : > { %v2895_v13 = vpop.eup %2894 }
 0x14b   : > { %v2897_v56 = vpop.eup %2896  ;;  %v1539_v57 = vmul.f32 %v2895_v13, %v400_v36 }
 0x14c   : > { %v1540_v2 = vmul.f32 %v2897_v56, %v401_v38 }
 0x14d   : > { %v1557_v7 = vpack.c.bf16 %v1541_v5, %v1539_v57 }
 0x14e   : > { %v1558_v45 = vpack.c.bf16 %v1542_v34, %v1540_v2 }
 0x150   : > { %1727 = vmatprep.mubr.bf16.mxu1 %v1558_v45 }
 0x151   : > { %1728 = vmatmul.mubr.bf16.gmra.mxu1 %v1557_v7 }
 0x170   : > { %v2563_v35 = vpop.f32.mrf.mxu0 }
 0x172   : > { %v2564_v8 = vpop.f32.mrf.mxu0 }
 0x173   : > { %v3649_v27 = vadd.f32 %v2564_v8, %v2563_v35 }
 0x174   : > { %v2566_v30 = vpop.f32.mrf.mxu0 }
 0x175   : > { %v1803_v53 = vmax.f32 %v3649_v27, 1e-30 }
 0x176   : > { %v2567_v33 = vpop.f32.mrf.mxu0 }
 0x177   : > { %2898 = vrcp.f32 %v1803_v53  ;;  %v3652_v47 = vadd.f32 %v2567_v33, %v2566_v30 }
 0x179   : > { %v1804_v58 = vmax.f32 %v3652_v47, 1e-30 }
 0x184   : > { %v2899_v15 = vpop.eup %2898 }
 0x185   : > { %1837 = vperm.xlu1 %2720, %v2899_v15  }
 0x18b   : > { %v2569_v40 = vpop.f32.mrf.mxu0 }
 0x18d   : > { %v2570_v24 = vpop.f32.mrf.mxu0 }
 0x18e   : > { %v3658_v41 = vadd.f32 %v2570_v24, %v2569_v40 }
 0x18f   : > { %v2572_v21 = vpop.f32.mrf.mxu0 }
 0x190   : > { %v1805_v20 = vmax.f32 %v3658_v41, 1e-30 }
 0x191   : > { %v2573_v19 = vpop.f32.mrf.mxu0 }
 0x192   : > { %v3664_v4 = vadd.f32 %v2573_v19, %v2572_v21 }
 0x193   : > { %v2627_v46 = vpop.f32.mrf.mxu1 }
 0x194   : > { %v1806_v31 = vmax.f32 %v3664_v4, 1e-30 }
 0x195   : > { %v2628_v42 = vpop.f32.mrf.mxu1 }
 0x196   : > { %v3654_v0 = vadd.f32 %v2628_v42, %v2627_v46 }
 0x197   : > { %v2630_v60 = vpop.f32.mrf.mxu1 }
 0x198   : > { %v1931_v22 = vmax.f32 %v3654_v0, 1e-30 }
 0x199   : > { %v2631_v17 = vpop.f32.mrf.mxu1 }
 0x19a   : > { %2900 = vrcp.f32 %v1931_v22  ;;  %v3660_v12 = vadd.f32 %v2631_v17, %v2630_v60 }
 0x19b   : > { %2902 = vrcp.f32 %v1804_v58 }
 0x19c   : > { %v1932_v61 = vmax.f32 %v3660_v12, 1e-30  ;;  %v2575_v62 = vpop.f32.mrf.mxu0 }
 0x19d   : > { %v2633_v43 = vpop.f32.mrf.mxu1 }
 0x19e   : > { %2904 = vrcp.f32 %v1932_v61  ;;  %v2576_v6 = vpop.f32.mrf.mxu0 }
 0x19f   : > { %v2634_v44 = vpop.f32.mrf.mxu1  ;;  %v3666_v63 = vadd.f32 %v2576_v6, %v2575_v62  ;;  %2906 = vrcp.f32 %v1805_v20 }
 0x1a0   : > { %v3668_v18 = vadd.f32 %v2634_v44, %v2633_v43  ;;  %v2578_v23 = vpop.f32.mrf.mxu0 }
 0x1a1   : > { %v2636_v25 = vpop.f32.mrf.mxu1  ;;  %v1807_v10 = vmax.f32 %v3666_v63, 1e-30 }
 0x1a2   : > { %v1933_v28 = vmax.f32 %v3668_v18, 1e-30  ;;  %v2579_v26 = vpop.f32.mrf.mxu0 }
 0x1a3   : > { %v2637_v50 = vpop.f32.mrf.mxu1  ;;  %v3675_v32 = vadd.f32 %v2579_v26, %v2578_v23 }
 0x1a4   : > { %2908 = vrcp.f32 %v1933_v28  ;;  %v3673_v11 = vadd.f32 %v2637_v50, %v2636_v25 }
 0x1a5   : > { %2910 = vrcp.f32 %v1806_v31  ;;  %v2639_v36 = vpop.f32.mrf.mxu1  ;;  %v1808_v14 = vmax.f32 %v3675_v32, 1e-30 }
 0x1a6   : > { %v1934_v39 = vmax.f32 %v3673_v11, 1e-30  ;;  %2912 = vrcp.f32 %v1807_v10 }
 0x1a7   : > { %v2901_v16 = vpop.eup %2900  ;;  %v2640_v29 = vpop.f32.mrf.mxu1 }
 0x1a8   : > { %1965 = vperm.xlu0 %2721, %v2901_v16   ;;  %v3678_v38 = vadd.f32 %v2640_v29, %v2639_v36  ;;  %v2903_v49 = vpop.eup %2902  ;;  %2914 = vrcp.f32 %v1934_v39 }
 0x1a9   : > { %v2642_v51 = vpop.f32.mrf.mxu1 }
 0x1aa   : > { %v1935_v9 = vmax.f32 %v3678_v38, 1e-30 }
 0x1ab   : > { %v2905_v52 = vpop.eup %2904  ;;  %v2643_v37 = vpop.f32.mrf.mxu1 }
 0x1ac   : > { %1970 = vperm.xlu1 %2720, %v2905_v52   ;;  %1842 = vperm.xlu0 %2721, %v2903_v49   ;;  %2916 = vrcp.f32 %v1935_v9  ;;  %v3682_v1 = vadd.f32 %v2643_v37, %v2642_v51  ;;  %v2907_v54 = vpop.eup %2906 }
 0x1ad   : > { %2918 = vrcp.f32 %v1808_v14 }
 0x1ae   : > { %v1936_v59 = vmax.f32 %v3682_v1, 1e-30 }
 0x1b0   : > { %v2581_v55 = vpop.f32.mrf.mxu0  ;;  %1847 = vperm.xlu1 %2720, %v2907_v54   ;;  %2920 = vrcp.f32 %v1936_v59 }
 0x1b1   : > { %v2909_v48 = vpop.eup %2908 }
 0x1b2   : > { %1975 = vperm.xlu0 %2721, %v2909_v48   ;;  %v2582_v3 = vpop.f32.mrf.mxu0  ;;  %v2911_v13 = vpop.eup %2910 }
 0x1b3   : > { %v3685_v56 = vadd.f32 %v2582_v3, %v2581_v55  ;;  %v2913_v5 = vpop.eup %2912 }
 0x1b4   : > { %v2584_v57 = vpop.f32.mrf.mxu0  ;;  %1852 = vperm.xlu1 %2720, %v2911_v13  }
 0x1b5   : > { %v1809_v2 = vmax.f32 %v3685_v56, 1e-30  ;;  %v2915_v7 = vpop.eup %2914 }
 0x1b6   : > { %1857 = vperm.xlu0 %2721, %v2913_v5   ;;  %v2585_v34 = vpop.f32.mrf.mxu0 }
 0x1b7   : > { %2922 = vrcp.f32 %v1809_v2  ;;  %v3688_v45 = vadd.f32 %v2585_v34, %v2584_v57 }
 0x1b8   : > { %1980 = vperm.xlu1 %2720, %v2915_v7  }
 0x1b9   : > { %v1810_v35 = vmax.f32 %v3688_v45, 1e-30  ;;  %v2645_v8 = vpop.f32.mrf.mxu1  ;;  %v2917_v53 = vpop.eup %2916 }
 0x1ba   : > { %v2919_v15 = vpop.eup %2918  ;;  %1985 = vperm.xlu0 %2721, %v2917_v53  }
 0x1bb   : > { %2924 = vrcp.f32 %v1810_v35  ;;  %v2646_v30 = vpop.f32.mrf.mxu1 }
 0x1bc   : > { %v3691_v33 = vadd.f32 %v2646_v30, %v2645_v8  ;;  %1862 = vperm.xlu1 %2720, %v2919_v15  }
 0x1bd   : > { %v2648_v40 = vpop.f32.mrf.mxu1  ;;  %v2921_v46 = vpop.eup %2920 }
 0x1be   : > { %v1937_v24 = vmax.f32 %v3691_v33, 1e-30 }
 0x1bf   : > { %v2649_v42 = vpop.f32.mrf.mxu1 }
 0x1c0   : > { %2926 = vrcp.f32 %v1937_v24  ;;  %v3694_v21 = vadd.f32 %v2649_v42, %v2648_v40  ;;  %1990 = vperm.xlu1 %2720, %v2921_v46  }
 0x1c2   : > { %v1938_v60 = vmax.f32 %v3694_v21, 1e-30 }
 0x1c4   : > { %v2923_v22 = vpop.eup %2922  ;;  %2928 = vrcp.f32 %v1938_v60 }
 0x1c5   : > { %1867 = vperm.xlu0 %2721, %v2923_v22  }
 0x1c6   : > { %v2587_v58 = vpop.f32.mrf.mxu0 }
 0x1c8   : > { %v2925_v17 = vpop.eup %2924  ;;  %v2588_v19 = vpop.f32.mrf.mxu0 }
 0x1c9   : > { %v3697_v61 = vadd.f32 %v2588_v19, %v2587_v58  ;;  %1872 = vperm.xlu1 %2720, %v2925_v17  }
 0x1ca   : > { %v2590_v62 = vpop.f32.mrf.mxu0 }
 0x1cb   : > { %v1811_v43 = vmax.f32 %v3697_v61, 1e-30 }
 0x1cc   : > { %v2591_v20 = vpop.f32.mrf.mxu0 }
 0x1cd   : > { %v2927_v6 = vpop.eup %2926  ;;  %2930 = vrcp.f32 %v1811_v43  ;;  %v3700_v44 = vadd.f32 %v2591_v20, %v2590_v62 }
 0x1ce   : > { %1995 = vperm.xlu0 %2721, %v2927_v6  }
 0x1cf   : > { %v1812_v23 = vmax.f32 %v3700_v44, 1e-30  ;;  %v2651_v25 = vpop.f32.mrf.mxu1 }
 0x1d1   : > { %v2929_v31 = vpop.eup %2928  ;;  %2932 = vrcp.f32 %v1812_v23  ;;  %v2652_v28 = vpop.f32.mrf.mxu1 }
 0x1d2   : > { %v3703_v26 = vadd.f32 %v2652_v28, %v2651_v25  ;;  %2000 = vperm.xlu1 %2720, %v2929_v31  }
 0x1d3   : > { %v2654_v50 = vpop.f32.mrf.mxu1 }
 0x1d4   : > { %v1939_v10 = vmax.f32 %v3703_v26, 1e-30 }
 0x1d5   : > { %v2655_v39 = vpop.f32.mrf.mxu1 }
 0x1d6   : > { %2934 = vrcp.f32 %v1939_v10  ;;  %v3706_v36 = vadd.f32 %v2655_v39, %v2654_v50 }
 0x1d8   : > { %v1940_v16 = vmax.f32 %v3706_v36, 1e-30 }
 0x1da   : > { %v2931_v29 = vpop.eup %2930  ;;  %2936 = vrcp.f32 %v1940_v16 }
 0x1db   : > { %1877 = vperm.xlu0 %2721, %v2931_v29  }
 0x1dc   : > { %v2593_v49 = vpop.f32.mrf.mxu0 }
 0x1de   : > { %v2933_v14 = vpop.eup %2932  ;;  %v2594_v51 = vpop.f32.mrf.mxu0 }
 0x1df   : > { %v3709_v52 = vadd.f32 %v2594_v51, %v2593_v49  ;;  %1882 = vperm.xlu1 %2720, %v2933_v14  }
 0x1e0   : > { %v2596_v9 = vpop.f32.mrf.mxu0 }
 0x1e1   : > { %v1813_v37 = vmax.f32 %v3709_v52, 1e-30 }
 0x1e2   : > { %v2597_v54 = vpop.f32.mrf.mxu0 }
 0x1e3   : > { %v2935_v59 = vpop.eup %2934  ;;  %2938 = vrcp.f32 %v1813_v37  ;;  %v3712_v55 = vadd.f32 %v2597_v54, %v2596_v9 }
 0x1e4   : > { %2005 = vperm.xlu0 %2721, %v2935_v59  }
 0x1e5   : > { %v1814_v48 = vmax.f32 %v3712_v55, 1e-30  ;;  %v2657_v3 = vpop.f32.mrf.mxu1 }
 0x1e7   : > { %v2937_v13 = vpop.eup %2936  ;;  %2940 = vrcp.f32 %v1814_v48  ;;  %v2658_v57 = vpop.f32.mrf.mxu1 }
 0x1e8   : > { %v3715_v5 = vadd.f32 %v2658_v57, %v2657_v3  ;;  %2010 = vperm.xlu1 %2720, %v2937_v13  }
 0x1e9   : > { %v2660_v2 = vpop.f32.mrf.mxu1 }
 0x1ea   : > { %v1941_v34 = vmax.f32 %v3715_v5, 1e-30 }
 0x1eb   : > { %v2661_v7 = vpop.f32.mrf.mxu1 }
 0x1ec   : > { %2942 = vrcp.f32 %v1941_v34  ;;  %v3718_v35 = vadd.f32 %v2661_v7, %v2660_v2 }
 0x1ee   : > { %v1942_v8 = vmax.f32 %v3718_v35, 1e-30 }
 0x1f0   : > { %v2939_v53 = vpop.eup %2938  ;;  %2944 = vrcp.f32 %v1942_v8 }
 0x1f1   : > { %1887 = vperm.xlu0 %2721, %v2939_v53  }
 0x1f2   : > { %v2599_v15 = vpop.f32.mrf.mxu0 }
 0x1f4   : > { %v2941_v30 = vpop.eup %2940  ;;  %v2600_v40 = vpop.f32.mrf.mxu0 }
 0x1f5   : > { %v3721_v24 = vadd.f32 %v2600_v40, %v2599_v15  ;;  %1892 = vperm.xlu1 %2720, %v2941_v30  }
 0x1f6   : > { %v2602_v46 = vpop.f32.mrf.mxu0 }
 0x1f7   : > { %v1815_v42 = vmax.f32 %v3721_v24, 1e-30 }
 0x1f8   : > { %v2603_v60 = vpop.f32.mrf.mxu0 }
 0x1f9   : > { %v2943_v22 = vpop.eup %2942  ;;  %2946 = vrcp.f32 %v1815_v42  ;;  %v3724_v58 = vadd.f32 %v2603_v60, %v2602_v46 }
 0x1fa   : > { %2015 = vperm.xlu0 %2721, %v2943_v22  }
 0x1fb   : > { %v1816_v17 = vmax.f32 %v3724_v58, 1e-30  ;;  %v2663_v19 = vpop.f32.mrf.mxu1 }
 0x1fd   : > { %v2945_v62 = vpop.eup %2944  ;;  %2948 = vrcp.f32 %v1816_v17  ;;  %v2664_v43 = vpop.f32.mrf.mxu1 }
 0x1fe   : > { %v3727_v20 = vadd.f32 %v2664_v43, %v2663_v19  ;;  %2020 = vperm.xlu1 %2720, %v2945_v62  }
 0x1ff   : > { %v2666_v6 = vpop.f32.mrf.mxu1 }
 0x200   : > { %v1943_v23 = vmax.f32 %v3727_v20, 1e-30  ;;  %v1838_v8 = vpop.permute.xlu1 %1837 }
 0x201   : > { %v2667_v25 = vpop.f32.mrf.mxu1  ;;  %v1915_v30 = vmul.f32 %v3649_v27, %v1838_v8 }
 0x202   : > { %2950 = vrcp.f32 %v1943_v23  ;;  %v3730_v31 = vadd.f32 %v2667_v25, %v2666_v6 }
 0x203   : > { %v2091_v46 = vmul.f32 1.442695, %v1915_v30  ;;  %vm2059_vm0 = vcmp.gt.f32.partialorder %v1915_v30, 0.0 }
 0x204   : > { %v1944_v28 = vmax.f32 %v3730_v31, 1e-30 }
 0x206   : > { %v2947_v50 = vpop.eup %2946  ;;  %2952 = vrcp.f32 %v1944_v28 }
 0x207   : > { %1897 = vperm.xlu0 %2721, %v2947_v50  }
 0x208   : > { %v2605_v10 = vpop.f32.mrf.mxu0 }
 0x20a   : > { %v2949_v39 = vpop.eup %2948  ;;  %v2606_v16 = vpop.f32.mrf.mxu0 }
 0x20b   : > { %v3733_v29 = vadd.f32 %v2606_v16, %v2605_v10  ;;  %1902 = vperm.xlu1 %2720, %v2949_v39  }
 0x20c   : > { %v2608_v49 = vpop.f32.mrf.mxu0 }
 0x20d   : > { %v1817_v14 = vmax.f32 %v3733_v29, 1e-30 }
 0x20e   : > { %v2609_v51 = vpop.f32.mrf.mxu0 }
 0x20f   : > { %v2951_v9 = vpop.eup %2950  ;;  %2954 = vrcp.f32 %v1817_v14  ;;  %v3736_v37 = vadd.f32 %v2609_v51, %v2608_v49 }
 0x210   : > { %2025 = vperm.xlu0 %2721, %v2951_v9  }
 0x211   : > { %v1818_v54 = vmax.f32 %v3736_v37, 1e-30  ;;  %v2669_v59 = vpop.f32.mrf.mxu1 }
 0x213   : > { %v2953_v48 = vpop.eup %2952  ;;  %2956 = vrcp.f32 %v1818_v54  ;;  %v2670_v3 = vpop.f32.mrf.mxu1 }
 0x214   : > { %v3739_v13 = vadd.f32 %v2670_v3, %v2669_v59  ;;  %2030 = vperm.xlu1 %2720, %v2953_v48  }
 0x215   : > { %v2672_v57 = vpop.f32.mrf.mxu1 }
 0x216   : > { %v1945_v2 = vmax.f32 %v3739_v13, 1e-30 }
 0x217   : > { %v2673_v34 = vpop.f32.mrf.mxu1 }
 0x218   : > { %2958 = vrcp.f32 %v1945_v2  ;;  %v3742_v7 = vadd.f32 %v2673_v34, %v2672_v57 }
 0x21a   : > { %v1946_v53 = vmax.f32 %v3742_v7, 1e-30 }
 0x21c   : > { %v2955_v15 = vpop.eup %2954  ;;  %2960 = vrcp.f32 %v1946_v53 }
 0x21d   : > { %1907 = vperm.xlu0 %2721, %v2955_v15   ;;  %2962 = vpow2.f32 %v2091_v46 }
 0x220   : > { %v2957_v40 = vpop.eup %2956 }
 0x221   : > { %1912 = vperm.xlu1 %2720, %v2957_v40  }
 0x223   : > { %v1966_v42 = vpop.permute.xlu0 %1965 }
 0x224   : > { %v2043_v60 = vmul.f32 %v3654_v0, %v1966_v42 }
 0x225   : > { %v2959_v22 = vpop.eup %2958 }
 0x226   : > { %v2093_v17 = vmul.f32 1.442695, %v2043_v60  ;;  %2035 = vperm.xlu0 %2721, %v2959_v22   ;;  %vm2060_vm1 = vcmp.gt.f32.partialorder %v2043_v60, 0.0 }
 0x227   : > { %v1971_v19 = vpop.permute.xlu1 %1970  ;;  %v1843_v62 = vpop.permute.xlu0 %1842 }
 0x228   : > { %2964 = vpow2.f32 %v2093_v17  ;;  %v2044_v43 = vmul.f32 %v3660_v12, %v1971_v19  ;;  %v1916_v6 = vmul.f32 %v3652_v47, %v1843_v62 }
 0x229   : > { %v2961_v27 = vpop.eup %2960 }
 0x22a   : > { %v2097_v23 = vmul.f32 1.442695, %v2044_v43  ;;  %v2095_v25 = vmul.f32 1.442695, %v1916_v6  ;;  %2040 = vperm.xlu1 %2720, %v2961_v27   ;;  %v2963_v47 = vpop.eup %2962  ;;  %vm2062_vm2 = vcmp.gt.f32.partialorder %v2044_v43, 0.0  ;;  %vm2061_vm3 = vcmp.gt.f32.partialorder %v1916_v6, 0.0 }
 0x22b   : > { %v1848_v28 = vpop.permute.xlu1 %1847  ;;  %v2479_v54 = vadd.f32 -1.0, %v2963_v47 }
 0x22c   : > { %2966 = vpow2.f32 %v2097_v23  ;;  %v1917_v50 = vmul.f32 %v3658_v41, %v1848_v28 }
 0x22d   : > { %2968 = vpow2.f32 %v2095_v25  ;;  %v1976_v0 = vpop.permute.xlu0 %1975 }
 0x22e   : > { %v2099_v10 = vmul.f32 1.442695, %v1917_v50  ;;  %v2045_v39 = vmul.f32 %v3668_v18, %v1976_v0  ;;  %vm2063_vm4 = vcmp.gt.f32.partialorder %v1917_v50, 0.0 }
 0x22f   : > { %v1853_v16 = vpop.permute.xlu1 %1852 }
 0x230   : > { %2970 = vpow2.f32 %v2099_v10  ;;  %v2101_v49 = vmul.f32 1.442695, %v2045_v39  ;;  %v3752_v12 = vmul.f32 %v3664_v4, %v1853_v16  ;;  %vm2064_vm5 = vcmp.gt.f32.partialorder %v2045_v39, 0.0 }
 0x231   : > { %v1858_v14 = vpop.permute.xlu0 %1857 }
 0x232   : > { %2972 = vpow2.f32 %v2101_v49  ;;  %v2103_v51 = vmul.f32 1.442695, %v3752_v12  ;;  %v3756_v9 = vmul.f32 %v3666_v63, %v1858_v14  ;;  %v2187_v63 = vsel %vm2059_vm0, %v1915_v30, %v2479_v54 }
 0x233   : > { %v1981_v41 = vpop.permute.xlu1 %1980  ;;  %vm2065_vm6 = vcmp.gt.f32.partialorder %v3752_v12, 0.0 }
 0x234   : > { %2974 = vpow2.f32 %v2103_v51  ;;  %v2107_v18 = vmul.f32 1.442695, %v3756_v9  ;;  %v2046_v59 = vmul.f32 %v3673_v11, %v1981_v41  ;;  %vm2067_vm8 = vcmp.gt.f32.partialorder %v3756_v9, 0.0 }
 0x235   : > { %v2965_v48 = vpop.eup %2964  ;;  %v1986_v57 = vpop.permute.xlu0 %1985 }
 0x236   : > { %v2480_v3 = vadd.f32 -1.0, %v2965_v48  ;;  %v2105_v4 = vmul.f32 1.442695, %v2046_v59  ;;  %2976 = vpow2.f32 %v2107_v18  ;;  %v3761_v2 = vmul.f32 %v3678_v38, %v1986_v57 }
 0x237   : > { %v1863_v34 = vpop.permute.xlu1 %1862  ;;  %vm2066_vm7 = vcmp.gt.f32.partialorder %v2046_v59, 0.0 }
 0x238   : > { %v2188_v11 = vsel %vm2060_vm1, %v2043_v60, %v2480_v3  ;;  %2978 = vpow2.f32 %v2105_v4  ;;  %v3771_v8 = vmul.f32 %v3675_v32, %v1863_v34  ;;  %v2109_v40 = vmul.f32 1.442695, %v3761_v2 }
 0x239   : > { %v2967_v53 = vpop.eup %2966  ;;  %v2531_v15 = vpack.c.bf16 %v2188_v11, %v2187_v63  ;;  %vm2068_vm9 = vcmp.gt.f32.partialorder %v3761_v2, 0.0 }
 0x23a   : > { %v2969_v38 = vpop.eup %2968  ;;  %v2482_v46 = vadd.f32 -1.0, %v2967_v53  ;;  %v2111_v42 = vmul.f32 1.442695, %v3771_v8  ;;  %2980 = vpow2.f32 %v2109_v40  ;;  %vm2069_vm10 = vcmp.gt.f32.partialorder %v3771_v8, 0.0 }
 0x23b   : > { %2315 = vst [vmem:[%s3768_s12] sm:$0xff] %v2531_v15  ;;  %v2481_v22 = vadd.f32 -1.0, %v2969_v38  ;;  %v1991_v17 = vpop.permute.xlu1 %1990 }
 0x23c   : > { %v2190_v30 = vsel %vm2062_vm2, %v2044_v43, %v2482_v46  ;;  %2982 = vpow2.f32 %v2111_v42  ;;  %v2048_v32 = vmul.f32 %v3682_v1, %v1991_v17 }
 0x23d   : > { %v2971_v60 = vpop.eup %2970  ;;  %v2189_v19 = vsel %vm2061_vm3, %v1916_v6, %v2481_v22 }
 0x23e   : > { %v2532_v62 = vpack.c.bf16 %v2190_v30, %v2189_v19  ;;  %v2483_v27 = vadd.f32 -1.0, %v2971_v60  ;;  %v2113_v23 = vmul.f32 1.442695, %v2048_v32  ;;  %vm2070_vm11 = vcmp.gt.f32.partialorder %v2048_v32, 0.0 }
 0x23f   : > { %v2973_v25 = vpop.eup %2972 }
 0x240   : > { %2316 = vst [vmem:[%s3768_s12 + $0x8] sm:$0xff] %v2532_v62  ;;  %v2191_v28 = vsel %vm2063_vm4, %v1917_v50, %v2483_v27  ;;  %v2484_v0 = vadd.f32 -1.0, %v2973_v25  ;;  %2984 = vpow2.f32 %v2113_v23  ;;  %v1868_v10 = vpop.permute.xlu0 %1867 }
 0x241   : > { %v2975_v16 = vpop.eup %2974  ;;  %v1921_v49 = vmul.f32 %v3685_v56, %v1868_v10 }
 0x242   : > { %v2192_v43 = vsel %vm2064_vm5, %v2045_v39, %v2484_v0  ;;  %v2485_v14 = vadd.f32 -1.0, %v2975_v16 }
 0x243   : > { %v2533_v47 = vpack.c.bf16 %v2192_v43, %v2191_v28  ;;  %v2977_v1 = vpop.eup %2976  ;;  %v2115_v18 = vmul.f32 1.442695, %v1921_v49  ;;  %vm2071_vm12 = vcmp.gt.f32.partialorder %v1921_v49, 0.0 }
 0x244   : > { %v1873_v6 = vpop.permute.xlu1 %1872  ;;  %v2487_v50 = vadd.f32 -1.0, %v2977_v1  ;;  %v2193_v39 = vsel %vm2065_vm6, %v3752_v12, %v2485_v14 }
 0x245   : > { %v2979_v51 = vpop.eup %2978  ;;  %2317 = vst [vmem:[%s3768_s12 + $0x10] sm:$0xff] %v2533_v47  ;;  %v3781_v41 = vmul.f32 %v3688_v45, %v1873_v6  ;;  %2986 = vpow2.f32 %v2115_v18 }
 0x246   : > { %v2486_v54 = vadd.f32 -1.0, %v2979_v51  ;;  %v2195_v11 = vsel %vm2067_vm8, %v3756_v9, %v2487_v50 }
 0x247   : > { %v2981_v48 = vpop.eup %2980  ;;  %v2119_v34 = vmul.f32 1.442695, %v3781_v41  ;;  %vm2073_vm14 = vcmp.gt.f32.partialorder %v3781_v41, 0.0 }
 0x248   : > { %v2194_v56 = vsel %vm2066_vm7, %v2046_v59, %v2486_v54  ;;  %v2488_v57 = vadd.f32 -1.0, %v2981_v48 }
 0x249   : > { %v2983_v3 = vpop.eup %2982  ;;  %v2534_v4 = vpack.c.bf16 %v2194_v56, %v2193_v39  ;;  %v1996_v63 = vpop.permute.xlu0 %1995  ;;  %2988 = vpow2.f32 %v2119_v34 }
 0x24a   : > { %v2049_v45 = vmul.f32 %v3691_v33, %v1996_v63  ;;  %v2196_v12 = vsel %vm2068_vm9, %v3761_v2, %v2488_v57  ;;  %v2489_v53 = vadd.f32 -1.0, %v2983_v3 }
 0x24b   : > { %2318 = vst [vmem:[%s3768_s12 + $0x18] sm:$0xff] %v2534_v4  ;;  %v2535_v59 = vpack.c.bf16 %v2196_v12, %v2195_v11 }
 0x24c   : > { %v2117_v15 = vmul.f32 1.442695, %v2049_v45  ;;  %v2197_v33 = vsel %vm2069_vm10, %v3771_v8, %v2489_v53  ;;  %vm2072_vm13 = vcmp.gt.f32.partialorder %v2049_v45, 0.0 }
 0x24d   : > { %v2985_v40 = vpop.eup %2984  ;;  %v2001_v38 = vpop.permute.xlu1 %2000  ;;  %2319 = vst [vmem:[%s3768_s12 + $0x20] sm:$0xff] %v2535_v59 }
 0x24e   : > { %v2490_v46 = vadd.f32 -1.0, %v2985_v40  ;;  %2990 = vpow2.f32 %v2117_v15  ;;  %v2050_v42 = vmul.f32 %v3694_v21, %v2001_v38 }
 0x250   : > { %v2198_v9 = vsel %vm2070_vm11, %v2048_v32, %v2490_v46  ;;  %v2121_v22 = vmul.f32 1.442695, %v2050_v42  ;;  %vm2074_vm15 = vcmp.gt.f32.partialorder %v2050_v42, 0.0 }
 0x251   : > { %v2536_v2 = vpack.c.bf16 %v2198_v9, %v2197_v33 }
 0x252   : > { %2992 = vpow2.f32 %v2121_v22  ;;  %v2987_v30 = vpop.eup %2986 }
 0x253   : > { %2320 = vst [vmem:[%s3768_s12 + $0x28] sm:$0xff] %v2536_v2  ;;  %v2491_v62 = vadd.f32 -1.0, %v2987_v30 }
 0x255   : > { %v2199_v8 = vsel %vm2071_vm12, %v1921_v49, %v2491_v62 }
 0x256   : > { %v1878_v17 = vpop.permute.xlu0 %1877  ;;  %v2989_v19 = vpop.eup %2988 }
 0x257   : > { %v1923_v60 = vmul.f32 %v3697_v61, %v1878_v17  ;;  %v2493_v32 = vadd.f32 -1.0, %v2989_v19 }
 0x259   : > { %v2123_v28 = vmul.f32 1.442695, %v1923_v60  ;;  %vm2075_vm0 = vcmp.gt.f32.partialorder %v1923_v60, 0.0 }
 0x25a   : > { %v1883_v27 = vpop.permute.xlu1 %1882 }
 0x25b   : > { %v2991_v23 = vpop.eup %2990  ;;  %v1924_v21 = vmul.f32 %v3700_v44, %v1883_v27  ;;  %2994 = vpow2.f32 %v2123_v28  ;;  %v2201_v44 = vsel %vm2073_vm14, %v3781_v41, %v2493_v32 }
 0x25c   : > { %v2492_v25 = vadd.f32 -1.0, %v2991_v23 }
 0x25d   : > { %v2127_v43 = vmul.f32 1.442695, %v1924_v21  ;;  %vm2077_vm2 = vcmp.gt.f32.partialorder %v1924_v21, 0.0 }
 0x25e   : > { %v2200_v0 = vsel %vm2072_vm13, %v2049_v45, %v2492_v25 }
 0x25f   : > { %v2993_v10 = vpop.eup %2992  ;;  %v2537_v16 = vpack.c.bf16 %v2200_v0, %v2199_v8  ;;  %v2006_v47 = vpop.permute.xlu0 %2005  ;;  %2996 = vpow2.f32 %v2127_v43 }
 0x260   : > { %v2494_v61 = vadd.f32 -1.0, %v2993_v10  ;;  %v2051_v1 = vmul.f32 %v3703_v26, %v2006_v47 }
 0x261   : > { %2321 = vst [vmem:[%s3768_s12 + $0x30] sm:$0xff] %v2537_v16 }
 0x262   : > { %v2202_v14 = vsel %vm2074_vm15, %v2050_v42, %v2494_v61  ;;  %v2125_v6 = vmul.f32 1.442695, %v2051_v1  ;;  %vm2076_vm1 = vcmp.gt.f32.partialorder %v2051_v1, 0.0 }
 0x263   : > { %v2538_v49 = vpack.c.bf16 %v2202_v14, %v2201_v44  ;;  %v2011_v51 = vpop.permute.xlu1 %2010 }
 0x264   : > { %2998 = vpow2.f32 %v2125_v6  ;;  %v2052_v54 = vmul.f32 %v3706_v36, %v2011_v51 }
 0x265   : > { %2322 = vst [vmem:[%s3768_s12 + $0x38] sm:$0xff] %v2538_v49 }
 0x266   : > { %v2129_v18 = vmul.f32 1.442695, %v2052_v54  ;;  %vm2078_vm3 = vcmp.gt.f32.partialorder %v2052_v54, 0.0 }
 0x268   : > { %3000 = vpow2.f32 %v2129_v18  ;;  %v2995_v48 = vpop.eup %2994 }
 0x269   : > { %v2495_v56 = vadd.f32 -1.0, %v2995_v48 }
 0x26b   : > { %v2203_v63 = vsel %vm2075_vm0, %v1923_v60, %v2495_v56 }
 0x26c   : > { %v1888_v50 = vpop.permute.xlu0 %1887  ;;  %v2997_v39 = vpop.eup %2996 }
 0x26d   : > { %v1925_v26 = vmul.f32 %v3709_v52, %v1888_v50  ;;  %v2497_v36 = vadd.f32 -1.0, %v2997_v39 }
 0x26f   : > { %v2131_v34 = vmul.f32 1.442695, %v1925_v26  ;;  %vm2079_vm4 = vcmp.gt.f32.partialorder %v1925_v26, 0.0 }
 0x270   : > { %v1893_v3 = vpop.permute.xlu1 %1892 }
 0x271   : > { %v2999_v4 = vpop.eup %2998  ;;  %v1926_v41 = vmul.f32 %v3712_v55, %v1893_v3  ;;  %3002 = vpow2.f32 %v2131_v34  ;;  %v2205_v55 = vsel %vm2077_vm2, %v1924_v21, %v2497_v36 }
 0x272   : > { %v2496_v57 = vadd.f32 -1.0, %v2999_v4 }
 0x273   : > { %v2135_v59 = vmul.f32 1.442695, %v1926_v41  ;;  %vm2081_vm6 = vcmp.gt.f32.partialorder %v1926_v41, 0.0 }
 0x274   : > { %v2204_v45 = vsel %vm2076_vm1, %v2051_v1, %v2496_v57 }
 0x275   : > { %v3001_v11 = vpop.eup %3000  ;;  %v2539_v12 = vpack.c.bf16 %v2204_v45, %v2203_v63  ;;  %v2016_v53 = vpop.permute.xlu0 %2015  ;;  %3004 = vpow2.f32 %v2135_v59 }
 0x276   : > { %v2498_v52 = vadd.f32 -1.0, %v3001_v11  ;;  %v2053_v15 = vmul.f32 %v3715_v5, %v2016_v53 }
 0x277   : > { %2323 = vst [vmem:[%s3768_s12 + $0x40] sm:$0xff] %v2539_v12 }
 0x278   : > { %v2206_v40 = vsel %vm2078_vm3, %v2052_v54, %v2498_v52  ;;  %v2133_v38 = vmul.f32 1.442695, %v2053_v15  ;;  %vm2080_vm5 = vcmp.gt.f32.partialorder %v2053_v15, 0.0 }
 0x279   : > { %v2540_v46 = vpack.c.bf16 %v2206_v40, %v2205_v55  ;;  %v2021_v42 = vpop.permute.xlu1 %2020 }
 0x27a   : > { %3006 = vpow2.f32 %v2133_v38  ;;  %v2054_v33 = vmul.f32 %v3718_v35, %v2021_v42 }
 0x27b   : > { %2324 = vst [vmem:[%s3768_s12 + $0x48] sm:$0xff] %v2540_v46 }
 0x27c   : > { %v2137_v9 = vmul.f32 1.442695, %v2054_v33  ;;  %vm2082_vm7 = vcmp.gt.f32.partialorder %v2054_v33, 0.0 }
 0x27e   : > { %3008 = vpow2.f32 %v2137_v9  ;;  %v3003_v2 = vpop.eup %3002 }
 0x27f   : > { %v2499_v30 = vadd.f32 -1.0, %v3003_v2 }
 0x281   : > { %v2207_v21 = vsel %vm2079_vm4, %v1925_v26, %v2499_v30 }
 0x282   : > { %v1898_v22 = vpop.permute.xlu0 %1897  ;;  %v3005_v5 = vpop.eup %3004 }
 0x283   : > { %v1927_v17 = vmul.f32 %v3721_v24, %v1898_v22  ;;  %v2501_v35 = vadd.f32 -1.0, %v3005_v5 }
 0x285   : > { %v2139_v23 = vmul.f32 1.442695, %v1927_v17  ;;  %vm2083_vm8 = vcmp.gt.f32.partialorder %v1927_v17, 0.0 }
 0x286   : > { %v1903_v60 = vpop.permute.xlu1 %1902 }
 0x287   : > { %v3007_v19 = vpop.eup %3006  ;;  %v1928_v62 = vmul.f32 %v3724_v58, %v1903_v60  ;;  %3010 = vpow2.f32 %v2139_v23  ;;  %v2209_v58 = vsel %vm2081_vm6, %v1926_v41, %v2501_v35 }
 0x288   : > { %v2500_v27 = vadd.f32 -1.0, %v3007_v19 }
 0x289   : > { %v2143_v32 = vmul.f32 1.442695, %v1928_v62  ;;  %vm2085_vm10 = vcmp.gt.f32.partialorder %v1928_v62, 0.0 }
 0x28a   : > { %v2208_v25 = vsel %vm2080_vm5, %v2053_v15, %v2500_v27 }
 0x28b   : > { %v3009_v28 = vpop.eup %3008  ;;  %v2541_v8 = vpack.c.bf16 %v2208_v25, %v2207_v21  ;;  %v2026_v0 = vpop.permute.xlu0 %2025  ;;  %3012 = vpow2.f32 %v2143_v32 }
 0x28c   : > { %v2502_v24 = vadd.f32 -1.0, %v3009_v28  ;;  %v2055_v10 = vmul.f32 %v3727_v20, %v2026_v0 }
 0x28d   : > { %2325 = vst [vmem:[%s3768_s12 + $0x50] sm:$0xff] %v2541_v8 }
 0x28e   : > { %v2210_v16 = vsel %vm2082_vm7, %v2054_v33, %v2502_v24  ;;  %v2141_v43 = vmul.f32 1.442695, %v2055_v10  ;;  %vm2084_vm9 = vcmp.gt.f32.partialorder %v2055_v10, 0.0 }
 0x28f   : > { %v2542_v47 = vpack.c.bf16 %v2210_v16, %v2209_v58  ;;  %v2031_v61 = vpop.permute.xlu1 %2030 }
 0x290   : > { %3014 = vpow2.f32 %v2141_v43  ;;  %v2056_v1 = vmul.f32 %v3730_v31, %v2031_v61 }
 0x291   : > { %2326 = vst [vmem:[%s3768_s12 + $0x58] sm:$0xff] %v2542_v47 }
 0x292   : > { %v2145_v44 = vmul.f32 1.442695, %v2056_v1  ;;  %vm2086_vm11 = vcmp.gt.f32.partialorder %v2056_v1, 0.0 }
 0x294   : > { %3016 = vpow2.f32 %v2145_v44  ;;  %v3011_v6 = vpop.eup %3010 }
 0x295   : > { %v2503_v51 = vadd.f32 -1.0, %v3011_v6 }
 0x297   : > { %v2211_v39 = vsel %vm2083_vm8, %v1927_v17, %v2503_v51 }
 0x298   : > { %v1908_v14 = vpop.permute.xlu0 %1907  ;;  %v3013_v20 = vpop.eup %3012 }
 0x299   : > { %v1929_v49 = vmul.f32 %v3733_v29, %v1908_v14  ;;  %v2505_v31 = vadd.f32 -1.0, %v3013_v20 }
 0x29b   : > { %v2147_v26 = vmul.f32 1.442695, %v1929_v49  ;;  %vm2087_vm12 = vcmp.gt.f32.partialorder %v1929_v49, 0.0 }
 0x29c   : > { %v1913_v54 = vpop.permute.xlu1 %1912 }
 0x29d   : > { %v3015_v18 = vpop.eup %3014  ;;  %v1930_v50 = vmul.f32 %v3736_v37, %v1913_v54  ;;  %3018 = vpow2.f32 %v2147_v26  ;;  %v2213_v37 = vsel %vm2085_vm10, %v1928_v62, %v2505_v31 }
 0x29e   : > { %v2504_v48 = vadd.f32 -1.0, %v3015_v18 }
 0x29f   : > { %v2151_v41 = vmul.f32 1.442695, %v1930_v50  ;;  %vm2089_vm14 = vcmp.gt.f32.partialorder %v1930_v50, 0.0 }
 0x2a0   : > { %v2212_v56 = vsel %vm2084_vm9, %v2055_v10, %v2504_v48 }
 0x2a1   : > { %v3017_v3 = vpop.eup %3016  ;;  %v2543_v4 = vpack.c.bf16 %v2212_v56, %v2211_v39  ;;  %v2036_v57 = vpop.permute.xlu0 %2035  ;;  %3020 = vpow2.f32 %v2151_v41 }
 0x2a2   : > { %v2506_v29 = vadd.f32 -1.0, %v3017_v3  ;;  %v2057_v34 = vmul.f32 %v3739_v13, %v2036_v57 }
 0x2a3   : > { %2327 = vst [vmem:[%s3768_s12 + $0x60] sm:$0xff] %v2543_v4 }
 0x2a4   : > { %v2214_v63 = vsel %vm2086_vm11, %v2056_v1, %v2506_v29  ;;  %v2149_v36 = vmul.f32 1.442695, %v2057_v34  ;;  %vm2088_vm13 = vcmp.gt.f32.partialorder %v2057_v34, 0.0 }
 0x2a5   : > { %v2544_v45 = vpack.c.bf16 %v2214_v63, %v2213_v37  ;;  %v2041_v11 = vpop.permute.xlu1 %2040 }
 0x2a6   : > { %3022 = vpow2.f32 %v2149_v36  ;;  %v2058_v12 = vmul.f32 %v3742_v7, %v2041_v11 }
 0x2a7   : > { %2328 = vst [vmem:[%s3768_s12 + $0x68] sm:$0xff] %v2544_v45 }
 0x2a8   : > { %v2153_v59 = vmul.f32 1.442695, %v2058_v12  ;;  %vm2090_vm15 = vcmp.gt.f32.partialorder %v2058_v12, 0.0 }
 0x2aa   : > { %3024 = vpow2.f32 %v2153_v59  ;;  %v3019_v53 = vpop.eup %3018 }
 0x2ab   : > { %v2507_v15 = vadd.f32 -1.0, %v3019_v53 }
 0x2ad   : > { %v2215_v40 = vsel %vm2087_vm12, %v1929_v49, %v2507_v15 }
 0x2ae   : > { %v3021_v52 = vpop.eup %3020 }
 0x2af   : > { %v2509_v38 = vadd.f32 -1.0, %v3021_v52 }
 0x2b1   : > { %v2217_v7 = vsel %vm2089_vm14, %v1930_v50, %v2509_v38 }
 0x2b3   : > { %v3023_v13 = vpop.eup %3022 }
 0x2b4   : > { %v2508_v55 = vadd.f32 -1.0, %v3023_v13 }
 0x2b6   : > { %v2216_v46 = vsel %vm2088_vm13, %v2057_v34, %v2508_v55 }
 0x2b7   : > { %v3025_v42 = vpop.eup %3024  ;;  %v2545_v33 = vpack.c.bf16 %v2216_v46, %v2215_v40 }
 0x2b8   : > { %v2510_v9 = vadd.f32 -1.0, %v3025_v42 }
 0x2b9   : > { %2329 = vst [vmem:[%s3768_s12 + $0x70] sm:$0xff] %v2545_v33 }
 0x2ba   : > { %v2218_v22 = vsel %vm2090_vm15, %v2058_v12, %v2510_v9 }
 0x2bb   : > { %v2546_v2 = vpack.c.bf16 %v2218_v22, %v2217_v7 }
 0x2bd   : > { %2330 = vst [vmem:[%s3768_s12 + $0x78] sm:$0xff] %v2546_v2 }
 0x2be PF: > { %s14_s17 = sadd.s32 1, %s3048_s17   ;;  %s3839_s15 = smov %s3044_s16 }
 0x2bf   : > { %p11_p6 = scmp.ge.s32.totalorder %s14_s17, 4   ;;  %s3840_s16 = smov %s3842_s18 }
 0x2c1   :  { %13 = sbr.rel (!%p11_p6) target bundleno = 2 (0x2), region = 81 }

// kernel: _lambda_.7
= control target key start
LH: loop header
LB: loop body
LE: loop exit
PB: predicated region body
PF: predicated region fallthrough
CT: control target
= control target key end

     0   :  { %11 = vsyncpa [#allocation4], 0  ;;  %s2641_s0 = inlined_call_operand.vmem [shape: f32[256,128], index: 0, kind: input, shape index: {}]   ;;  %s2642_s1 = inlined_call_operand.vmem [shape: f32[1,256], index: 1, kind: input, shape index: {}]   ;;  %s2643_s2 = inlined_call_operand.vmem [shape: bf16[256,128], index: 2, kind: input, shape index: {}]   ;;  %s2644_s3 = inlined_call_operand.vmem [shape: s8[256,256], index: 3, kind: input, shape index: {}]   ;;  %s2645_s4 = inlined_call_operand.vmem [shape: f32[256,128], index: 4, kind: output, shape index: {0}]   ;;  %s2646_s5 = inlined_call_operand.hbm [shape: bf16[256,256], index: 5, kind: output, shape index: {1}]  }
   0x1   :  { %13 = vsyncpa [#allocation4 + $0x1], 0  ;;  %s2141_s18 = smov 0   ;;  %s2143_s19 = smov 0  }
   0x2   :  { %s2145_s20 = smov 0   ;;  %s2147_s21 = smov 0  }
   0x3   :  { %s2149_s22 = smov 0   ;;  %s2151_s23 = smov 0  }
   0x4 LB: > { %s1654_s24 = sadd.s32 4294967295, %s2104_s23   ;;  %s1655_s25 = sadd.s32 4294967294, %s2104_s23   ;;  %s2104_s23 = sphi %s2151_s23, %s19_s23   ;;  %s2100_s22 = sphi %s2149_s22, %s2653_s22   ;;  %s2096_s21 = sphi %s2147_s21, %s2652_s21   ;;  %s2092_s20 = sphi %s2145_s20, %s2651_s20   ;;  %s2088_s19 = sphi %s2143_s19, %s2650_s19   ;;  %s2084_s18 = sphi %s2141_s18, %s2649_s18  }
   0x5   : > { %s31_s26 = sadd.s32 1, %s2100_s22  ;;  %s167_s27 = sadd.s32 1, %s2092_s20 }
   0x6   : > { %p33_p0 = scmp.ge.s32.totalorder %s31_s26, 2  ;;  %p177_p1 = scmp.ne.s32.totalorder %s2092_s20, %s2088_s19 }
   0x7   : > { %p178_p2 = scmp.eq.s32.totalorder %s1654_s24, 1  ;;  %p183_p3 = scmp.ne.s32.totalorder %s2088_s19, %s2084_s18 }
   0x8   : > { %s2655_s26 = smov (%p33_p0, %s31_s26), 0  ;;  %p184_p5 = scmp.eq.s32.totalorder %s1655_s25, 1 }
   0x9   : > { %p2181_p4 = por %p178_p2, %p177_p1  ;;  %s162_s29 = ssub.s32 %s2100_s22, %s2655_s26 }
   0xa   : > { %p1659_p6 = scmp.ge.s32.totalorder %s2104_s23, 1  ;;  %p165_p7 = scmp.eq.s32.totalorder %s162_s29, 0 }
   0xb   : > { %p2188_p8 = por %p184_p5, %p183_p3  ;;  %p237_p9 = scmp.lt.s32.totalorder %s2104_s23, 3 }
   0xc   : > { %s2194_s6 = scalar_select %p165_p7, %s2092_s20, %s167_s27  }
   0xd   : > { %p238_p10 = pnand %p1659_p6, %p237_p9 }
   0xe   : > { %s1661_s7 = sshll.u32 (!%p238_p10), %s2096_s21, 4  ;;  %s1663_s27 = sshll.u32 (!%p238_p10), %s2096_s21, 2 }
   0xf   : > { %241 = sbr.rel (%p238_p10) target bundleno = 605 (0x25d), region = 36  ;;  %p285_p11 = scmp.lt.s32.totalorder (!%p238_p10), %s1661_s7, 31 }
  0x10   : > { %p297_p12 = scmp.lt.s32.totalorder (!%p238_p10), %s1663_s27, 7  ;;  %s281_s14 = sand.u32 (!%p238_p10), 1, %s2088_s19  }
  0x11   : > { %s1660_s15 = sshll.u32 (!%p238_p10), %s281_s14, 7  ;;  %s1740_s17 = sshll.u32 (!%p238_p10), %s2096_s21, 11 }
  0x12   : > { %s2419_s16 = scalar_lea.vmem (!%p238_p10), [#allocation3], %s1660_s15  ;;  %s2108_s21 = smov (!%p238_p10), [#allocation3]  }
  0x13   : > { %s1524_s24 = sshll.u32 (!%p238_p10), %s2419_s16, 4  ;;  %s2032_s10 = sshll.u32 (!%p238_p10), %s2108_s21, 4  ;;  %s2553_s24 = int_to_ptr.vmem [resolvable:$true] %s1524_s24  ;;  %s2033_s10 = int_to_ptr.vmem [resolvable:$false] %s2032_s10 }
  0x14   : > { %v2106_v0 = vmov 0   ;;  %s2657_s7 = smov (!%p285_p11, %s1661_s7), 31  ;;  %v1884_v1 = vld [vmem:[%s2643_s2 + $0x78] sm:$0xff]   ;;  %v1886_v17 = vld [vmem:[%s2643_s2 + $0x70] sm:$0xff]   ;;  %v1888_v21 = vld [vmem:[%s2643_s2 + $0x68] sm:$0xff]   ;;  %s2659_s27 = smov (!%p297_p12, %s1663_s27), 7 }
  0x15   : > { %1881 = vset.pattern.permute.xlu1 %v2106_v0  ;;  %1880 = vset.pattern.permute.xlu0 %v2106_v0  ;;  %s1662_s8 = sshll.u32 %s2657_s7, 3  ;;  %v1885_v13 = vld [vmem:[%s2643_s2 + $0x38] sm:$0xff]   ;;  %v1887_v19 = vld [vmem:[%s2643_s2 + $0x30] sm:$0xff]   ;;  %v1889_v24 = vld [vmem:[%s2643_s2 + $0x28] sm:$0xff]   ;;  %s1722_s29 = sshll.u32 %s2659_s27, 4 }
  0x16   : > { %s2205_s11 = scalar_lea.vmem %s2641_s0, %s1662_s8  ;;  %1741 = vmatprep.subr.bf16.mxu0 %v1884_v1  ;;  %1805 = vmatprep.subr.bf16.mxu1 %v1884_v1  ;;  %v1890_v25 = vld [vmem:[%s2643_s2 + $0x60] sm:$0xff]   ;;  %v1892_v29 = vld [vmem:[%s2643_s2 + $0x58] sm:$0xff]   ;;  %v1894_v33 = vld [vmem:[%s2643_s2 + $0x50] sm:$0xff]   ;;  %v577_v1 = vlaneseq  ;;  %s2278_s13 = scalar_lea.vmem %s2644_s3, %s1722_s29 }
  0x17   : > { %v344_v2 = vld [vmem:[%s2205_s11 + $0x40] sm:$0xff]  ;;  %v345_v4 = vld [vmem:[%s2205_s11 + $0x48] sm:$0xff]  ;;  %v339_v12 = vld [vmem:[%s2205_s11 + $0x18] sm:$0xff]  ;;  %1742 = vmatpush3.bf16.msra.mxu0 %v1885_v13  ;;  %1813 = vmatpush3.bf16.msra.mxu1 %v1885_v13  ;;  %s2551_s29 = scalar_lea.hbm %s2646_s5, %s1740_s17  ;;  %s2028_s9 = scalar_lea.vmem %s2553_s24, 2048 }
  0x18   : > { %v336_v3 = vld [vmem:[%s2205_s11] sm:$0xff]  ;;  %v470_v5 = vsub.f32 0.0, %v344_v2  ;;  %v337_v7 = vld [vmem:[%s2205_s11 + $0x8] sm:$0xff]  ;;  %v471_v8 = vsub.f32 0.0, %v345_v4  ;;  %v338_v14 = vld [vmem:[%s2205_s11 + $0x10] sm:$0xff]  ;;  %v465_v18 = vsub.f32 0.0, %v339_v12  ;;  %1743 = vmatprep.subr.bf16.mxu0 %v1886_v17  ;;  %1806 = vmatprep.subr.bf16.mxu1 %v1886_v17  ;;  %p2029_p13 = scmp.ne.s32.totalorder %s2553_s24, %s2028_s9  ;;  %p2035_p2 = scmp.lt.s32.totalorder %s2553_s24, %s2033_s10 }
  0x19   : > { %v462_v6 = vsub.f32 0.0, %v336_v3  ;;  %v463_v9 = vsub.f32 0.0, %v337_v7  ;;  %v478_v10 = vmul.f32 -0.2, %v336_v3  ;;  %v479_v11 = vmul.f32 -0.2, %v337_v7 }
  0x1a   : > { %538 = vperm.xlu1 %1881, %v470_v5   ;;  %v486_v15 = vmul.f32 -0.2, %v344_v2  ;;  %v487_v16 = vmul.f32 -0.2, %v345_v4  ;;  %v464_v20 = vsub.f32 0.0, %v338_v14  ;;  %v347_v22 = vld [vmem:[%s2205_s11 + $0x58] sm:$0xff]  ;;  %p2030_p0 = pnand %p2029_p13, %p2181_p4 }
  0x1b   : > { %498 = vperm.xlu0 %1880, %v462_v6   ;;  %v346_v23 = vld [vmem:[%s2205_s11 + $0x50] sm:$0xff]  ;;  %1744 = vmatpush3.bf16.msra.mxu0 %v1887_v19  ;;  %v473_v26 = vsub.f32 0.0, %v347_v22  ;;  %v1891_v28 = vld [vmem:[%s2643_s2 + $0x20] sm:$0xff]   ;;  %v481_v30 = vmul.f32 -0.2, %v339_v12  ;;  %v1893_v32 = vld [vmem:[%s2643_s2 + $0x18] sm:$0xff]  }
  0x1c   : > { %1814 = vmatpush3.bf16.msra.mxu1 %v1887_v19  ;;  %1745 = vmatprep.subr.bf16.mxu0 %v1888_v21  ;;  %v472_v27 = vsub.f32 0.0, %v346_v23  ;;  %v480_v31 = vmul.f32 -0.2, %v338_v14  ;;  %v489_v34 = vmul.f32 -0.2, %v347_v22  ;;  %v341_v36 = vld [vmem:[%s2205_s11 + $0x28] sm:$0xff]  ;;  %p2031_p1 = pneg %p2030_p0 }
  0x1d   : > { %1807 = vmatprep.subr.bf16.mxu1 %v1888_v21  ;;  %v488_v35 = vmul.f32 -0.2, %v346_v23  ;;  %v340_v37 = vld [vmem:[%s2205_s11 + $0x20] sm:$0xff]  ;;  %v1895_v38 = vld [vmem:[%s2643_s2 + $0x10] sm:$0xff]   ;;  %v1896_v39 = vld [vmem:[%s2643_s2 + $0x48] sm:$0xff]   ;;  %v467_v40 = vsub.f32 0.0, %v341_v36 }
  0x1e   : > { %543 = vperm.xlu1 %1881, %v471_v8   ;;  %v466_v41 = vsub.f32 0.0, %v340_v37  ;;  %v349_v42 = vld [vmem:[%s2205_s11 + $0x68] sm:$0xff]  ;;  %v348_v43 = vld [vmem:[%s2205_s11 + $0x60] sm:$0xff]  ;;  %v483_v49 = vmul.f32 -0.2, %v341_v36  ;;  %v343_v53 = vld [vmem:[%s2205_s11 + $0x38] sm:$0xff] }
  0x1f   : > { %503 = vperm.xlu0 %1880, %v463_v9   ;;  %1746 = vmatpush3.bf16.msra.mxu0 %v1889_v24  ;;  %v1897_v44 = vld [vmem:[%s2643_s2 + $0x8] sm:$0xff]   ;;  %v1898_v45 = vld [vmem:[%s2643_s2 + $0x40] sm:$0xff]   ;;  %v475_v46 = vsub.f32 0.0, %v349_v42  ;;  %v474_v47 = vsub.f32 0.0, %v348_v43  ;;  %v482_v50 = vmul.f32 -0.2, %v340_v37 }
  0x20   : > { %1815 = vmatpush3.bf16.msra.mxu1 %v1889_v24  ;;  %1747 = vmatprep.subr.bf16.mxu0 %v1890_v25  ;;  %v1899_v48 = vld [vmem:[%s2643_s2] sm:$0xff]   ;;  %v491_v51 = vmul.f32 -0.2, %v349_v42  ;;  %v490_v52 = vmul.f32 -0.2, %v348_v43  ;;  %v342_v54 = vld [vmem:[%s2205_s11 + $0x30] sm:$0xff] }
  0x21   : > { %1808 = vmatprep.subr.bf16.mxu1 %v1890_v25  ;;  %v469_v55 = vsub.f32 0.0, %v343_v53  ;;  %v468_v56 = vsub.f32 0.0, %v342_v54  ;;  %v351_v57 = vld [vmem:[%s2205_s11 + $0x78] sm:$0xff]  ;;  %v350_v58 = vld [vmem:[%s2205_s11 + $0x70] sm:$0xff]  ;;  %v485_v61 = vmul.f32 -0.2, %v343_v53 }
  0x22   : > { %626 = vperm.xlu1 %1881, %v479_v11   ;;  %v477_v59 = vsub.f32 0.0, %v351_v57  ;;  %v476_v60 = vsub.f32 0.0, %v350_v58  ;;  %v484_v62 = vmul.f32 -0.2, %v342_v54  ;;  %v493_v63 = vmul.f32 -0.2, %v351_v57 }
  0x23   : > { %621 = vperm.xlu0 %1880, %v478_v10   ;;  %1748 = vmatpush3.bf16.msra.mxu0 %v1891_v28  ;;  %v492_v0 = vmul.f32 -0.2, %v350_v58  ;;  %v352_v2 = vld [vmem:[%s2642_s1] sm:$0x3]  ;;  %v578_v3 = vshrl.u32 %v577_v1, 7  ;;  %v354_v6 = vld [vmem:[%s2278_s13 + $0x8] sm:$0xff] }
  0x24   : > { %1816 = vmatpush3.bf16.msra.mxu1 %v1891_v28  ;;  %1749 = vmatprep.subr.bf16.mxu0 %v1892_v29  ;;  %v494_v4 = vsub.f32 0.0, %v352_v2  ;;  %v353_v5 = vld [vmem:[%s2278_s13] sm:$0xff]  ;;  %v495_v9 = vmul.f32 -0.2, %v352_v2  ;;  %v358_v11 = vld [vmem:[%s2278_s13 + $0x28] sm:$0xff]  ;;  %v364_v17 = vunpack.c.1.s8 %v354_v6  ;;  %v2327_v58 = vld [vmem:[%s2278_s13 + $0x18] sm:$0xff] }
  0x25   : > { %1809 = vmatprep.subr.bf16.mxu1 %v1892_v29  ;;  %v579_v7 = vsub.s32 0, %v578_v3  ;;  %v583_v8 = vsub.s32 1, %v578_v3  ;;  %v357_v10 = vld [vmem:[%s2278_s13 + $0x20] sm:$0xff]  ;;  %v361_v14 = vunpack.c.0.s8 %v353_v5  ;;  %v378_v19 = vunpack.c.0.s8 %v358_v11  ;;  %s2557_s11 = scalar_lea.sflag [#allocation4], %s281_s14  ;;  %s2034_s12 = scalar_lea.vmem %s2033_s10, 4096 }
  0x26   : > { %666 = vperm.xlu1 %1881, %v487_v16   ;;  %v363_v16 = vunpack.c.1.s8 %v353_v5  ;;  %v380_v21 = vunpack.c.1.s8 %v358_v11  ;;  %v365_v28 = vunpack.c.2.s8 %v353_v5  ;;  %v367_v29 = vunpack.c.3.s8 %v353_v5  ;;  %p2036_p3 = scmp.lt.s32.totalorder %s2034_s12, %s2028_s9 }
  0x27   : > { %661 = vperm.xlu0 %1880, %v486_v15   ;;  %1750 = vmatpush3.bf16.msra.mxu0 %v1893_v32  ;;  %v362_v15 = vunpack.c.0.s8 %v354_v6  ;;  %v2286_v22 = vrot.slane %v494_v4, %v579_v7  ;;  %v2288_v23 = vrot.slane %v494_v4, %v583_v8  ;;  %v2290_v24 = vrot.slane %v495_v9, %v579_v7 }
  0x28   : > { %1817 = vmatpush3.bf16.msra.mxu1 %v1893_v32  ;;  %1751 = vmatprep.subr.bf16.mxu0 %v1894_v33  ;;  %v2292_v25 = vrot.slane %v495_v9, %v583_v8  ;;  %v2294_v32 = vcvt.s32.f32 %v361_v14  ;;  %v2304_v37 = vcvt.s32.f32 %v378_v19  ;;  %v381_v42 = vunpack.c.2.s8 %v357_v10  ;;  %p2037_p5 = por %p2036_p3, %p2035_p2 }
  0x29   : > { %1810 = vmatprep.subr.bf16.mxu1 %v1894_v33  ;;  %v2296_v33 = vcvt.s32.f32 %v362_v15  ;;  %v383_v43 = vunpack.c.3.s8 %v357_v10  ;;  %v370_v8 = vunpack.c.0.s8 %v2327_v58 }
  0x2a   : > { %513 = vperm.xlu1 %1881, %v465_v18   ;;  %v377_v18 = vunpack.c.0.s8 %v357_v10  ;;  %p2038_p6 = pnand %p2037_p5, %p2031_p1 }
  0x2b   : > { %508 = vperm.xlu0 %1880, %v464_v20   ;;  %1752 = vmatpush3.bf16.msra.mxu0 %v1895_v38  ;;  %v379_v20 = vunpack.c.1.s8 %v357_v10 }
  0x2c   : > { %1818 = vmatpush3.bf16.msra.mxu1 %v1895_v38  ;;  %1753 = vmatprep.subr.bf16.mxu0 %v1896_v39  ;;  %v2302_v36 = vcvt.s32.f32 %v377_v18  ;;  %v2347_v18 = vld [vmem:[%s2278_s13 + $0x10] sm:$0xff] }
  0x2d   : > { %1811 = vmatprep.subr.bf16.mxu1 %v1896_v39  ;;  %v2306_v38 = vcvt.s32.f32 %v379_v20  ;;  %v2308_v39 = vcvt.s32.f32 %v380_v21 }
  0x2e   : > { %553 = vperm.xlu1 %1881, %v473_v26   ;;  %v366_v26 = vunpack.c.2.s8 %v354_v6 }
  0x2f   : > { %548 = vperm.xlu0 %1880, %v472_v27   ;;  %1754 = vmatpush3.bf16.msra.mxu0 %v1897_v44  ;;  %v368_v27 = vunpack.c.3.s8 %v354_v6 }
  0x30   : > { %1819 = vmatpush3.bf16.msra.mxu1 %v1897_v44  ;;  %1755 = vmatprep.subr.bf16.mxu0 %v1898_v45  ;;  %v2310_v44 = vcvt.s32.f32 %v366_v26  ;;  %v372_v26 = vunpack.c.1.s8 %v2327_v58 }
  0x31   : > { %1812 = vmatprep.subr.bf16.mxu1 %v1898_v45  ;;  %v2312_v45 = vcvt.s32.f32 %v368_v27 }
  0x32   : > { %636 = vperm.xlu1 %1881, %v481_v30  }
  0x33   : > { %631 = vperm.xlu0 %1880, %v480_v31   ;;  %1756 = vmatpush3.bf16.msra.mxu0 %v1899_v48 }
  0x34   : > { %1820 = vmatpush3.bf16.msra.mxu1 %v1899_v48 }
  0x36   : > { %676 = vperm.xlu1 %1881, %v489_v34   ;;  %v2298_v34 = vcvt.s32.f32 %v363_v16 }
  0x37   : > { %671 = vperm.xlu0 %1880, %v488_v35   ;;  %v2300_v35 = vcvt.s32.f32 %v364_v17 }
  0x3a   : > { %523 = vperm.xlu1 %1881, %v467_v40   ;;  %v382_v40 = vunpack.c.2.s8 %v358_v11 }
  0x3b   : > { %518 = vperm.xlu0 %1880, %v466_v41   ;;  %v384_v41 = vunpack.c.3.s8 %v358_v11 }
  0x3e   : > { %563 = vperm.xlu1 %1881, %v475_v46   ;;  %v2314_v46 = vcvt.s32.f32 %v365_v28 }
  0x3f   : > { %558 = vperm.xlu0 %1880, %v474_v47   ;;  %v2316_v47 = vcvt.s32.f32 %v367_v29 }
  0x42   : > { %646 = vperm.xlu1 %1881, %v483_v49  }
  0x43   : > { %641 = vperm.xlu0 %1880, %v482_v50  }
  0x46   : > { %686 = vperm.xlu1 %1881, %v491_v51  }
  0x47   : > { %681 = vperm.xlu0 %1880, %v490_v52  }
  0x4a   : > { %533 = vperm.xlu1 %1881, %v469_v55  }
  0x4b   : > { %528 = vperm.xlu0 %1880, %v468_v56  }
  0x4e   : > { %573 = vperm.xlu1 %1881, %v477_v59   ;;  %v2329_v59 = vcvt.s32.f32 %v382_v40 }
  0x4f   : > { %568 = vperm.xlu0 %1880, %v476_v60   ;;  %v2331_v60 = vcvt.s32.f32 %v384_v41  ;;  %v2353_v41 = vld [vmem:[%s2278_s13 + $0x38] sm:$0xff] }
  0x52   : > { %656 = vperm.xlu1 %1881, %v485_v61   ;;  %v2333_v61 = vcvt.s32.f32 %v381_v42 }
  0x53   : > { %651 = vperm.xlu0 %1880, %v484_v62   ;;  %v2335_v62 = vcvt.s32.f32 %v383_v43 }
  0x56   : > { %696 = vperm.xlu1 %1881, %v493_v63  }
  0x57   : > { %691 = vperm.xlu0 %1880, %v492_v0  }
  0x95   : > { %v2284_v12 = vpop.permute.xlu1 %538 }
  0x96   : > { %v499_v13 = vpop.permute.xlu0 %498  ;;  %v603_v3 = vadd.f32 %v2286_v22, %v2284_v12  ;;  %v604_v19 = vadd.f32 %v2288_v23, %v2284_v12 }
  0x97   : > { %v587_v48 = vadd.f32 %v2286_v22, %v499_v13  ;;  %v588_v49 = vadd.f32 %v2288_v23, %v499_v13 }
  0x99   : > { %v544_v30 = vpop.permute.xlu1 %543 }
  0x9a   : > { %v504_v31 = vpop.permute.xlu0 %503  ;;  %v605_v4 = vadd.f32 %v2286_v22, %v544_v30  ;;  %v606_v5 = vadd.f32 %v2288_v23, %v544_v30 }
  0x9b   : > { %v589_v50 = vadd.f32 %v2286_v22, %v504_v31  ;;  %v590_v51 = vadd.f32 %v2288_v23, %v504_v31 }
  0x9d   : > { %v627_v52 = vpop.permute.xlu1 %626 }
  0x9e   : > { %v622_v53 = vpop.permute.xlu0 %621  ;;  %v712_v54 = vadd.f32 %v2290_v24, %v627_v52  ;;  %v713_v55 = vadd.f32 %v2292_v25, %v627_v52 }
  0x9f   : > { %v710_v56 = vadd.f32 %v2290_v24, %v622_v53  ;;  %v711_v57 = vadd.f32 %v2292_v25, %v622_v53  ;;  %v386_v53 = vunpack.c.0.s8 %v2353_v41 }
  0xa0   : > { %v744_v63 = vmin.f32 %v589_v50, %v712_v54  ;;  %v745_v0 = vmin.f32 %v590_v51, %v713_v55  ;;  %v388_v54 = vunpack.c.1.s8 %v2353_v41  ;;  %v2360_v55 = vld [vmem:[%s2278_s13 + $0x30] sm:$0xff] }
  0xa1   : > { %v742_v1 = vmin.f32 %v587_v48, %v710_v56  ;;  %v743_v2 = vmin.f32 %v588_v49, %v711_v57  ;;  %v667_v6 = vpop.permute.xlu1 %666  ;;  %v369_v48 = vunpack.c.0.s8 %v2347_v18  ;;  %v371_v49 = vunpack.c.1.s8 %v2347_v18 }
  0xa2   : > { %v662_v7 = vpop.permute.xlu0 %661  ;;  %v776_v9 = vmin.f32 %v744_v63, 80.0  ;;  %v777_v10 = vmin.f32 %v745_v0, 80.0  ;;  %v728_v14 = vadd.f32 %v2290_v24, %v667_v6  ;;  %v729_v15 = vadd.f32 %v2292_v25, %v667_v6 }
  0xa3   : > { %v774_v11 = vmin.f32 %v742_v1, 80.0  ;;  %v775_v13 = vmin.f32 %v743_v2, 80.0  ;;  %v726_v16 = vadd.f32 %v2290_v24, %v662_v7  ;;  %v727_v17 = vadd.f32 %v2292_v25, %v662_v7 }
  0xa4   : > { %v810_v20 = vmul.f32 1.442695, %v776_v9  ;;  %v812_v21 = vmul.f32 1.442695, %v777_v10  ;;  %v760_v28 = vmin.f32 %v605_v4, %v728_v14  ;;  %v761_v29 = vmin.f32 %v606_v5, %v729_v15 }
  0xa5   : > { %v806_v27 = vmul.f32 1.442695, %v774_v11  ;;  %v758_v30 = vmin.f32 %v603_v3, %v726_v16  ;;  %v514_v31 = vpop.permute.xlu1 %513  ;;  %v808_v42 = vmul.f32 1.442695, %v775_v13  ;;  %v759_v43 = vmin.f32 %v604_v19, %v727_v17 }
  0xa6   : > { %v509_v40 = vpop.permute.xlu0 %508  ;;  %1900 = vpow2.f32 %v810_v20  ;;  %v792_v12 = vmin.f32 %v760_v28, 80.0  ;;  %v793_v50 = vmin.f32 %v761_v29, 80.0  ;;  %v2362_v3 = vcvt.s32.f32 %v370_v8 }
  0xa7   : > { %v790_v51 = vmin.f32 %v758_v30, 80.0  ;;  %1902 = vpow2.f32 %v812_v21  ;;  %v791_v52 = vmin.f32 %v759_v43, 80.0  ;;  %v2364_v4 = vcvt.s32.f32 %v372_v26 }
  0xa8   : > { %1904 = vpow2.f32 %v806_v27  ;;  %v842_v56 = vmul.f32 1.442695, %v792_v12  ;;  %v844_v57 = vmul.f32 1.442695, %v793_v50  ;;  %v2366_v5 = vcvt.s32.f32 %v369_v48 }
  0xa9   : > { %v838_v63 = vmul.f32 1.442695, %v790_v51  ;;  %v554_v0 = vpop.permute.xlu1 %553  ;;  %1906 = vpow2.f32 %v808_v42  ;;  %v840_v2 = vmul.f32 1.442695, %v791_v52  ;;  %v385_v6 = vunpack.c.0.s8 %v2360_v55 }
  0xaa   : > { %v549_v1 = vpop.permute.xlu0 %548  ;;  %1908 = vpow2.f32 %v842_v56  ;;  %v387_v7 = vunpack.c.1.s8 %v2360_v55  ;;  %v2370_v9 = vcvt.s32.f32 %v371_v49  ;;  %v2372_v10 = vcvt.s32.f32 %v386_v53 }
  0xab   : > { %1910 = vpow2.f32 %v844_v57  ;;  %v2374_v11 = vcvt.s32.f32 %v388_v54  ;;  %v593_v8 = vadd.f32 %v2286_v22, %v514_v31  ;;  %v594_v13 = vadd.f32 %v2288_v23, %v514_v31 }
  0xac   : > { %1912 = vpow2.f32 %v838_v63  ;;  %v591_v14 = vadd.f32 %v2286_v22, %v509_v40  ;;  %v592_v21 = vadd.f32 %v2288_v23, %v509_v40  ;;  %v2384_v27 = vcvt.s32.f32 %v385_v6 }
  0xad   : > { %v637_v15 = vpop.permute.xlu1 %636  ;;  %1914 = vpow2.f32 %v840_v2  ;;  %v2386_v28 = vcvt.s32.f32 %v387_v7  ;;  %v609_v29 = vadd.f32 %v2286_v22, %v554_v0  ;;  %v610_v43 = vadd.f32 %v2288_v23, %v554_v0 }
  0xae   : > { %v632_v16 = vpop.permute.xlu0 %631  ;;  %v716_v17 = vadd.f32 %v2290_v24, %v637_v15  ;;  %v717_v19 = vadd.f32 %v2292_v25, %v637_v15  ;;  %v607_v48 = vadd.f32 %v2286_v22, %v549_v1  ;;  %v608_v49 = vadd.f32 %v2288_v23, %v549_v1 }
  0xaf   : > { %v714_v20 = vadd.f32 %v2290_v24, %v632_v16  ;;  %v715_v26 = vadd.f32 %v2292_v25, %v632_v16 }
  0xb0   : > { %v748_v30 = vmin.f32 %v593_v8, %v716_v17  ;;  %v749_v31 = vmin.f32 %v594_v13, %v717_v19 }
  0xb1   : > { %v746_v42 = vmin.f32 %v591_v14, %v714_v20  ;;  %v747_v12 = vmin.f32 %v592_v21, %v715_v26  ;;  %v677_v50 = vpop.permute.xlu1 %676 }
  0xb2   : > { %v672_v40 = vpop.permute.xlu0 %671  ;;  %v780_v51 = vmin.f32 %v748_v30, 80.0  ;;  %v781_v52 = vmin.f32 %v749_v31, 80.0  ;;  %v732_v54 = vadd.f32 %v2290_v24, %v677_v50  ;;  %v733_v57 = vadd.f32 %v2292_v25, %v677_v50 }
  0xb3   : > { %v778_v53 = vmin.f32 %v746_v42, 80.0  ;;  %v779_v56 = vmin.f32 %v747_v12, 80.0  ;;  %v730_v63 = vadd.f32 %v2290_v24, %v672_v40  ;;  %v731_v0 = vadd.f32 %v2292_v25, %v672_v40  ;;  %v1901_v2 = vpop.eup %1900 }
  0xb4   : > { %v818_v6 = vmul.f32 1.442695, %v780_v51  ;;  %v820_v7 = vmul.f32 1.442695, %v781_v52  ;;  %v764_v8 = vmin.f32 %v609_v29, %v732_v54  ;;  %v1903_v13 = vpop.eup %1902  ;;  %v765_v15 = vmin.f32 %v610_v43, %v733_v57 }
  0xb5   : > { %v814_v1 = vmul.f32 1.442695, %v778_v53  ;;  %v816_v14 = vmul.f32 1.442695, %v779_v56  ;;  %v762_v16 = vmin.f32 %v607_v48, %v730_v63  ;;  %v763_v17 = vmin.f32 %v608_v49, %v731_v0  ;;  %v524_v19 = vpop.permute.xlu1 %523  ;;  %v1905_v21 = vpop.eup %1904 }
  0xb6   : > { %v519_v20 = vpop.permute.xlu0 %518  ;;  %1916 = vpow2.f32 %v818_v6  ;;  %v796_v26 = vmin.f32 %v764_v8, 80.0  ;;  %v2398_v30 = vadd.f32 %v2286_v22, %v524_v19  ;;  %v2401_v31 = vadd.f32 %v2288_v23, %v524_v19  ;;  %v1907_v42 = vpop.eup %1906 }
  0xb7   : > { %1918 = vpow2.f32 %v820_v7  ;;  %v797_v29 = vmin.f32 %v765_v15, 80.0  ;;  %v794_v12 = vmin.f32 %v762_v16, 80.0  ;;  %v795_v43 = vmin.f32 %v763_v17, 80.0  ;;  %v1909_v48 = vpop.eup %1908 }
  0xb8   : > { %1920 = vpow2.f32 %v814_v1  ;;  %v850_v49 = vmul.f32 1.442695, %v796_v26  ;;  %v2404_v50 = vadd.f32 %v2286_v22, %v519_v20  ;;  %v2407_v40 = vadd.f32 %v2288_v23, %v519_v20  ;;  %v1911_v51 = vpop.eup %1910 }
  0xb9   : > { %1922 = vpow2.f32 %v816_v14  ;;  %v852_v52 = vmul.f32 1.442695, %v797_v29  ;;  %v846_v53 = vmul.f32 1.442695, %v794_v12  ;;  %v848_v54 = vmul.f32 1.442695, %v795_v43  ;;  %v564_v56 = vpop.permute.xlu1 %563  ;;  %v1913_v63 = vpop.eup %1912 }
  0xba   : > { %v559_v57 = vpop.permute.xlu0 %558  ;;  %1924 = vpow2.f32 %v850_v49  ;;  %v870_v0 = vmul.f32 %v1905_v21, %v2294_v32  ;;  %v871_v6 = vmul.f32 %v1907_v42, %v2296_v33  ;;  %v872_v7 = vmul.f32 %v1901_v2, %v2298_v34  ;;  %v1915_v1 = vpop.eup %1914 }
  0xbb   : > { %1926 = vpow2.f32 %v852_v52  ;;  %v873_v8 = vmul.f32 %v1903_v13, %v2300_v35  ;;  %v613_v15 = vadd.f32 %v2286_v22, %v564_v56  ;;  %v614_v14 = vadd.f32 %v2288_v23, %v564_v56 }
  0xbc   : > { %1928 = vpow2.f32 %v846_v53  ;;  %v1723_v16 = vpack.c.bf16 %v871_v6, %v870_v0  ;;  %v902_v17 = vpack.c.bf16 %v872_v7, %v870_v0  ;;  %v611_v19 = vadd.f32 %v2286_v22, %v559_v57 }
  0xbd   : > { %1930 = vpow2.f32 %v848_v54  ;;  %v903_v20 = vpack.c.bf16 %v873_v8, %v871_v6  ;;  %v1724_v32 = vpack.c.bf16 %v873_v8, %v872_v7  ;;  %v612_v33 = vadd.f32 %v2288_v23, %v559_v57  ;;  %v647_v21 = vpop.permute.xlu1 %646 }
  0xbe   : > { %v642_v34 = vpop.permute.xlu0 %641  ;;  %1239 = vst [vmem:[%s2419_s16] sm:$0xff] %v1723_v16  ;;  %v886_v35 = vmul.f32 %v1913_v63, %v2302_v36  ;;  %v887_v2 = vmul.f32 %v1915_v1, %v2304_v37  ;;  %v888_v13 = vmul.f32 %v1909_v48, %v2306_v38  ;;  %v889_v26 = vmul.f32 %v1911_v51, %v2308_v39 }
  0xbf   : > { %1062 = vmatprep.mubr.bf16.mxu0 %v903_v20  ;;  %1240 = vst [vmem:[%s2419_s16 + $0x8] sm:$0xff] %v1724_v32  ;;  %v720_v42 = vadd.f32 %v2290_v24, %v647_v21  ;;  %v721_v29 = vadd.f32 %v2292_v25, %v647_v21  ;;  %v718_v12 = vadd.f32 %v2290_v24, %v642_v34 }
  0xc0   : > { %v719_v43 = vadd.f32 %v2292_v25, %v642_v34  ;;  %1063 = vmatmul.mubr.bf16.vlgmr.msra.gmra.mxu0 %v902_v17  ;;  %v911_v36 = vpack.c.bf16 %v889_v26, %v887_v2  ;;  %v1731_v49 = vpack.c.bf16 %v887_v2, %v886_v35  ;;  %v1732_v37 = vpack.c.bf16 %v889_v26, %v888_v13 }
  0xc1   : > { %v910_v52 = vpack.c.bf16 %v888_v13, %v886_v35  ;;  %v752_v38 = vmin.f32 %v2398_v30, %v720_v42  ;;  %v753_v39 = vmin.f32 %v2401_v31, %v721_v29  ;;  %v750_v48 = vmin.f32 %v2404_v50, %v718_v12  ;;  %v687_v53 = vpop.permute.xlu1 %686 }
  0xc2   : > { %v751_v51 = vmin.f32 %v2407_v40, %v719_v43  ;;  %v682_v54 = vpop.permute.xlu0 %681  ;;  %1094 = vmatprep.mubr.bf16.mxu1 %v911_v36  ;;  %1247 = vst [vmem:[%s2419_s16 + $0x40] sm:$0xff] %v1731_v49  ;;  %1248 = vst [vmem:[%s2419_s16 + $0x48] sm:$0xff] %v1732_v37  ;;  %v736_v56 = vadd.f32 %v2290_v24, %v687_v53  ;;  %v737_v57 = vadd.f32 %v2292_v25, %v687_v53 }
  0xc3   : > { %v734_v63 = vadd.f32 %v2290_v24, %v682_v54  ;;  %v735_v0 = vadd.f32 %v2292_v25, %v682_v54  ;;  %v1917_v30 = vpop.eup %1916  ;;  %v784_v6 = vmin.f32 %v752_v38, 80.0  ;;  %v785_v31 = vmin.f32 %v753_v39, 80.0  ;;  %1095 = vmatmul.mubr.bf16.vlgmr.msra.gmra.mxu1 %v910_v52 }
  0xc4   : > { %v782_v50 = vmin.f32 %v750_v48, 80.0  ;;  %v783_v7 = vmin.f32 %v751_v51, 80.0  ;;  %v1919_v40 = vpop.eup %1918  ;;  %v768_v1 = vmin.f32 %v613_v15, %v736_v56  ;;  %v769_v8 = vmin.f32 %v614_v14, %v737_v57 }
  0xc5   : > { %v766_v16 = vmin.f32 %v611_v19, %v734_v63  ;;  %v767_v17 = vmin.f32 %v612_v33, %v735_v0  ;;  %v1921_v20 = vpop.eup %1920  ;;  %v826_v32 = vmul.f32 1.442695, %v784_v6  ;;  %v828_v21 = vmul.f32 1.442695, %v785_v31  ;;  %v534_v35 = vpop.permute.xlu1 %533 }
  0xc6   : > { %v822_v34 = vmul.f32 1.442695, %v782_v50  ;;  %v529_v2 = vpop.permute.xlu0 %528  ;;  %v375_v13 = vunpack.c.3.s8 %v2347_v18  ;;  %v1923_v26 = vpop.eup %1922  ;;  %v824_v42 = vmul.f32 1.442695, %v783_v7  ;;  %v800_v29 = vmin.f32 %v768_v1, 80.0 }
  0xc7   : > { %v801_v12 = vmin.f32 %v769_v8, 80.0  ;;  %v798_v43 = vmin.f32 %v766_v16, 80.0  ;;  %v1925_v36 = vpop.eup %1924  ;;  %1932 = vpow2.f32 %v826_v32  ;;  %v799_v49 = vmin.f32 %v767_v17, 80.0 }
  0xc8   : > { %v601_v15 = vadd.f32 %v2286_v22, %v534_v35  ;;  %v877_v14 = vmul.f32 %v1919_v40, %v2312_v45  ;;  %v1927_v19 = vpop.eup %1926  ;;  %1934 = vpow2.f32 %v828_v21  ;;  %v858_v33 = vmul.f32 1.442695, %v800_v29 }
  0xc9   : > { %v860_v37 = vmul.f32 1.442695, %v801_v12  ;;  %v602_v52 = vadd.f32 %v2288_v23, %v534_v35  ;;  %v1929_v38 = vpop.eup %1928  ;;  %1936 = vpow2.f32 %v822_v34  ;;  %v854_v39 = vmul.f32 1.442695, %v798_v43  ;;  %v574_v53 = vpop.permute.xlu1 %573 }
  0xca   : > { %v856_v48 = vmul.f32 1.442695, %v799_v49  ;;  %v599_v51 = vadd.f32 %v2286_v22, %v529_v2  ;;  %v569_v54 = vpop.permute.xlu0 %568  ;;  %v1931_v56 = vpop.eup %1930  ;;  %1938 = vpow2.f32 %v824_v42  ;;  %v600_v57 = vadd.f32 %v2288_v23, %v529_v2 }
  0xcb   : > { %v875_v45 = vmul.f32 %v1923_v26, %v2310_v44  ;;  %v617_v63 = vadd.f32 %v2286_v22, %v574_v53  ;;  %1940 = vpow2.f32 %v858_v33  ;;  %v2450_v0 = vadd.f32 %v2288_v23, %v574_v53 }
  0xcc   : > { %v874_v6 = vmul.f32 %v1921_v20, %v2314_v46  ;;  %v876_v31 = vmul.f32 %v1917_v30, %v2316_v47  ;;  %1942 = vpow2.f32 %v860_v37  ;;  %v615_v7 = vadd.f32 %v2286_v22, %v569_v54 }
  0xcd   : > { %v905_v50 = vpack.c.bf16 %v877_v14, %v875_v45  ;;  %v891_v40 = vmul.f32 %v1931_v56, %v2329_v59  ;;  %1944 = vpow2.f32 %v854_v39  ;;  %v657_v16 = vpop.permute.xlu1 %656  ;;  %v893_v46 = vmul.f32 %v1927_v19, %v2331_v60 }
  0xce   : > { %v904_v44 = vpack.c.bf16 %v876_v31, %v874_v6  ;;  %v1725_v1 = vpack.c.bf16 %v875_v45, %v874_v6  ;;  %v1726_v8 = vpack.c.bf16 %v877_v14, %v876_v31  ;;  %v652_v17 = vpop.permute.xlu0 %651  ;;  %1946 = vpow2.f32 %v856_v48 }
  0xcf   : > { %1070 = vmatprep.mubr.bf16.mxu0 %v905_v50  ;;  %v724_v47 = vadd.f32 %v2290_v24, %v657_v16  ;;  %v725_v30 = vadd.f32 %v2292_v25, %v657_v16  ;;  %v890_v22 = vmul.f32 %v1929_v38, %v2333_v61  ;;  %v892_v59 = vmul.f32 %v1925_v36, %v2335_v62 }
  0xd0   : > { %1071 = vmatmul.mubr.bf16.gmra.mxu0 %v904_v44  ;;  %1241 = vst [vmem:[%s2419_s16 + $0x10] sm:$0xff] %v1725_v1  ;;  %1242 = vst [vmem:[%s2419_s16 + $0x18] sm:$0xff] %v1726_v8  ;;  %v722_v20 = vadd.f32 %v2290_v24, %v652_v17  ;;  %v723_v32 = vadd.f32 %v2292_v25, %v652_v17  ;;  %v616_v21 = vadd.f32 %v2288_v23, %v569_v54 }
  0xd1   : > { %v913_v34 = vpack.c.bf16 %v893_v46, %v891_v40  ;;  %v756_v60 = vmin.f32 %v601_v15, %v724_v47  ;;  %v757_v35 = vmin.f32 %v602_v52, %v725_v30  ;;  %v912_v2 = vpack.c.bf16 %v892_v59, %v890_v22  ;;  %v697_v12 = vpop.permute.xlu1 %696 }
  0xd2   : > { %v1733_v26 = vpack.c.bf16 %v891_v40, %v890_v22  ;;  %v1734_v42 = vpack.c.bf16 %v893_v46, %v892_v59  ;;  %v754_v29 = vmin.f32 %v599_v51, %v722_v20  ;;  %v692_v43 = vpop.permute.xlu0 %691  ;;  %v755_v36 = vmin.f32 %v600_v57, %v723_v32 }
  0xd3   : > { %1102 = vmatprep.mubr.bf16.mxu1 %v913_v34  ;;  %v788_v61 = vmin.f32 %v756_v60, 80.0  ;;  %v789_v62 = vmin.f32 %v757_v35, 80.0  ;;  %v740_v49 = vadd.f32 %v2290_v24, %v697_v12  ;;  %v741_v14 = vadd.f32 %v2292_v25, %v697_v12 }
  0xd4   : > { %1103 = vmatmul.mubr.bf16.gmra.mxu1 %v912_v2  ;;  %1249 = vst [vmem:[%s2419_s16 + $0x50] sm:$0xff] %v1733_v26  ;;  %1250 = vst [vmem:[%s2419_s16 + $0x58] sm:$0xff] %v1734_v42  ;;  %v786_v23 = vmin.f32 %v754_v29, 80.0  ;;  %v738_v15 = vadd.f32 %v2290_v24, %v692_v43  ;;  %v739_v19 = vadd.f32 %v2292_v25, %v692_v43  ;;  %v1933_v33 = vpop.eup %1932  ;;  %v787_v38 = vmin.f32 %v755_v36, 80.0 }
  0xd5   : > { %v834_v37 = vmul.f32 1.442695, %v788_v61  ;;  %v836_v52 = vmul.f32 1.442695, %v789_v62  ;;  %v772_v39 = vmin.f32 %v617_v63, %v740_v49  ;;  %v1935_v48 = vpop.eup %1934  ;;  %v773_v53 = vmin.f32 %v2450_v0, %v741_v14 }
  0xd6   : > { %v830_v51 = vmul.f32 1.442695, %v786_v23  ;;  %v770_v54 = vmin.f32 %v615_v7, %v738_v15  ;;  %v771_v56 = vmin.f32 %v616_v21, %v739_v19  ;;  %v1937_v57 = vpop.eup %1936  ;;  %v832_v45 = vmul.f32 1.442695, %v787_v38 }
  0xd7   : > { %1948 = vpow2.f32 %v834_v37  ;;  %v804_v6 = vmin.f32 %v772_v39, 80.0  ;;  %v881_v31 = vmul.f32 %v1935_v48, %v2364_v4  ;;  %v1939_v24 = vpop.eup %1938  ;;  %v805_v25 = vmin.f32 %v773_v53, 80.0 }
  0xd8   : > { %1950 = vpow2.f32 %v836_v52  ;;  %v802_v50 = vmin.f32 %v770_v54, 80.0  ;;  %v803_v40 = vmin.f32 %v771_v56, 80.0  ;;  %v1941_v44 = vpop.eup %1940  ;;  %v879_v1 = vmul.f32 %v1939_v24, %v2362_v3 }
  0xd9   : > { %1952 = vpow2.f32 %v830_v51  ;;  %v866_v63 = vmul.f32 1.442695, %v804_v6  ;;  %v878_v0 = vmul.f32 %v1937_v57, %v2366_v5  ;;  %v1943_v7 = vpop.eup %1942  ;;  %v868_v8 = vmul.f32 1.442695, %v805_v25 }
  0xda   : > { %1954 = vpow2.f32 %v832_v45  ;;  %v862_v16 = vmul.f32 1.442695, %v802_v50  ;;  %v864_v17 = vmul.f32 1.442695, %v803_v40  ;;  %v1945_v46 = vpop.eup %1944  ;;  %v907_v4 = vpack.c.bf16 %v881_v31, %v879_v1 }
  0xdb   : > { %1956 = vpow2.f32 %v866_v63  ;;  %v880_v47 = vmul.f32 %v1933_v33, %v2370_v9  ;;  %v1727_v30 = vpack.c.bf16 %v879_v1, %v878_v0  ;;  %v1947_v22 = vpop.eup %1946  ;;  %v897_v59 = vmul.f32 %v1943_v7, %v2374_v11 }
  0xdc   : > { %1958 = vpow2.f32 %v868_v8  ;;  %v894_v3 = vmul.f32 %v1945_v46, %v2384_v27  ;;  %v896_v5 = vmul.f32 %v1941_v44, %v2386_v28  ;;  %1078 = vmatprep.mubr.bf16.mxu0 %v907_v4  ;;  %v895_v21 = vmul.f32 %v1947_v22, %v2372_v10 }
  0xdd   : > { %1960 = vpow2.f32 %v862_v16  ;;  %v906_v20 = vpack.c.bf16 %v880_v47, %v878_v0  ;;  %v1728_v32 = vpack.c.bf16 %v881_v31, %v880_v47  ;;  %1243 = vst [vmem:[%s2419_s16 + $0x20] sm:$0xff] %v1727_v30  ;;  %v376_v60 = vunpack.c.3.s8 %v2327_v58 }
  0xde   : > { %1962 = vpow2.f32 %v864_v17  ;;  %v914_v9 = vpack.c.bf16 %v896_v5, %v894_v3  ;;  %v1736_v34 = vpack.c.bf16 %v897_v59, %v896_v5  ;;  %v915_v11 = vpack.c.bf16 %v897_v59, %v895_v21 }
  0xdf   : > { %1079 = vmatmul.mubr.bf16.gmra.mxu0 %v906_v20  ;;  %1244 = vst [vmem:[%s2419_s16 + $0x28] sm:$0xff] %v1728_v32  ;;  %v1735_v27 = vpack.c.bf16 %v895_v21, %v894_v3  ;;  %v373_v28 = vunpack.c.2.s8 %v2347_v18  ;;  %v374_v35 = vunpack.c.2.s8 %v2327_v58  ;;  %v407_v2 = vcvt.s32.f32 %v375_v13 }
  0xe0   : > { %1252 = vst [vmem:[%s2419_s16 + $0x68] sm:$0xff] %v1736_v34  ;;  %1110 = vmatprep.mubr.bf16.mxu1 %v915_v11  ;;  %v391_v10 = vunpack.c.3.s8 %v2360_v55  ;;  %v408_v26 = vcvt.s32.f32 %v376_v60  ;;  %v392_v42 = vunpack.c.3.s8 %v2353_v41  ;;  %v389_v12 = vunpack.c.2.s8 %v2360_v55 }
  0xe1   : > { %1251 = vst [vmem:[%s2419_s16 + $0x60] sm:$0xff] %v1735_v27  ;;  %1111 = vmatmul.mubr.bf16.gmra.mxu1 %v914_v9  ;;  %v405_v29 = vcvt.s32.f32 %v373_v28  ;;  %v406_v61 = vcvt.s32.f32 %v374_v35  ;;  %v390_v62 = vunpack.c.2.s8 %v2353_v41  ;;  %v2107_v50 = vmov 8  }
  0xe2   : > { %v423_v49 = vcvt.s32.f32 %v391_v10  ;;  %v424_v13 = vcvt.s32.f32 %v392_v42  ;;  %v421_v19 = vcvt.s32.f32 %v389_v12  ;;  %1882 = vset.pattern.permute.xlu0 %v2107_v50  ;;  %1883 = vset.pattern.permute.xlu1 %v2107_v50 }
  0xe3   : > { %v422_v38 = vcvt.s32.f32 %v390_v62 }
  0xe4   : > { %v1949_v43 = vpop.eup %1948 }
  0xe5   : > { %v1951_v36 = vpop.eup %1950  ;;  %v884_v58 = vmul.f32 %v1949_v43, %v407_v2 }
  0xe6   : > { %v1953_v23 = vpop.eup %1952  ;;  %v885_v18 = vmul.f32 %v1951_v36, %v408_v26 }
  0xe7   : > { %v1955_v14 = vpop.eup %1954  ;;  %v882_v15 = vmul.f32 %v1953_v23, %v405_v29 }
  0xe8   : > { %v1957_v33 = vpop.eup %1956  ;;  %v883_v37 = vmul.f32 %v1955_v14, %v406_v61  ;;  %v1730_v52 = vpack.c.bf16 %v885_v18, %v884_v58 }
  0xe9   : > { %v1959_v55 = vpop.eup %1958  ;;  %v908_v39 = vpack.c.bf16 %v884_v58, %v882_v15  ;;  %v900_v48 = vmul.f32 %v1957_v33, %v423_v49 }
  0xea   : > { %v1961_v41 = vpop.eup %1960  ;;  %v909_v51 = vpack.c.bf16 %v885_v18, %v883_v37  ;;  %v1729_v53 = vpack.c.bf16 %v883_v37, %v882_v15  ;;  %1246 = vst [vmem:[%s2419_s16 + $0x38] sm:$0xff] %v1730_v52  ;;  %v901_v54 = vmul.f32 %v1959_v55, %v424_v13 }
  0xeb   : > { %v1963_v56 = vpop.eup %1962  ;;  %v898_v57 = vmul.f32 %v1961_v41, %v421_v19 }
  0xec   : > { %1086 = vmatprep.mubr.bf16.mxu0 %v909_v51  ;;  %1245 = vst [vmem:[%s2419_s16 + $0x30] sm:$0xff] %v1729_v53  ;;  %v899_v45 = vmul.f32 %v1963_v56, %v422_v38  ;;  %v1738_v6 = vpack.c.bf16 %v901_v54, %v900_v48 }
  0xed   : > { %1087 = vmatmul.mubr.bf16.gmra.mxu0 %v908_v39  ;;  %v916_v31 = vpack.c.bf16 %v900_v48, %v898_v57 }
  0xee   : > { %v917_v24 = vpack.c.bf16 %v901_v54, %v899_v45  ;;  %v1737_v25 = vpack.c.bf16 %v899_v45, %v898_v57  ;;  %1254 = vst [vmem:[%s2419_s16 + $0x78] sm:$0xff] %v1738_v6 }
  0xf0   : > { %1118 = vmatprep.mubr.bf16.mxu1 %v917_v24  ;;  %1253 = vst [vmem:[%s2419_s16 + $0x70] sm:$0xff] %v1737_v25 }
  0xf1   : > { %1119 = vmatmul.mubr.bf16.gmra.mxu1 %v916_v31 }
 0x180   : > { %v1757_v40 = vpop.f32.mrf.mxu0 }
 0x182   : > { %v1758_v44 = vpop.f32.mrf.mxu0 }
 0x183   : > { %v2498_v63 = vadd.f32 %v1758_v44, %v1757_v40  ;;  %v1781_v1 = vpop.f32.mrf.mxu1 }
 0x184   : > { %v1760_v0 = vpop.f32.mrf.mxu0 }
 0x185   : > { %v1274_v7 = vmax.f32 %v2498_v63, 1e-30  ;;  %v1782_v8 = vpop.f32.mrf.mxu1 }
 0x186   : > { %v1761_v16 = vpop.f32.mrf.mxu0  ;;  %v2501_v17 = vadd.f32 %v1782_v8, %v1781_v1 }
 0x187   : > { %1964 = vrcp.f32 %v1274_v7  ;;  %v2503_v46 = vadd.f32 %v1761_v16, %v1760_v0  ;;  %v1784_v4 = vpop.f32.mrf.mxu1 }
 0x188   : > { %v1282_v47 = vmax.f32 %v2501_v17, 1e-30 }
 0x189   : > { %v1275_v30 = vmax.f32 %v2503_v46, 1e-30  ;;  %v1785_v22 = vpop.f32.mrf.mxu1 }
 0x18a   : > { %1966 = vrcp.f32 %v1282_v47  ;;  %v2507_v59 = vadd.f32 %v1785_v22, %v1784_v4 }
 0x18b   : > { %1968 = vrcp.f32 %v1275_v30 }
 0x18c   : > { %v1283_v3 = vmax.f32 %v2507_v59, 1e-30 }
 0x18e   : > { %1970 = vrcp.f32 %v1283_v3 }
 0x190   : > { %v1763_v5 = vpop.f32.mrf.mxu0 }
 0x192   : > { %v1764_v20 = vpop.f32.mrf.mxu0 }
 0x193   : > { %v2510_v32 = vadd.f32 %v1764_v20, %v1763_v5 }
 0x194   : > { %v1766_v21 = vpop.f32.mrf.mxu0  ;;  %v1787_v9 = vpop.f32.mrf.mxu1 }
 0x195   : > { %v1965_v34 = vpop.eup %1964  ;;  %v1276_v60 = vmax.f32 %v2510_v32, 1e-30 }
 0x196   : > { %1308 = vperm.xlu0 %1882, %v1965_v34   ;;  %v1767_v11 = vpop.f32.mrf.mxu0  ;;  %v1788_v27 = vpop.f32.mrf.mxu1 }
 0x197   : > { %1972 = vrcp.f32 %v1276_v60  ;;  %v2513_v28 = vadd.f32 %v1767_v11, %v1766_v21  ;;  %v2515_v35 = vadd.f32 %v1788_v27, %v1787_v9  ;;  %v1967_v2 = vpop.eup %1966 }
 0x198   : > { %v1790_v10 = vpop.f32.mrf.mxu1  ;;  %1348 = vperm.xlu1 %1883, %v1967_v2   ;;  %v1969_v12 = vpop.eup %1968 }
 0x199   : > { %v1277_v26 = vmax.f32 %v2513_v28, 1e-30  ;;  %v1284_v42 = vmax.f32 %v2515_v35, 1e-30 }
 0x19a   : > { %v1791_v29 = vpop.f32.mrf.mxu1 }
 0x19b   : > { %1974 = vrcp.f32 %v1277_v26  ;;  %v2519_v43 = vadd.f32 %v1791_v29, %v1790_v10  ;;  %v1971_v61 = vpop.eup %1970 }
 0x19c   : > { %1976 = vrcp.f32 %v1284_v42  ;;  %1353 = vperm.xlu0 %1882, %v1971_v61   ;;  %1313 = vperm.xlu1 %1883, %v1969_v12  }
 0x19d   : > { %v1285_v62 = vmax.f32 %v2519_v43, 1e-30 }
 0x19f   : > { %1978 = vrcp.f32 %v1285_v62  ;;  %v1769_v36 = vpop.f32.mrf.mxu0 }
 0x1a1   : > { %v1770_v58 = vpop.f32.mrf.mxu0  ;;  %v1793_v23 = vpop.f32.mrf.mxu1 }
 0x1a2   : > { %v2522_v49 = vadd.f32 %v1770_v58, %v1769_v36 }
 0x1a3   : > { %v1772_v18 = vpop.f32.mrf.mxu0  ;;  %v1794_v15 = vpop.f32.mrf.mxu1 }
 0x1a4   : > { %v1973_v13 = vpop.eup %1972  ;;  %v1278_v14 = vmax.f32 %v2522_v49, 1e-30  ;;  %v2525_v33 = vadd.f32 %v1794_v15, %v1793_v23 }
 0x1a5   : > { %1318 = vperm.xlu1 %1883, %v1973_v13   ;;  %v1773_v19 = vpop.f32.mrf.mxu0  ;;  %v1796_v52 = vpop.f32.mrf.mxu1 }
 0x1a6   : > { %1980 = vrcp.f32 %v1278_v14  ;;  %v2527_v37 = vadd.f32 %v1773_v19, %v1772_v18  ;;  %v1286_v38 = vmax.f32 %v2525_v33, 1e-30 }
 0x1a7   : > { %v1797_v48 = vpop.f32.mrf.mxu1 }
 0x1a8   : > { %v1975_v55 = vpop.eup %1974  ;;  %v1279_v39 = vmax.f32 %v2527_v37, 1e-30  ;;  %1982 = vrcp.f32 %v1286_v38  ;;  %v2531_v51 = vadd.f32 %v1797_v48, %v1796_v52 }
 0x1a9   : > { %v1977_v41 = vpop.eup %1976  ;;  %1323 = vperm.xlu0 %1882, %v1975_v55  }
 0x1aa   : > { %1984 = vrcp.f32 %v1279_v39  ;;  %1358 = vperm.xlu1 %1883, %v1977_v41   ;;  %v1287_v53 = vmax.f32 %v2531_v51, 1e-30 }
 0x1ac   : > { %v1979_v54 = vpop.eup %1978  ;;  %1986 = vrcp.f32 %v1287_v53 }
 0x1ad   : > { %1363 = vperm.xlu0 %1882, %v1979_v54   ;;  %v1775_v56 = vpop.f32.mrf.mxu0 }
 0x1af   : > { %v1776_v57 = vpop.f32.mrf.mxu0 }
 0x1b0   : > { %v2534_v45 = vadd.f32 %v1776_v57, %v1775_v56 }
 0x1b1   : > { %v1778_v6 = vpop.f32.mrf.mxu0  ;;  %v1799_v31 = vpop.f32.mrf.mxu1 }
 0x1b2   : > { %v1280_v24 = vmax.f32 %v2534_v45, 1e-30 }
 0x1b3   : > { %v1981_v25 = vpop.eup %1980  ;;  %v1779_v50 = vpop.f32.mrf.mxu0 }
 0x1b4   : > { %v1800_v40 = vpop.f32.mrf.mxu1  ;;  %1988 = vrcp.f32 %v1280_v24  ;;  %1328 = vperm.xlu1 %1883, %v1981_v25   ;;  %v2537_v44 = vadd.f32 %v1779_v50, %v1778_v6 }
 0x1b5   : > { %v2539_v1 = vadd.f32 %v1800_v40, %v1799_v31  ;;  %v1983_v7 = vpop.eup %1982 }
 0x1b6   : > { %v1802_v0 = vpop.f32.mrf.mxu1  ;;  %v1281_v8 = vmax.f32 %v2537_v44, 1e-30 }
 0x1b7   : > { %v1288_v16 = vmax.f32 %v2539_v1, 1e-30  ;;  %v1985_v4 = vpop.eup %1984 }
 0x1b8   : > { %v1803_v47 = vpop.f32.mrf.mxu1  ;;  %1990 = vrcp.f32 %v1281_v8  ;;  %1333 = vperm.xlu0 %1882, %v1985_v4   ;;  %1368 = vperm.xlu1 %1883, %v1983_v7  }
 0x1b9   : > { %v2543_v30 = vadd.f32 %v1803_v47, %v1802_v0  ;;  %1992 = vrcp.f32 %v1288_v16  ;;  %v1987_v22 = vpop.eup %1986 }
 0x1bb   : > { %v1289_v3 = vmax.f32 %v2543_v30, 1e-30 }
 0x1bc   : > { %1373 = vperm.xlu0 %1882, %v1987_v22  }
 0x1bd   : > { %1994 = vrcp.f32 %v1289_v3 }
 0x1c1   : > { %v1989_v5 = vpop.eup %1988 }
 0x1c2   : > { %1338 = vperm.xlu1 %1883, %v1989_v5  }
 0x1c5   : > { %v1991_v20 = vpop.eup %1990 }
 0x1c6   : > { %v1993_v21 = vpop.eup %1992  ;;  %1343 = vperm.xlu0 %1882, %v1991_v20  }
 0x1c7   : > { %1378 = vperm.xlu1 %1883, %v1993_v21  }
 0x1ca   : > { %v1995_v9 = vpop.eup %1994 }
 0x1cb   : > { %1383 = vperm.xlu0 %1882, %v1995_v9  }
 0x1cc   : > { %2041 = shalt.err (!%p2038_p6)
}
 0x1cd   : > { %s2042_s13 = scalar_lea.hbm %s2551_s29, 2048  ;;  %s2046_s16 = scalar_lea.hbm %s2646_s5, 4096 }
 0x1ce   : > { %p2043_p7 = scmp.ne.s32.totalorder %s2551_s29, %s2042_s13  ;;  %p2047_p11 = scmp.lt.s32.totalorder %s2551_s29, %s2646_s5 }
 0x1cf   : > { %p2048_p12 = scmp.lt.s32.totalorder %s2046_s16, %s2042_s13 }
 0x1d0   : > { %p2044_p9 = pnand %p2043_p7, %p2181_p4 }
 0x1d1   : > { %p2049_p13 = por %p2048_p12, %p2047_p11 }
 0x1d2   : > { %p2045_p10 = pneg %p2044_p9 }
 0x1d4   : > { %p2050_p0 = pnand %p2049_p13, %p2045_p10 }
 0x1d6   : > { %2053 = shalt.err (!%p2050_p0)
}
 0x1d7   : > { %s2109_s27 = smov 128   ;;  %s2110_s9 = smov 8  }
 0x1d8   : > { %1821 = dma.vmem_to_hbm [thread:$0]  (%p2181_p4), %s2553_s24, 2048, %s2551_s29, %s2557_s11, %s2109_s27, %s2109_s27, %s2110_s9  }
 0x1d9   : > { %s2590_s29 = scalar_lea.vmem %s2645_s4, %s1662_s8 }
 0x211   : > { %v1309_v34 = vpop.permute.xlu0 %1308 }
 0x212   : > { %v1386_v60 = vmul.f32 %v2498_v63, %v1309_v34 }
 0x213   : > { %v1349_v27 = vpop.permute.xlu1 %1348 }
 0x214   : > { %v1418_v11 = vmul.f32 1.442695, %v1386_v60  ;;  %v1394_v2 = vmul.f32 %v2501_v17, %v1349_v27  ;;  %vm1402_vm0 = vcmp.gt.f32.partialorder %v1386_v60, 0.0 }
 0x216   : > { %1996 = vpow2.f32 %v1418_v11  ;;  %v1434_v10 = vmul.f32 1.442695, %v1394_v2  ;;  %vm1410_vm1 = vcmp.gt.f32.partialorder %v1394_v2, 0.0 }
 0x217   : > { %v1314_v26 = vpop.permute.xlu1 %1313  ;;  %v1354_v42 = vpop.permute.xlu0 %1353 }
 0x218   : > { %1998 = vpow2.f32 %v1434_v10  ;;  %v1387_v29 = vmul.f32 %v2503_v46, %v1314_v26  ;;  %v1395_v12 = vmul.f32 %v2507_v59, %v1354_v42 }
 0x21a   : > { %v1420_v61 = vmul.f32 1.442695, %v1387_v29  ;;  %v1436_v62 = vmul.f32 1.442695, %v1395_v12  ;;  %vm1403_vm2 = vcmp.gt.f32.partialorder %v1387_v29, 0.0  ;;  %vm1411_vm3 = vcmp.gt.f32.partialorder %v1395_v12, 0.0 }
 0x21c   : > { %2000 = vpow2.f32 %v1420_v61 }
 0x21d   : > { %2002 = vpow2.f32 %v1436_v62 }
 0x220   : > { %v1319_v36 = vpop.permute.xlu1 %1318 }
 0x221   : > { %v1388_v63 = vmul.f32 %v2510_v32, %v1319_v36 }
 0x223   : > { %v1997_v58 = vpop.eup %1996  ;;  %v1422_v23 = vmul.f32 1.442695, %v1388_v63  ;;  %vm1404_vm4 = vcmp.gt.f32.partialorder %v1388_v63, 0.0 }
 0x224   : > { %v1700_v17 = vadd.f32 -1.0, %v1997_v58  ;;  %v1324_v46 = vpop.permute.xlu0 %1323 }
 0x225   : > { %2004 = vpow2.f32 %v1422_v23  ;;  %v1359_v59 = vpop.permute.xlu1 %1358  ;;  %v1389_v18 = vmul.f32 %v2513_v28, %v1324_v46  ;;  %v1999_v13 = vpop.eup %1998 }
 0x226   : > { %v1466_v14 = vsel %vm1402_vm0, %v1386_v60, %v1700_v17  ;;  %v1396_v32 = vmul.f32 %v2515_v35, %v1359_v59  ;;  %v1708_v15 = vadd.f32 -1.0, %v1999_v13 }
 0x227   : > { %1482 = vst [vmem:[%s2590_s29] sm:$0xff] %v1466_v14  ;;  %v1424_v19 = vmul.f32 1.442695, %v1389_v18  ;;  %vm1405_vm5 = vcmp.gt.f32.partialorder %v1389_v18, 0.0 }
 0x228   : > { %v1438_v52 = vmul.f32 1.442695, %v1396_v32  ;;  %v1364_v38 = vpop.permute.xlu0 %1363  ;;  %v1474_v55 = vsel %vm1410_vm1, %v1394_v2, %v1708_v15  ;;  %vm1412_vm6 = vcmp.gt.f32.partialorder %v1396_v32, 0.0 }
 0x229   : > { %2006 = vpow2.f32 %v1424_v19  ;;  %v1397_v39 = vmul.f32 %v2519_v43, %v1364_v38  ;;  %v2001_v48 = vpop.eup %2000  ;;  %1490 = vst [vmem:[%s2590_s29 + $0x40] sm:$0xff] %v1474_v55 }
 0x22a   : > { %2008 = vpow2.f32 %v1438_v52  ;;  %v2003_v28 = vpop.eup %2002  ;;  %v1701_v41 = vadd.f32 -1.0, %v2001_v48 }
 0x22b   : > { %v1440_v53 = vmul.f32 1.442695, %v1397_v39  ;;  %v1709_v35 = vadd.f32 -1.0, %v2003_v28  ;;  %vm1413_vm7 = vcmp.gt.f32.partialorder %v1397_v39, 0.0 }
 0x22c   : > { %v1467_v54 = vsel %vm1403_vm2, %v1387_v29, %v1701_v41 }
 0x22d   : > { %2010 = vpow2.f32 %v1440_v53  ;;  %1483 = vst [vmem:[%s2590_s29 + $0x8] sm:$0xff] %v1467_v54  ;;  %v1475_v56 = vsel %vm1411_vm3, %v1395_v12, %v1709_v35 }
 0x22e   : > { %1491 = vst [vmem:[%s2590_s29 + $0x48] sm:$0xff] %v1475_v56 }
 0x22f   : > { %v1329_v57 = vpop.permute.xlu1 %1328 }
 0x230   : > { %v1390_v6 = vmul.f32 %v2522_v49, %v1329_v57 }
 0x232   : > { %v2005_v31 = vpop.eup %2004  ;;  %v1426_v43 = vmul.f32 1.442695, %v1390_v6  ;;  %vm1406_vm8 = vcmp.gt.f32.partialorder %v1390_v6, 0.0 }
 0x233   : > { %v1702_v24 = vadd.f32 -1.0, %v2005_v31  ;;  %v1369_v25 = vpop.permute.xlu1 %1368  ;;  %v1334_v50 = vpop.permute.xlu0 %1333 }
 0x234   : > { %2012 = vpow2.f32 %v1426_v43  ;;  %v1398_v40 = vmul.f32 %v2525_v33, %v1369_v25  ;;  %v1391_v0 = vmul.f32 %v2527_v37, %v1334_v50 }
 0x235   : > { %v1468_v7 = vsel %vm1404_vm4, %v1388_v63, %v1702_v24 }
 0x236   : > { %v2007_v8 = vpop.eup %2006  ;;  %1484 = vst [vmem:[%s2590_s29 + $0x10] sm:$0xff] %v1468_v7  ;;  %v1442_v16 = vmul.f32 1.442695, %v1398_v40  ;;  %v1428_v4 = vmul.f32 1.442695, %v1391_v0  ;;  %vm1414_vm9 = vcmp.gt.f32.partialorder %v1398_v40, 0.0 }
 0x237   : > { %v2009_v47 = vpop.eup %2008  ;;  %v1703_v49 = vadd.f32 -1.0, %v2007_v8  ;;  %v1374_v22 = vpop.permute.xlu0 %1373  ;;  %vm1407_vm10 = vcmp.gt.f32.partialorder %v1391_v0, 0.0 }
 0x238   : > { %v1710_v3 = vadd.f32 -1.0, %v2009_v47  ;;  %2014 = vpow2.f32 %v1442_v16  ;;  %v1399_v5 = vmul.f32 %v2531_v51, %v1374_v22 }
 0x239   : > { %v1469_v33 = vsel %vm1405_vm5, %v1389_v18, %v1703_v49  ;;  %2016 = vpow2.f32 %v1428_v4 }
 0x23a   : > { %v2011_v37 = vpop.eup %2010  ;;  %v1476_v20 = vsel %vm1412_vm6, %v1396_v32, %v1710_v3  ;;  %1485 = vst [vmem:[%s2590_s29 + $0x18] sm:$0xff] %v1469_v33  ;;  %v1444_v21 = vmul.f32 1.442695, %v1399_v5  ;;  %vm1415_vm11 = vcmp.gt.f32.partialorder %v1399_v5, 0.0 }
 0x23b   : > { %1492 = vst [vmem:[%s2590_s29 + $0x50] sm:$0xff] %v1476_v20  ;;  %v1711_v9 = vadd.f32 -1.0, %v2011_v37 }
 0x23c   : > { %2018 = vpow2.f32 %v1444_v21 }
 0x23d   : > { %v1477_v34 = vsel %vm1413_vm7, %v1397_v39, %v1711_v9  ;;  %v1339_v60 = vpop.permute.xlu1 %1338 }
 0x23e   : > { %1493 = vst [vmem:[%s2590_s29 + $0x58] sm:$0xff] %v1477_v34  ;;  %v1392_v11 = vmul.f32 %v2534_v45, %v1339_v60 }
 0x240   : > { %v1430_v27 = vmul.f32 1.442695, %v1392_v11  ;;  %vm1408_vm12 = vcmp.gt.f32.partialorder %v1392_v11, 0.0 }
 0x241   : > { %v2013_v2 = vpop.eup %2012  ;;  %v1344_v51 = vpop.permute.xlu0 %1343 }
 0x242   : > { %v1704_v10 = vadd.f32 -1.0, %v2013_v2  ;;  %2020 = vpow2.f32 %v1430_v27  ;;  %v1379_v26 = vpop.permute.xlu1 %1378  ;;  %v1393_v42 = vmul.f32 %v2537_v44, %v1344_v51 }
 0x243   : > { %v1400_v29 = vmul.f32 %v2539_v1, %v1379_v26 }
 0x244   : > { %v1470_v12 = vsel %vm1406_vm8, %v1390_v6, %v1704_v10  ;;  %v1432_v61 = vmul.f32 1.442695, %v1393_v42  ;;  %vm1409_vm13 = vcmp.gt.f32.partialorder %v1393_v42, 0.0 }
 0x245   : > { %v2015_v62 = vpop.eup %2014  ;;  %1486 = vst [vmem:[%s2590_s29 + $0x20] sm:$0xff] %v1470_v12  ;;  %v1446_v36 = vmul.f32 1.442695, %v1400_v29  ;;  %vm1416_vm14 = vcmp.gt.f32.partialorder %v1400_v29, 0.0 }
 0x246   : > { %v1384_v63 = vpop.permute.xlu0 %1383  ;;  %v2017_v45 = vpop.eup %2016  ;;  %v1712_v58 = vadd.f32 -1.0, %v2015_v62  ;;  %2022 = vpow2.f32 %v1432_v61 }
 0x247   : > { %v1401_v23 = vmul.f32 %v2543_v30, %v1384_v63  ;;  %v1705_v17 = vadd.f32 -1.0, %v2017_v45  ;;  %2024 = vpow2.f32 %v1446_v36 }
 0x248   : > { %v1478_v44 = vsel %vm1414_vm9, %v1398_v40, %v1712_v58 }
 0x249   : > { %v1448_v1 = vmul.f32 1.442695, %v1401_v23  ;;  %v2019_v46 = vpop.eup %2018  ;;  %1494 = vst [vmem:[%s2590_s29 + $0x60] sm:$0xff] %v1478_v44  ;;  %v1471_v59 = vsel %vm1407_vm10, %v1391_v0, %v1705_v17  ;;  %vm1417_vm15 = vcmp.gt.f32.partialorder %v1401_v23, 0.0 }
 0x24a   : > { %1487 = vst [vmem:[%s2590_s29 + $0x28] sm:$0xff] %v1471_v59  ;;  %v1713_v18 = vadd.f32 -1.0, %v2019_v46 }
 0x24b   : > { %2026 = vpow2.f32 %v1448_v1 }
 0x24c   : > { %v1479_v13 = vsel %vm1415_vm11, %v1399_v5, %v1713_v18 }
 0x24d   : > { %1495 = vst [vmem:[%s2590_s29 + $0x68] sm:$0xff] %v1479_v13 }
 0x24f   : > { %v2021_v14 = vpop.eup %2020 }
 0x250   : > { %v1706_v30 = vadd.f32 -1.0, %v2021_v14 }
 0x252   : > { %v1472_v32 = vsel %vm1408_vm12, %v1392_v11, %v1706_v30 }
 0x253   : > { %v2023_v15 = vpop.eup %2022  ;;  %1488 = vst [vmem:[%s2590_s29 + $0x30] sm:$0xff] %v1472_v32 }
 0x254   : > { %v2025_v19 = vpop.eup %2024  ;;  %v1707_v52 = vadd.f32 -1.0, %v2023_v15 }
 0x255   : > { %v1714_v38 = vadd.f32 -1.0, %v2025_v19 }
 0x256   : > { %v1473_v55 = vsel %vm1409_vm13, %v1393_v42, %v1707_v52 }
 0x257   : > { %v1480_v48 = vsel %vm1416_vm14, %v1400_v29, %v1714_v38  ;;  %1489 = vst [vmem:[%s2590_s29 + $0x38] sm:$0xff] %v1473_v55 }
 0x258   : > { %v2027_v39 = vpop.eup %2026  ;;  %1496 = vst [vmem:[%s2590_s29 + $0x70] sm:$0xff] %v1480_v48 }
 0x259   : > { %v1715_v28 = vadd.f32 -1.0, %v2027_v39 }
 0x25b   : > { %v1481_v41 = vsel %vm1417_vm15, %v1401_v23, %v1715_v28 }
 0x25c   : > { %1497 = vst [vmem:[%s2590_s29 + $0x78] sm:$0xff] %v1481_v41 }
 0x25d PF: > { %p1827_p4 = scmp.ge.s32.totalorder %s2104_s23, 2  ;;  %s1547_s7 = sand.u32 1, %s2084_s18  }
 0x25e   : > { %s1548_s8 = scalar_lea.sflag [#allocation4], %s1547_s7 }
 0x25f   : > { %p1824_p1 = pnand %p1827_p4, %p2188_p8 }
 0x261   : > { %p1825_p2 = pneg %p1824_p1 }
 0x263   : > { %2079 = dma.done.wait (%p1825_p2), %s1548_s8, 2048  }
 0x264   : > { %2081 = vsyncadd (%p1825_p2), %s1548_s8, 4294965248  ;;  %s19_s23 = sadd.s32 1, %s2104_s23   ;;  %s2649_s18 = smov %s2088_s19 }
 0x265   : > { %p16_p3 = scmp.ge.s32.totalorder %s19_s23, 4   ;;  %s2650_s19 = smov %s2092_s20 }
 0x266   : > { %s2651_s20 = smov %s2194_s6  ;;  %s2652_s21 = smov %s2100_s22 }
 0x267   : > { %s2653_s22 = smov %s2655_s26  ;;  %18 = sbr.rel (!%p16_p3) target bundleno = 4 (0x4), region = 98 }
 0x26c   :  { %1553 = vsyncpa [#allocation4], 1 }
 0x26d   :  { %1555 = vsyncpa [#allocation4 + $0x1], 1 }

</bundles_post_ra>
